<compile_context>
chip_gen: v7x
topology: tpu7x:2x2x1
jax: 0.10.0
libtpu: 0.0.40
codegen_flags: <defaults>
</compile_context>

<pallas_src>
from functools import partial

import jax
import jax.numpy as jnp
from jax.experimental import pallas as pl
from jax.experimental.pallas import tpu as pltpu

EPS = 1e-5  # torch.nn.InstanceNorm2d default


def _residual_block_kernel(x_ref,
                           w1_ref, g1_ref, b1_ref,
                           w2_ref, g2_ref, b2_ref,
                           o_ref, *, matmul_dtype):
    # x_ref  : (1, H, W, C) f32   input (also the residual)
    # w*_ref : (3, 3C, C)         conv weights in matmul_dtype, [kh][(kw,cin)][cout]
    # g*/b*  : (1, 1, C) f32      InstanceNorm affine gamma / beta
    # o_ref  : (1, H, W, C)
    H, W, C = x_ref.shape[1], x_ref.shape[2], x_ref.shape[3]

    def conv3x3_reflect(y_mm, w_ref):
        # y_mm: (H, W, C), ALREADY in matmul_dtype (cast before padding).
        # 1) reflection-pad along W (sublane axis) once.
        yw = jnp.concatenate([y_mm[:, 1:2], y_mm, y_mm[:, W - 2:W - 1]],
                             axis=1)                                   # (H, W+2, C)
        # 2) combine the three kw taps on the lane axis once (K = 3C).
        slab = jnp.concatenate([yw[:, 0:W], yw[:, 1:W + 1], yw[:, 2:W + 2]],
                               axis=-1)                                # (H, W, 3C)
        # 3) reflection-pad along H (major axis); kh shifts become cheap
        #    major-axis row slices of this buffer.
        slab_p = jnp.concatenate([slab[1:2], slab, slab[H - 2:H - 1]],
                                 axis=0)                               # (H+2, W, 3C)
        # 4) three accumulated matmuls with K = 3C, f32 accumulation.
        acc = jnp.zeros((H * W, C), jnp.float32)
        for kh in range(3):
            rows = slab_p[kh:kh + H].reshape(H * W, 3 * C)
            acc = acc + jnp.dot(rows, w_ref[kh],
                                preferred_element_type=jnp.float32)
        return acc.reshape(H, W, C)

    def instance_norm(y, gamma, beta):
        # One-pass per-channel stats over the spatial dims (biased variance),
        # folded into a single FMA pass over y.
        mean = jnp.mean(y, axis=(0, 1), keepdims=True)
        mean_sq = jnp.mean(y * y, axis=(0, 1), keepdims=True)
        var = jnp.maximum(mean_sq - mean * mean, 0.0)
        scale = gamma * jax.lax.rsqrt(var + EPS)
        shift = beta - mean * scale
        return y * scale + shift

    x = x_ref[0]                                   # (H, W, C) f32 residual

    # conv1 -> IN1 -> ReLU   (conv bias omitted: cancelled by IN mean-subtract)
    y = conv3x3_reflect(x.astype(matmul_dtype), w1_ref)
    y = instance_norm(y, g1_ref[...], b1_ref[...])
    y = jnp.maximum(y, 0.0)

    # conv2 -> IN2
    z = conv3x3_reflect(y.astype(matmul_dtype), w2_ref)
    z = instance_norm(z, g2_ref[...], b2_ref[...])

    # residual add
    o_ref[0] = (z + x).astype(o_ref.dtype)


def residual_block_nhwc(x_nhwc, params, matmul_dtype=jnp.bfloat16):
    """x_nhwc: (N, H, W, C) float32.  params: HWIO conv weights + IN affine.
    Conv biases (if present) are ignored: mathematically cancelled by the
    following InstanceNorm."""
    N, H, W, C = x_nhwc.shape
    assert H >= 2 and W >= 2, "ReflectionPad2d(1) requires H, W >= 2"

    def mat(w_hwio):   # (3, 3, C, C) HWIO -> (3, 3C, C): [kh][(kw, cin)][cout]
        return w_hwio.reshape(3, 3 * C, C).astype(matmul_dtype)

    def vec(p):        # (C,) -> (1, 1, C) for clean broadcast inside the kernel
        return p.reshape(1, 1, C).astype(jnp.float32)

    img_spec = pl.BlockSpec((1, H, W, C), lambda n: (n, 0, 0, 0))
    w_spec = pl.BlockSpec((3, 3 * C, C), lambda n: (0, 0, 0))
    v_spec = pl.BlockSpec((1, 1, C), lambda n: (0, 0, 0))

    # --- VMEM budget estimate (matches the actual allocation, generous) ------
    mm = jnp.dtype(matmul_dtype).itemsize
    hwc = H * W * C
    est = (
        4 * hwc * 4                                # double-buffered in + out (f32)
        + 2 * 2 * 9 * C * C * mm                   # two weight blocks, double-buffered
        + 4 * 2 * C * 4                            # gamma / beta blocks
        + (hwc                                     # cast input in matmul_dtype
           + H * (W + 2) * C                       # W-padded buffer
           + 3 * hwc                               # kw-combined slab (K = 3C)
           + 3 * (H + 2) * W * C) * mm             # H-padded slab
        + 6 * hwc * 4                              # f32 acc / conv / IN temps + residual
        + (2 << 20)                                # headroom
    )
    try:
        phys_vmem = pltpu.get_tpu_info().vmem_capacity_bytes
    except Exception:
        phys_vmem = 64 << 20                       # conservative (v7x per-TC)
    vmem_limit = int(min(max(est, 16 << 20), 0.9 * phys_vmem))

    kernel = partial(_residual_block_kernel, matmul_dtype=matmul_dtype)

    return pl.pallas_call(
        kernel,
        out_shape=jax.ShapeDtypeStruct((N, H, W, C), x_nhwc.dtype),
        grid_spec=pltpu.PrefetchScalarGridSpec(
            num_scalar_prefetch=0,
            grid=(N,),
            in_specs=[
                img_spec,                 # x (input + residual, single copy)
                w_spec, v_spec, v_spec,   # w1, gamma1, beta1
                w_spec, v_spec, v_spec,   # w2, gamma2, beta2
            ],
            out_specs=img_spec,
        ),
        compiler_params=pltpu.CompilerParams(
            dimension_semantics=("parallel",),
            vmem_limit_bytes=vmem_limit,
        ),
    )(x_nhwc,
      mat(params["w1"]), vec(params["gamma1"]), vec(params["beta1"]),
      mat(params["w2"]), vec(params["gamma2"]), vec(params["beta2"]))


def residual_block_nchw(x_nchw, params, matmul_dtype=jnp.bfloat16):
    """PyTorch-compatible entry: NCHW in, NCHW out.  When stacking blocks,
    prefer residual_block_nhwc and transpose only at the model boundary."""
    x_nhwc = jnp.transpose(x_nchw, (0, 2, 3, 1))
    y = residual_block_nhwc(x_nhwc, params, matmul_dtype=matmul_dtype)
    return jnp.transpose(y, (0, 3, 1, 2))


# ---------------- pure-JAX reference (NCHW, matches torch semantics) ----------
def _ref_forward(x_nchw, params):
    def conv(x, w_hwio, b):
        xp = jnp.pad(x, ((0, 0), (0, 0), (1, 1), (1, 1)), mode='reflect')
        y = jax.lax.conv_general_dilated(
            xp, w_hwio, window_strides=(1, 1), padding='VALID',
            dimension_numbers=('NCHW', 'HWIO', 'NCHW'))
        return y + b[None, :, None, None]

    def inorm(y, g, be):
        mean = y.mean(axis=(2, 3), keepdims=True)
        var = ((y - mean) ** 2).mean(axis=(2, 3), keepdims=True)
        return (y - mean) / jnp.sqrt(var + EPS) * g[None, :, None, None] \
               + be[None, :, None, None]

    out = jax.nn.relu(inorm(conv(x_nchw, params["w1"], params["b1"]),
                            params["gamma1"], params["beta1"]))
    out = inorm(conv(out, params["w2"], params["b2"]),
                params["gamma2"], params["beta2"])
    return out + x_nchw


if __name__ == "__main__":
    N, C, H, W = 2, 4, 16, 16
    key = jax.random.PRNGKey(0)
    k_x, k_w1, k_b1, k_w2, k_b2 = jax.random.split(key, 5)

    x = jax.random.normal(k_x, (N, C, H, W), dtype=jnp.float32)

    # Conv weights in HWIO (kh, kw, cin, cout).  The biases are used by the
    # reference but intentionally NOT by the kernel: InstanceNorm's mean
    # subtraction cancels a per-channel conv bias exactly.
    params = {
        "w1": 0.1 * jax.random.normal(k_w1, (3, 3, C, C), dtype=jnp.float32),
        "b1": 0.05 * jax.random.normal(k_b1, (C,), dtype=jnp.float32),
        "gamma1": jnp.ones((C,), jnp.float32),
        "beta1": jnp.zeros((C,), jnp.float32),
        "w2": 0.1 * jax.random.normal(k_w2, (3, 3, C, C), dtype=jnp.float32),
        "b2": 0.05 * jax.random.normal(k_b2, (C,), dtype=jnp.float32),
        "gamma2": jnp.ones((C,), jnp.float32),
        "beta2": jnp.zeros((C,), jnp.float32),
    }

    ref = jax.block_until_ready(_ref_forward(x, params))

    # f32-operand MXU path (reference/debug): tight tolerance.
    out_f32 = jax.block_until_ready(
        residual_block_nchw(x, params, matmul_dtype=jnp.float32))
    assert out_f32.shape == (N, C, H, W)
    assert jnp.allclose(out_f32, ref, rtol=1e-4, atol=1e-4), \
        f"f32 max abs err = {jnp.max(jnp.abs(out_f32 - ref))}"

    # Default bf16-operand MXU path (fast on v5e/v6e/v7x): looser tolerance.
    out_bf16 = jax.block_until_ready(residual_block_nchw(x, params))
    assert jnp.allclose(out_bf16, ref, rtol=5e-2, atol=5e-2), \
        f"bf16 max abs err = {jnp.max(jnp.abs(out_bf16 - ref))}"

    print("KERNEL_OK")
</pallas_src>

<mosaic_0001>
module attributes {stable_mosaic.version = 11 : i64} {
  func.func @_residual_block_kernel(%arg0: i32, %arg1: memref<1x16x16x4xf32, #tpu.memory_space<vmem>>, %arg2: memref<3x12x4xf32, #tpu.memory_space<vmem>>, %arg3: memref<1x1x4xf32, #tpu.memory_space<vmem>>, %arg4: memref<1x1x4xf32, #tpu.memory_space<vmem>>, %arg5: memref<3x12x4xf32, #tpu.memory_space<vmem>>, %arg6: memref<1x1x4xf32, #tpu.memory_space<vmem>>, %arg7: memref<1x1x4xf32, #tpu.memory_space<vmem>>, %arg8: memref<1x16x16x4xf32, #tpu.memory_space<vmem>>) attributes {dimension_semantics = [#tpu.dimension_semantics<parallel>], iteration_bounds = array<i64: 2>, scalar_prefetch = 0 : i64, scratch_operands = 0 : i64, tpu.core_type = #tpu.core_type<tc>, window_params = [{transform_indices = @transform_0, window_bounds = array<i64: 1, 16, 16, 4>}, {pipeline_mode = #tpu.pipeline_mode<synchronous>, transform_indices = @transform_1, window_bounds = array<i64: 3, 12, 4>}, {pipeline_mode = #tpu.pipeline_mode<synchronous>, transform_indices = @transform_2, window_bounds = array<i64: 1, 1, 4>}, {pipeline_mode = #tpu.pipeline_mode<synchronous>, transform_indices = @transform_3, window_bounds = array<i64: 1, 1, 4>}, {pipeline_mode = #tpu.pipeline_mode<synchronous>, transform_indices = @transform_4, window_bounds = array<i64: 3, 12, 4>}, {pipeline_mode = #tpu.pipeline_mode<synchronous>, transform_indices = @transform_5, window_bounds = array<i64: 1, 1, 4>}, {pipeline_mode = #tpu.pipeline_mode<synchronous>, transform_indices = @transform_6, window_bounds = array<i64: 1, 1, 4>}, {transform_indices = @transform_7, window_bounds = array<i64: 1, 16, 16, 4>}]} {
    %c0 = arith.constant 0 : index
    %c0_0 = arith.constant 0 : index
    %c0_1 = arith.constant 0 : index
    %c0_2 = arith.constant 0 : index
    %0 = vector.load %arg1[%c0, %c0_0, %c0_1, %c0_2] : memref<1x16x16x4xf32, #tpu.memory_space<vmem>>, vector<1x16x16x4xf32>
    %1 = vector.shape_cast %0 : vector<1x16x16x4xf32> to vector<16x16x4xf32>
    %2 = vector.extract_strided_slice %1 {offsets = [0, 1, 0], sizes = [16, 1, 4], strides = [1, 1, 1]} : vector<16x16x4xf32> to vector<16x1x4xf32>
    %3 = vector.extract_strided_slice %1 {offsets = [0, 14, 0], sizes = [16, 1, 4], strides = [1, 1, 1]} : vector<16x16x4xf32> to vector<16x1x4xf32>
    %4 = tpu.concatenate %2, %1, %3 in 1 : vector<16x1x4xf32>, vector<16x16x4xf32>, vector<16x1x4xf32> -> vector<16x18x4xf32>
    %5 = vector.extract_strided_slice %4 {offsets = [0, 0, 0], sizes = [16, 16, 4], strides = [1, 1, 1]} : vector<16x18x4xf32> to vector<16x16x4xf32>
    %6 = vector.extract_strided_slice %4 {offsets = [0, 1, 0], sizes = [16, 16, 4], strides = [1, 1, 1]} : vector<16x18x4xf32> to vector<16x16x4xf32>
    %7 = vector.extract_strided_slice %4 {offsets = [0, 2, 0], sizes = [16, 16, 4], strides = [1, 1, 1]} : vector<16x18x4xf32> to vector<16x16x4xf32>
    %8 = tpu.concatenate %5, %6, %7 in 2 : vector<16x16x4xf32>, vector<16x16x4xf32>, vector<16x16x4xf32> -> vector<16x16x12xf32>
    %9 = vector.extract_strided_slice %8 {offsets = [1, 0, 0], sizes = [1, 16, 12], strides = [1, 1, 1]} : vector<16x16x12xf32> to vector<1x16x12xf32>
    %10 = vector.extract_strided_slice %8 {offsets = [14, 0, 0], sizes = [1, 16, 12], strides = [1, 1, 1]} : vector<16x16x12xf32> to vector<1x16x12xf32>
    %11 = tpu.concatenate %9, %8, %10 in 0 : vector<1x16x12xf32>, vector<16x16x12xf32>, vector<1x16x12xf32> -> vector<18x16x12xf32>
    %cst = arith.constant 0.000000e+00 : f32
    %12 = vector.broadcast %cst : f32 to vector<256x4xf32>
    %13 = vector.extract_strided_slice %11 {offsets = [0, 0, 0], sizes = [16, 16, 12], strides = [1, 1, 1]} : vector<18x16x12xf32> to vector<16x16x12xf32>
    %14 = vector.shape_cast %13 : vector<16x16x12xf32> to vector<256x12xf32>
    %c0_3 = arith.constant 0 : index
    %c0_4 = arith.constant 0 : index
    %c0_5 = arith.constant 0 : index
    %15 = vector.load %arg2[%c0_3, %c0_4, %c0_5] : memref<3x12x4xf32, #tpu.memory_space<vmem>>, vector<1x12x4xf32>
    %16 = vector.shape_cast %15 : vector<1x12x4xf32> to vector<12x4xf32>
    %cst_6 = arith.constant dense<0.000000e+00> : vector<256x4xf32>
    %17 = tpu.matmul %14, %16, %cst_6 {dimension_numbers = #tpu.dot_dimension_numbers<[1], [0], [0], [1], [0, 0, 1, 1], [], []>} : vector<256x12xf32>, vector<12x4xf32>, vector<256x4xf32> -> vector<256x4xf32>
    %18 = arith.addf %12, %17 : vector<256x4xf32>
    %19 = vector.extract_strided_slice %11 {offsets = [1, 0, 0], sizes = [16, 16, 12], strides = [1, 1, 1]} : vector<18x16x12xf32> to vector<16x16x12xf32>
    %20 = vector.shape_cast %19 : vector<16x16x12xf32> to vector<256x12xf32>
    %c1 = arith.constant 1 : index
    %c0_7 = arith.constant 0 : index
    %c0_8 = arith.constant 0 : index
    %21 = vector.load %arg2[%c1, %c0_7, %c0_8] : memref<3x12x4xf32, #tpu.memory_space<vmem>>, vector<1x12x4xf32>
    %22 = vector.shape_cast %21 : vector<1x12x4xf32> to vector<12x4xf32>
    %cst_9 = arith.constant dense<0.000000e+00> : vector<256x4xf32>
    %23 = tpu.matmul %20, %22, %cst_9 {dimension_numbers = #tpu.dot_dimension_numbers<[1], [0], [0], [1], [0, 0, 1, 1], [], []>} : vector<256x12xf32>, vector<12x4xf32>, vector<256x4xf32> -> vector<256x4xf32>
    %24 = arith.addf %18, %23 : vector<256x4xf32>
    %25 = vector.extract_strided_slice %11 {offsets = [2, 0, 0], sizes = [16, 16, 12], strides = [1, 1, 1]} : vector<18x16x12xf32> to vector<16x16x12xf32>
    %26 = vector.shape_cast %25 : vector<16x16x12xf32> to vector<256x12xf32>
    %c2 = arith.constant 2 : index
    %c0_10 = arith.constant 0 : index
    %c0_11 = arith.constant 0 : index
    %27 = vector.load %arg2[%c2, %c0_10, %c0_11] : memref<3x12x4xf32, #tpu.memory_space<vmem>>, vector<1x12x4xf32>
    %28 = vector.shape_cast %27 : vector<1x12x4xf32> to vector<12x4xf32>
    %cst_12 = arith.constant dense<0.000000e+00> : vector<256x4xf32>
    %29 = tpu.matmul %26, %28, %cst_12 {dimension_numbers = #tpu.dot_dimension_numbers<[1], [0], [0], [1], [0, 0, 1, 1], [], []>} : vector<256x12xf32>, vector<12x4xf32>, vector<256x4xf32> -> vector<256x4xf32>
    %30 = arith.addf %24, %29 : vector<256x4xf32>
    %31 = vector.shape_cast %30 : vector<256x4xf32> to vector<16x16x4xf32>
    %c0_13 = arith.constant 0 : index
    %c0_14 = arith.constant 0 : index
    %c0_15 = arith.constant 0 : index
    %32 = vector.load %arg3[%c0_13, %c0_14, %c0_15] : memref<1x1x4xf32, #tpu.memory_space<vmem>>, vector<1x1x4xf32>
    %c0_16 = arith.constant 0 : index
    %c0_17 = arith.constant 0 : index
    %c0_18 = arith.constant 0 : index
    %33 = vector.load %arg4[%c0_16, %c0_17, %c0_18] : memref<1x1x4xf32, #tpu.memory_space<vmem>>, vector<1x1x4xf32>
    %cst_19 = arith.constant dense<0.000000e+00> : vector<4xf32>
    %34 = vector.multi_reduction <add>, %31, %cst_19 [0, 1] : vector<16x16x4xf32> to vector<4xf32>
    %35 = vector.shape_cast %34 : vector<4xf32> to vector<1x1x4xf32>
    %cst_20 = arith.constant 2.560000e+02 : f32
    %36 = vector.broadcast %cst_20 : f32 to vector<1x1x4xf32>
    %37 = arith.divf %35, %36 : vector<1x1x4xf32>
    %38 = arith.mulf %31, %31 : vector<16x16x4xf32>
    %cst_21 = arith.constant dense<0.000000e+00> : vector<4xf32>
    %39 = vector.multi_reduction <add>, %38, %cst_21 [0, 1] : vector<16x16x4xf32> to vector<4xf32>
    %40 = vector.shape_cast %39 : vector<4xf32> to vector<1x1x4xf32>
    %cst_22 = arith.constant 2.560000e+02 : f32
    %41 = vector.broadcast %cst_22 : f32 to vector<1x1x4xf32>
    %42 = arith.divf %40, %41 : vector<1x1x4xf32>
    %43 = arith.mulf %37, %37 : vector<1x1x4xf32>
    %44 = arith.subf %42, %43 : vector<1x1x4xf32>
    %cst_23 = arith.constant 0.000000e+00 : f32
    %45 = vector.broadcast %cst_23 : f32 to vector<1x1x4xf32>
    %46 = arith.maximumf %44, %45 : vector<1x1x4xf32>
    %cst_24 = arith.constant 9.99999974E-6 : f32
    %47 = vector.broadcast %cst_24 : f32 to vector<1x1x4xf32>
    %48 = arith.addf %46, %47 : vector<1x1x4xf32>
    %49 = math.rsqrt %48 : vector<1x1x4xf32>
    %50 = arith.mulf %32, %49 : vector<1x1x4xf32>
    %51 = arith.mulf %37, %50 : vector<1x1x4xf32>
    %52 = arith.subf %33, %51 : vector<1x1x4xf32>
    %53 = vector.broadcast %50 : vector<1x1x4xf32> to vector<16x16x4xf32>
    %54 = arith.mulf %31, %53 : vector<16x16x4xf32>
    %55 = vector.broadcast %52 : vector<1x1x4xf32> to vector<16x16x4xf32>
    %56 = arith.addf %54, %55 : vector<16x16x4xf32>
    %cst_25 = arith.constant 0.000000e+00 : f32
    %57 = vector.broadcast %cst_25 : f32 to vector<16x16x4xf32>
    %58 = arith.maximumf %56, %57 : vector<16x16x4xf32>
    %59 = vector.extract_strided_slice %58 {offsets = [0, 1, 0], sizes = [16, 1, 4], strides = [1, 1, 1]} : vector<16x16x4xf32> to vector<16x1x4xf32>
    %60 = vector.extract_strided_slice %58 {offsets = [0, 14, 0], sizes = [16, 1, 4], strides = [1, 1, 1]} : vector<16x16x4xf32> to vector<16x1x4xf32>
    %61 = tpu.concatenate %59, %58, %60 in 1 : vector<16x1x4xf32>, vector<16x16x4xf32>, vector<16x1x4xf32> -> vector<16x18x4xf32>
    %62 = vector.extract_strided_slice %61 {offsets = [0, 0, 0], sizes = [16, 16, 4], strides = [1, 1, 1]} : vector<16x18x4xf32> to vector<16x16x4xf32>
    %63 = vector.extract_strided_slice %61 {offsets = [0, 1, 0], sizes = [16, 16, 4], strides = [1, 1, 1]} : vector<16x18x4xf32> to vector<16x16x4xf32>
    %64 = vector.extract_strided_slice %61 {offsets = [0, 2, 0], sizes = [16, 16, 4], strides = [1, 1, 1]} : vector<16x18x4xf32> to vector<16x16x4xf32>
    %65 = tpu.concatenate %62, %63, %64 in 2 : vector<16x16x4xf32>, vector<16x16x4xf32>, vector<16x16x4xf32> -> vector<16x16x12xf32>
    %66 = vector.extract_strided_slice %65 {offsets = [1, 0, 0], sizes = [1, 16, 12], strides = [1, 1, 1]} : vector<16x16x12xf32> to vector<1x16x12xf32>
    %67 = vector.extract_strided_slice %65 {offsets = [14, 0, 0], sizes = [1, 16, 12], strides = [1, 1, 1]} : vector<16x16x12xf32> to vector<1x16x12xf32>
    %68 = tpu.concatenate %66, %65, %67 in 0 : vector<1x16x12xf32>, vector<16x16x12xf32>, vector<1x16x12xf32> -> vector<18x16x12xf32>
    %cst_26 = arith.constant 0.000000e+00 : f32
    %69 = vector.broadcast %cst_26 : f32 to vector<256x4xf32>
    %70 = vector.extract_strided_slice %68 {offsets = [0, 0, 0], sizes = [16, 16, 12], strides = [1, 1, 1]} : vector<18x16x12xf32> to vector<16x16x12xf32>
    %71 = vector.shape_cast %70 : vector<16x16x12xf32> to vector<256x12xf32>
    %c0_27 = arith.constant 0 : index
    %c0_28 = arith.constant 0 : index
    %c0_29 = arith.constant 0 : index
    %72 = vector.load %arg5[%c0_27, %c0_28, %c0_29] : memref<3x12x4xf32, #tpu.memory_space<vmem>>, vector<1x12x4xf32>
    %73 = vector.shape_cast %72 : vector<1x12x4xf32> to vector<12x4xf32>
    %cst_30 = arith.constant dense<0.000000e+00> : vector<256x4xf32>
    %74 = tpu.matmul %71, %73, %cst_30 {dimension_numbers = #tpu.dot_dimension_numbers<[1], [0], [0], [1], [0, 0, 1, 1], [], []>} : vector<256x12xf32>, vector<12x4xf32>, vector<256x4xf32> -> vector<256x4xf32>
    %75 = arith.addf %69, %74 : vector<256x4xf32>
    %76 = vector.extract_strided_slice %68 {offsets = [1, 0, 0], sizes = [16, 16, 12], strides = [1, 1, 1]} : vector<18x16x12xf32> to vector<16x16x12xf32>
    %77 = vector.shape_cast %76 : vector<16x16x12xf32> to vector<256x12xf32>
    %c1_31 = arith.constant 1 : index
    %c0_32 = arith.constant 0 : index
    %c0_33 = arith.constant 0 : index
    %78 = vector.load %arg5[%c1_31, %c0_32, %c0_33] : memref<3x12x4xf32, #tpu.memory_space<vmem>>, vector<1x12x4xf32>
    %79 = vector.shape_cast %78 : vector<1x12x4xf32> to vector<12x4xf32>
    %cst_34 = arith.constant dense<0.000000e+00> : vector<256x4xf32>
    %80 = tpu.matmul %77, %79, %cst_34 {dimension_numbers = #tpu.dot_dimension_numbers<[1], [0], [0], [1], [0, 0, 1, 1], [], []>} : vector<256x12xf32>, vector<12x4xf32>, vector<256x4xf32> -> vector<256x4xf32>
    %81 = arith.addf %75, %80 : vector<256x4xf32>
    %82 = vector.extract_strided_slice %68 {offsets = [2, 0, 0], sizes = [16, 16, 12], strides = [1, 1, 1]} : vector<18x16x12xf32> to vector<16x16x12xf32>
    %83 = vector.shape_cast %82 : vector<16x16x12xf32> to vector<256x12xf32>
    %c2_35 = arith.constant 2 : index
    %c0_36 = arith.constant 0 : index
    %c0_37 = arith.constant 0 : index
    %84 = vector.load %arg5[%c2_35, %c0_36, %c0_37] : memref<3x12x4xf32, #tpu.memory_space<vmem>>, vector<1x12x4xf32>
    %85 = vector.shape_cast %84 : vector<1x12x4xf32> to vector<12x4xf32>
    %cst_38 = arith.constant dense<0.000000e+00> : vector<256x4xf32>
    %86 = tpu.matmul %83, %85, %cst_38 {dimension_numbers = #tpu.dot_dimension_numbers<[1], [0], [0], [1], [0, 0, 1, 1], [], []>} : vector<256x12xf32>, vector<12x4xf32>, vector<256x4xf32> -> vector<256x4xf32>
    %87 = arith.addf %81, %86 : vector<256x4xf32>
    %88 = vector.shape_cast %87 : vector<256x4xf32> to vector<16x16x4xf32>
    %c0_39 = arith.constant 0 : index
    %c0_40 = arith.constant 0 : index
    %c0_41 = arith.constant 0 : index
    %89 = vector.load %arg6[%c0_39, %c0_40, %c0_41] : memref<1x1x4xf32, #tpu.memory_space<vmem>>, vector<1x1x4xf32>
    %c0_42 = arith.constant 0 : index
    %c0_43 = arith.constant 0 : index
    %c0_44 = arith.constant 0 : index
    %90 = vector.load %arg7[%c0_42, %c0_43, %c0_44] : memref<1x1x4xf32, #tpu.memory_space<vmem>>, vector<1x1x4xf32>
    %cst_45 = arith.constant dense<0.000000e+00> : vector<4xf32>
    %91 = vector.multi_reduction <add>, %88, %cst_45 [0, 1] : vector<16x16x4xf32> to vector<4xf32>
    %92 = vector.shape_cast %91 : vector<4xf32> to vector<1x1x4xf32>
    %cst_46 = arith.constant 2.560000e+02 : f32
    %93 = vector.broadcast %cst_46 : f32 to vector<1x1x4xf32>
    %94 = arith.divf %92, %93 : vector<1x1x4xf32>
    %95 = arith.mulf %88, %88 : vector<16x16x4xf32>
    %cst_47 = arith.constant dense<0.000000e+00> : vector<4xf32>
    %96 = vector.multi_reduction <add>, %95, %cst_47 [0, 1] : vector<16x16x4xf32> to vector<4xf32>
    %97 = vector.shape_cast %96 : vector<4xf32> to vector<1x1x4xf32>
    %cst_48 = arith.constant 2.560000e+02 : f32
    %98 = vector.broadcast %cst_48 : f32 to vector<1x1x4xf32>
    %99 = arith.divf %97, %98 : vector<1x1x4xf32>
    %100 = arith.mulf %94, %94 : vector<1x1x4xf32>
    %101 = arith.subf %99, %100 : vector<1x1x4xf32>
    %cst_49 = arith.constant 0.000000e+00 : f32
    %102 = vector.broadcast %cst_49 : f32 to vector<1x1x4xf32>
    %103 = arith.maximumf %101, %102 : vector<1x1x4xf32>
    %cst_50 = arith.constant 9.99999974E-6 : f32
    %104 = vector.broadcast %cst_50 : f32 to vector<1x1x4xf32>
    %105 = arith.addf %103, %104 : vector<1x1x4xf32>
    %106 = math.rsqrt %105 : vector<1x1x4xf32>
    %107 = arith.mulf %89, %106 : vector<1x1x4xf32>
    %108 = arith.mulf %94, %107 : vector<1x1x4xf32>
    %109 = arith.subf %90, %108 : vector<1x1x4xf32>
    %110 = vector.broadcast %107 : vector<1x1x4xf32> to vector<16x16x4xf32>
    %111 = arith.mulf %88, %110 : vector<16x16x4xf32>
    %112 = vector.broadcast %109 : vector<1x1x4xf32> to vector<16x16x4xf32>
    %113 = arith.addf %111, %112 : vector<16x16x4xf32>
    %114 = arith.addf %113, %1 : vector<16x16x4xf32>
    %c0_51 = arith.constant 0 : index
    %c0_52 = arith.constant 0 : index
    %c0_53 = arith.constant 0 : index
    %c0_54 = arith.constant 0 : index
    %115 = vector.load %arg8[%c0_51, %c0_52, %c0_53, %c0_54] : memref<1x16x16x4xf32, #tpu.memory_space<vmem>>, vector<1x16x16x4xf32>
    %116 = vector.shape_cast %115 : vector<1x16x16x4xf32> to vector<16x16x4xf32>
    %117 = vector.shape_cast %114 : vector<16x16x4xf32> to vector<1x16x16x4xf32>
    tpu.vector_store %arg8[%c0_51, %c0_52, %c0_53, %c0_54], %117 {strides = array<i32>} : memref<1x16x16x4xf32, #tpu.memory_space<vmem>>, vector<1x16x16x4xf32>,
    return
  }
  func.func @transform_0(%arg0: i32) -> (i32, i32, i32, i32) {
    %c0_i32 = arith.constant 0 : i32
    %c0_i32_0 = arith.constant 0 : i32
    %c0_i32_1 = arith.constant 0 : i32
    %c0_i32_2 = arith.constant 0 : i32
    return %arg0, %c0_i32, %c0_i32_0, %c0_i32_1 : i32, i32, i32, i32
  }
  func.func @transform_1(%arg0: i32) -> (i32, i32, i32) {
    %c0_i32 = arith.constant 0 : i32
    %c0_i32_0 = arith.constant 0 : i32
    %c0_i32_1 = arith.constant 0 : i32
    %c0_i32_2 = arith.constant 0 : i32
    return %c0_i32, %c0_i32_0, %c0_i32_1 : i32, i32, i32
  }
  func.func @transform_2(%arg0: i32) -> (i32, i32, i32) {
    %c0_i32 = arith.constant 0 : i32
    %c0_i32_0 = arith.constant 0 : i32
    %c0_i32_1 = arith.constant 0 : i32
    %c0_i32_2 = arith.constant 0 : i32
    return %c0_i32, %c0_i32_0, %c0_i32_1 : i32, i32, i32
  }
  func.func @transform_3(%arg0: i32) -> (i32, i32, i32) {
    %c0_i32 = arith.constant 0 : i32
    %c0_i32_0 = arith.constant 0 : i32
    %c0_i32_1 = arith.constant 0 : i32
    %c0_i32_2 = arith.constant 0 : i32
    return %c0_i32, %c0_i32_0, %c0_i32_1 : i32, i32, i32
  }
  func.func @transform_4(%arg0: i32) -> (i32, i32, i32) {
    %c0_i32 = arith.constant 0 : i32
    %c0_i32_0 = arith.constant 0 : i32
    %c0_i32_1 = arith.constant 0 : i32
    %c0_i32_2 = arith.constant 0 : i32
    return %c0_i32, %c0_i32_0, %c0_i32_1 : i32, i32, i32
  }
  func.func @transform_5(%arg0: i32) -> (i32, i32, i32) {
    %c0_i32 = arith.constant 0 : i32
    %c0_i32_0 = arith.constant 0 : i32
    %c0_i32_1 = arith.constant 0 : i32
    %c0_i32_2 = arith.constant 0 : i32
    return %c0_i32, %c0_i32_0, %c0_i32_1 : i32, i32, i32
  }
  func.func @transform_6(%arg0: i32) -> (i32, i32, i32) {
    %c0_i32 = arith.constant 0 : i32
    %c0_i32_0 = arith.constant 0 : i32
    %c0_i32_1 = arith.constant 0 : i32
    %c0_i32_2 = arith.constant 0 : i32
    return %c0_i32, %c0_i32_0, %c0_i32_1 : i32, i32, i32
  }
  func.func @transform_7(%arg0: i32) -> (i32, i32, i32, i32) {
    %c0_i32 = arith.constant 0 : i32
    %c0_i32_0 = arith.constant 0 : i32
    %c0_i32_1 = arith.constant 0 : i32
    %c0_i32_2 = arith.constant 0 : i32
    return %arg0, %c0_i32, %c0_i32_0, %c0_i32_1 : i32, i32, i32, i32
  }
}

</mosaic_0001>

<bundles_post_ra>
// kernel: tpu_custom_call.1
= control target key start
LH: loop header
LB: loop body
LE: loop exit
PB: predicated region body
PF: predicated region fallthrough
CT: control target
= control target key end

     0   :  { %s4967_s24 = smov 0   ;;  %s7378_s0 = inlined_call_operand.vmem [shape: f32[2,16,16,4], index: 0, kind: input, shape index: {}]   ;;  %s7379_s1 = inlined_call_operand.vmem [shape: f32[3,12,4], index: 1, kind: input, shape index: {}]   ;;  %s7380_s2 = inlined_call_operand.vmem [shape: f32[1,1,4], index: 2, kind: input, shape index: {}]   ;;  %s7381_s3 = inlined_call_operand.vmem [shape: f32[1,1,4], index: 3, kind: input, shape index: {}]   ;;  %s7382_s4 = inlined_call_operand.vmem [shape: f32[3,12,4], index: 4, kind: input, shape index: {}]   ;;  %s7383_s5 = inlined_call_operand.vmem [shape: f32[1,1,4], index: 5, kind: input, shape index: {}]   ;;  %s7384_s6 = inlined_call_operand.vmem [shape: f32[1,1,4], index: 6, kind: input, shape index: {}]   ;;  %s7385_s7 = inlined_call_operand.vmem [shape: f32[2,16,16,4], index: 7, kind: output, shape index: {}]  }
   0x1 LB: > { %s3970_s25 = sadd.s32 4294967295, %s4922_s24   ;;  %p3974_p0 = scmp.ge.s32.totalorder %s4922_s24, 1  ;;  %s4922_s24 = sphi %s4967_s24, %s17_s24  }
   0x2   : > { %p237_p1 = scmp.lt.s32.totalorder %s4922_s24, 3 }
   0x4   : > { %p238_p2 = pnand %p3974_p0, %p237_p1 }
   0x6   : > { %241 = sbr.rel (%p238_p2) target bundleno = 1335 (0x537), region = 48 }
   0xd   : > { %p269_p3 = scmp.lt.s32.totalorder %s3970_s25, 1  ;;  %v3979_v0 = vld [vmem:[%s7379_s1 + $0x10] sm:$0xff]  ;;  %v3980_v1 = vld [vmem:[%s7379_s1 + $0x18] sm:$0xf]  ;;  %vm1090_vm0 = vcmask 1043456   ;;  %vm4924_vm1 = vmmov 1  }
   0xe   : > { %v4705_v2 = vpack.c.bf16 %v3980_v1, %v3979_v0  ;;  %vm4983_vm2 = vmpackc.low %vm1090_vm0, %vm4924_vm1  ;;  %vm375_vm3 = vcmask 1040384   ;;  %vm745_vm4 = vcmask 1045504   ;;  %vm568_vm5 = vcmask 1046528   ;;  %s4925_s11 = smov 8   ;;  %s4926_s12 = smov 4  }
   0xf   : > { %s7465_s25 = smov (!%p269_p3, %s3970_s25), 1  ;;  %vm922_vm6 = vcmask 31744   ;;  %vm955_vm7 = vcmask 64512   ;;  %vm993_vm8 = vcmask 97280  }
  0x10   : > { %s4187_s30 = sshll.u32 %s7465_s25, 8  ;;  %4707 = vmatprep.subr.msk.bf16.mxu0 %vm4983_vm2, %v4705_v2 }
  0x11   : > { %s4995_s10 = scalar_lea.vmem %s7378_s0, %s4187_s30  ;;  %4710 = vmatpush3.bf16.msk.msra.mxu0 %vm4983_vm2, %v4705_v2  ;;  %s7257_s26 = scalar_lea.vmem %s7385_s7, %s4187_s30 }
  0x12   : > { %v279_v4 = vld [vmem:[%s4995_s10] sm:$0xff]  ;;  %v280_v5 = vld [vmem:[%s4995_s10 + $0x8] sm:$0xff]  ;;  %v281_v6 = vld [vmem:[%s4995_s10 + $0x10] sm:$0xff] }
  0x13   : > { %v327_v7 = vrot.slane %v279_v4, 1  ;;  %v376_v8 = vrot.slane %v279_v4, 7  ;;  %v377_v9 = vrot.slane %v280_v5, 7  ;;  %v472_v10 = vrot.slane %v280_v5, 5  ;;  %v282_v11 = vld [vmem:[%s4995_s10 + $0x18] sm:$0xff]  ;;  %v283_v29 = vld [vmem:[%s4995_s10 + $0x20] sm:$0xff] }
  0x14   : > { %v379_v12 = vrot.slane %v281_v6, 7  ;;  %v380_v13 = vrot.slane %v282_v11, 7  ;;  %v473_v14 = vrot.slane %v282_v11, 5  ;;  %v328_v18 = vrot.slane %v281_v6, 1  ;;  %v284_v30 = vld [vmem:[%s4995_s10 + $0x28] sm:$0xff]  ;;  %v285_v46 = vld [vmem:[%s4995_s10 + $0x30] sm:$0xff] }
  0x15   : > { %v5004_v15 = vsel %vm375_vm3, %v376_v8, %v377_v9  ;;  %v5007_v16 = vsel %vm375_vm3, %v327_v7, %v376_v8  ;;  %v520_v17 = vsel %vm375_vm3, %v377_v9, %v472_v10  ;;  %v382_v37 = vrot.slane %v283_v29, 7  ;;  %v286_v50 = vld [vmem:[%s4995_s10 + $0x38] sm:$0xff]  ;;  %v287_v5 = vld [vmem:[%s4995_s10 + $0x40] sm:$0xff]  ;;  %v288_v6 = vld [vmem:[%s4995_s10 + $0x48] sm:$0xff] }
  0x16   : > { %v746_v19 = vrot.slane %v5007_v16, 2  ;;  %v747_v20 = vrot.slane %v5004_v15, 2  ;;  %v569_v21 = vrot.slane %v5007_v16, 1  ;;  %v570_v22 = vrot.slane %v5004_v15, 1 }
  0x17   : > { %v749_v23 = vrot.slane %v520_v17, 2  ;;  %v572_v24 = vrot.slane %v520_v17, 1  ;;  %v5015_v25 = vsel %vm375_vm3, %v379_v12, %v380_v13  ;;  %v521_v26 = vsel %vm375_vm3, %v380_v13, %v473_v14 }
  0x18   : > { %v748_v27 = vsel %vm745_vm4, %v746_v19, %v747_v20  ;;  %v571_v28 = vsel %vm568_vm5, %v569_v21, %v570_v22  ;;  %v575_v31 = vrot.slane %v5015_v25, 1  ;;  %v5026_v32 = vsel %vm375_vm3, %v328_v18, %v379_v12 }
  0x19   : > { %826 = vrot.lane.b32.xlu1 %v748_v27, %s4925_s11  ;;  %649 = vrot.lane.b32.xlu0 %v571_v28, %s4926_s12  ;;  %v750_v33 = vsel %vm745_vm4, %v747_v20, %v749_v23  ;;  %v573_v34 = vsel %vm568_vm5, %v570_v22, %v572_v24  ;;  %v577_v35 = vrot.slane %v521_v26, 1  ;;  %v574_v36 = vrot.slane %v5026_v32, 1  ;;  %v289_v27 = vld [vmem:[%s4995_s10 + $0x50] sm:$0xff]  ;;  %v290_v28 = vld [vmem:[%s4995_s10 + $0x58] sm:$0xff] }
  0x1a   : > { %v383_v38 = vrot.slane %v284_v30, 7  ;;  %v474_v39 = vrot.slane %v284_v30, 5  ;;  %v329_v40 = vrot.slane %v283_v29, 1  ;;  %v752_v41 = vrot.slane %v5015_v25, 2 }
  0x1b   : > { %v754_v42 = vrot.slane %v521_v26, 2  ;;  %v751_v43 = vrot.slane %v5026_v32, 2  ;;  %v578_v44 = vsel %vm568_vm5, %v575_v31, %v577_v35  ;;  %v576_v45 = vsel %vm568_vm5, %v574_v36, %v575_v31 }
  0x1c   : > { %v5039_v47 = vsel %vm375_vm3, %v382_v37, %v383_v38  ;;  %v522_v48 = vsel %vm375_vm3, %v383_v38, %v474_v39  ;;  %v5043_v49 = vsel %vm375_vm3, %v329_v40, %v382_v37  ;;  %v385_v53 = vrot.slane %v285_v46, 7 }
  0x1d   : > { %828 = vrot.lane.b32.xlu1 %v750_v33, %s4925_s11  ;;  %651 = vrot.lane.b32.xlu0 %v573_v34, %s4926_s12  ;;  %v755_v51 = vsel %vm745_vm4, %v752_v41, %v754_v42  ;;  %v753_v52 = vsel %vm745_vm4, %v751_v43, %v752_v41  ;;  %v580_v54 = vrot.slane %v5039_v47, 1  ;;  %v582_v55 = vrot.slane %v522_v48, 1 }
  0x1e   : > { %v579_v56 = vrot.slane %v5043_v49, 1  ;;  %v386_v57 = vrot.slane %v286_v50, 7  ;;  %v475_v58 = vrot.slane %v286_v50, 5  ;;  %v330_v59 = vrot.slane %v285_v46, 1  ;;  %v292_v50 = vld [vmem:[%s4995_s10 + $0x68] sm:$0xff] }
  0x1f   : > { %v757_v60 = vrot.slane %v5039_v47, 2  ;;  %v759_v61 = vrot.slane %v522_v48, 2  ;;  %v583_v62 = vsel %vm568_vm5, %v580_v54, %v582_v55  ;;  %v756_v0 = vrot.slane %v5043_v49, 2  ;;  %v291_v48 = vld [vmem:[%s4995_s10 + $0x60] sm:$0xff] }
  0x20   : > { %v581_v63 = vsel %vm568_vm5, %v579_v56, %v580_v54  ;;  %v5059_v1 = vsel %vm375_vm3, %v385_v53, %v386_v57  ;;  %v523_v2 = vsel %vm375_vm3, %v386_v57, %v475_v58  ;;  %v5063_v4 = vsel %vm375_vm3, %v330_v59, %v385_v53 }
  0x21   : > { %655 = vrot.lane.b32.xlu1 %v578_v44, %s4926_s12  ;;  %653 = vrot.lane.b32.xlu0 %v576_v45, %s4926_s12  ;;  %v585_v7 = vrot.slane %v5059_v1, 1  ;;  %v760_v8 = vsel %vm745_vm4, %v757_v60, %v759_v61  ;;  %v758_v9 = vsel %vm745_vm4, %v756_v0, %v757_v60  ;;  %v587_v10 = vrot.slane %v523_v2, 1 }
  0x22   : > { %v584_v11 = vrot.slane %v5063_v4, 1  ;;  %v388_v12 = vrot.slane %v287_v5, 7  ;;  %v389_v13 = vrot.slane %v288_v6, 7  ;;  %v476_v14 = vrot.slane %v288_v6, 5 }
  0x23   : > { %v331_v17 = vrot.slane %v287_v5, 1  ;;  %v762_v18 = vrot.slane %v5059_v1, 2  ;;  %v764_v19 = vrot.slane %v523_v2, 2  ;;  %v588_v20 = vsel %vm568_vm5, %v585_v7, %v587_v10 }
  0x24   : > { %v586_v21 = vsel %vm568_vm5, %v584_v11, %v585_v7  ;;  %v761_v22 = vrot.slane %v5063_v4, 2  ;;  %v5080_v23 = vsel %vm375_vm3, %v388_v12, %v389_v13  ;;  %v524_v24 = vsel %vm375_vm3, %v389_v13, %v476_v14  ;;  %v293_v7 = vld [vmem:[%s4995_s10 + $0x70] sm:$0xff] }
  0x25   : > { %832 = vrot.lane.b32.xlu1 %v755_v51, %s4925_s11  ;;  %830 = vrot.lane.b32.xlu0 %v753_v52, %s4925_s11  ;;  %v5084_v26 = vsel %vm375_vm3, %v331_v17, %v388_v12  ;;  %v765_v29 = vsel %vm745_vm4, %v762_v18, %v764_v19  ;;  %v590_v31 = vrot.slane %v5080_v23, 1  ;;  %v592_v33 = vrot.slane %v524_v24, 1 }
  0x26   : > { %v763_v30 = vsel %vm745_vm4, %v761_v22, %v762_v18  ;;  %v589_v34 = vrot.slane %v5084_v26, 1  ;;  %v391_v35 = vrot.slane %v289_v27, 7  ;;  %v392_v36 = vrot.slane %v290_v28, 7 }
  0x27   : > { %v477_v37 = vrot.slane %v290_v28, 5  ;;  %v332_v38 = vrot.slane %v289_v27, 1  ;;  %v767_v39 = vrot.slane %v5080_v23, 2  ;;  %v769_v40 = vrot.slane %v524_v24, 2  ;;  %v295_v28 = vld [vmem:[%s4995_s10 + $0x80] sm:$0xff] }
  0x28   : > { %v593_v41 = vsel %vm568_vm5, %v590_v31, %v592_v33  ;;  %v591_v42 = vsel %vm568_vm5, %v589_v34, %v590_v31  ;;  %v766_v43 = vrot.slane %v5084_v26, 2  ;;  %v5101_v44 = vsel %vm375_vm3, %v391_v35, %v392_v36 }
  0x29   : > { %659 = vrot.lane.b32.xlu1 %v583_v62, %s4926_s12  ;;  %657 = vrot.lane.b32.xlu0 %v581_v63, %s4926_s12  ;;  %v525_v45 = vsel %vm375_vm3, %v392_v36, %v477_v37  ;;  %v5105_v46 = vsel %vm375_vm3, %v332_v38, %v391_v35  ;;  %v770_v51 = vsel %vm745_vm4, %v767_v39, %v769_v40  ;;  %v595_v53 = vrot.slane %v5101_v44, 1 }
  0x2a   : > { %v768_v52 = vsel %vm745_vm4, %v766_v43, %v767_v39  ;;  %v597_v54 = vrot.slane %v525_v45, 1  ;;  %v594_v55 = vrot.slane %v5105_v46, 1  ;;  %v394_v56 = vrot.slane %v291_v48, 7 }
  0x2b   : > { %v395_v57 = vrot.slane %v292_v50, 7  ;;  %v478_v58 = vrot.slane %v292_v50, 5  ;;  %v333_v59 = vrot.slane %v291_v48, 1  ;;  %v772_v60 = vrot.slane %v5101_v44, 2 }
  0x2c   : > { %v774_v61 = vrot.slane %v525_v45, 2  ;;  %v598_v62 = vsel %vm568_vm5, %v595_v53, %v597_v54  ;;  %v596_v63 = vsel %vm568_vm5, %v594_v55, %v595_v53  ;;  %v771_v0 = vrot.slane %v5105_v46, 2  ;;  %v988_v55 = vld [vmem:[%s7379_s1] sm:$0xff] }
  0x2d   : > { %836 = vrot.lane.b32.xlu1 %v760_v8, %s4925_s11  ;;  %834 = vrot.lane.b32.xlu0 %v758_v9, %s4925_s11  ;;  %v5122_v2 = vsel %vm375_vm3, %v394_v56, %v395_v57  ;;  %v526_v5 = vsel %vm375_vm3, %v395_v57, %v478_v58  ;;  %v5126_v6 = vsel %vm375_vm3, %v333_v59, %v394_v56  ;;  %v294_v8 = vld [vmem:[%s4995_s10 + $0x78] sm:$0xff]  ;;  %v397_v14 = vrot.slane %v293_v7, 7  ;;  %v989_v56 = vld [vmem:[%s7379_s1 + $0x8] sm:$0xf] }
  0x2e   : > { %v775_v9 = vsel %vm745_vm4, %v772_v60, %v774_v61  ;;  %v773_v10 = vsel %vm745_vm4, %v771_v0, %v772_v60  ;;  %v600_v11 = vrot.slane %v5122_v2, 1  ;;  %v602_v12 = vrot.slane %v526_v5, 1  ;;  %v297_v57 = vld [vmem:[%s4995_s10 + $0x90] sm:$0xff]  ;;  %v298_v58 = vld [vmem:[%s4995_s10 + $0x98] sm:$0xff] }
  0x2f   : > { %v599_v13 = vrot.slane %v5126_v6, 1  ;;  %v398_v17 = vrot.slane %v294_v8, 7  ;;  %v479_v18 = vrot.slane %v294_v8, 5  ;;  %v334_v19 = vrot.slane %v293_v7, 1 }
  0x30   : > { %v603_v22 = vsel %vm568_vm5, %v600_v11, %v602_v12  ;;  %v776_v27 = vrot.slane %v5126_v6, 2  ;;  %v400_v35 = vrot.slane %v295_v28, 7  ;;  %v5184_v0 = vpack.c.bf16 %v989_v56, %v988_v55 }
  0x31   : > { %663 = vrot.lane.b32.xlu1 %v588_v20, %s4926_s12  ;;  %661 = vrot.lane.b32.xlu0 %v586_v21, %s4926_s12  ;;  %v777_v20 = vrot.slane %v5122_v2, 2  ;;  %v779_v21 = vrot.slane %v526_v5, 2  ;;  %v601_v24 = vsel %vm568_vm5, %v599_v13, %v600_v11  ;;  %v527_v31 = vsel %vm375_vm3, %v398_v17, %v479_v18 }
  0x32   : > { %v5149_v33 = vsel %vm375_vm3, %v334_v19, %v397_v14  ;;  %v607_v39 = vrot.slane %v527_v31, 1  ;;  %v784_v45 = vrot.slane %v527_v31, 2  ;;  %v403_v5 = vrot.slane %v297_v57, 7  ;;  %4713 = vmatprep.subr.msk.bf16.mxu0 %vm4983_vm2, %v5184_v0 }
  0x33   : > { %v780_v34 = vsel %vm745_vm4, %v777_v20, %v779_v21  ;;  %v778_v37 = vsel %vm745_vm4, %v776_v27, %v777_v20  ;;  %v604_v40 = vrot.slane %v5149_v33, 1  ;;  %v404_v7 = vrot.slane %v298_v58, 7  ;;  %v299_v20 = vld [vmem:[%s4995_s10 + $0xa0] sm:$0xff]  ;;  %v300_v21 = vld [vmem:[%s4995_s10 + $0xa8] sm:$0xff] }
  0x34   : > { %v481_v8 = vrot.slane %v298_v58, 5  ;;  %v406_v31 = vrot.slane %v299_v20, 7 }
  0x35   : > { %840 = vrot.lane.b32.xlu1 %v765_v29, %s4925_s11  ;;  %838 = vrot.lane.b32.xlu0 %v763_v30, %s4925_s11  ;;  %v296_v29 = vld [vmem:[%s4995_s10 + $0x88] sm:$0xff]  ;;  %v5145_v30 = vsel %vm375_vm3, %v397_v14, %v398_v17  ;;  %v5196_v17 = vsel %vm375_vm3, %v403_v5, %v404_v7 }
  0x36   : > { %v401_v36 = vrot.slane %v296_v29, 7  ;;  %v605_v38 = vrot.slane %v5145_v30, 1  ;;  %v782_v43 = vrot.slane %v5145_v30, 2  ;;  %v529_v18 = vsel %vm375_vm3, %v404_v7, %v481_v8 }
  0x37   : > { %v615_v27 = vrot.slane %v5196_v17, 1 }
  0x38   : > { %v608_v48 = vsel %vm568_vm5, %v605_v38, %v607_v39  ;;  %v606_v50 = vsel %vm568_vm5, %v604_v40, %v605_v38  ;;  %v785_v59 = vsel %vm745_vm4, %v782_v43, %v784_v45  ;;  %v794_v38 = vrot.slane %v529_v18, 2 }
  0x39   : > { %667 = vrot.lane.b32.xlu1 %v593_v41, %s4926_s12  ;;  %665 = vrot.lane.b32.xlu0 %v591_v42, %s4926_s12  ;;  %v480_v41 = vrot.slane %v296_v29, 5  ;;  %v335_v42 = vrot.slane %v295_v28, 1  ;;  %v617_v28 = vrot.slane %v529_v18, 1 }
  0x3b   : > { %v528_v53 = vsel %vm375_vm3, %v401_v36, %v480_v41  ;;  %v5168_v54 = vsel %vm375_vm3, %v335_v42, %v400_v35  ;;  %v618_v39 = vsel %vm568_vm5, %v615_v27, %v617_v28 }
  0x3c   : > { %v789_v11 = vrot.slane %v528_v53, 2  ;;  %v786_v14 = vrot.slane %v5168_v54, 2 }
  0x3d   : > { %844 = vrot.lane.b32.xlu1 %v770_v51, %s4925_s11  ;;  %842 = vrot.lane.b32.xlu0 %v768_v52, %s4925_s11  ;;  %v781_v51 = vrot.slane %v5149_v33, 2  ;;  %v5164_v52 = vsel %vm375_vm3, %v400_v35, %v401_v36  ;;  %v482_v35 = vrot.slane %v300_v21, 5  ;;  %v337_v36 = vrot.slane %v299_v20, 1 }
  0x3e   : > { %v610_v60 = vrot.slane %v5164_v52, 1 }
  0x3f   : > { %v783_v61 = vsel %vm745_vm4, %v781_v51, %v782_v43  ;;  %v5221_v45 = vsel %vm375_vm3, %v337_v36, %v406_v31 }
  0x41   : > { %671 = vrot.lane.b32.xlu1 %v598_v62, %s4926_s12  ;;  %669 = vrot.lane.b32.xlu0 %v596_v63, %s4926_s12  ;;  %v612_v62 = vrot.slane %v528_v53, 1  ;;  %v609_v63 = vrot.slane %v5168_v54, 1 }
  0x43   : > { %v613_v12 = vsel %vm568_vm5, %v610_v60, %v612_v62  ;;  %v611_v13 = vsel %vm568_vm5, %v609_v63, %v610_v60 }
  0x45   : > { %848 = vrot.lane.b32.xlu1 %v775_v9, %s4925_s11  ;;  %846 = vrot.lane.b32.xlu0 %v773_v10, %s4925_s11  ;;  %v336_v9 = vrot.slane %v297_v57, 1  ;;  %v787_v10 = vrot.slane %v5164_v52, 2  ;;  %v619_v57 = vrot.slane %v5221_v45, 1 }
  0x47   : > { %v5200_v19 = vsel %vm375_vm3, %v336_v9, %v403_v5  ;;  %v796_v5 = vrot.slane %v5221_v45, 2  ;;  %v303_v9 = vld [vmem:[%s4995_s10 + $0xc0] sm:$0xff] }
  0x48   : > { %v614_v29 = vrot.slane %v5200_v19, 1  ;;  %v791_v41 = vrot.slane %v5200_v19, 2  ;;  %v412_v20 = vrot.slane %v303_v9, 7 }
  0x49   : > { %675 = vrot.lane.b32.xlu1 %v603_v22, %s4926_s12  ;;  %673 = vrot.lane.b32.xlu0 %v601_v24, %s4926_s12  ;;  %v790_v22 = vsel %vm745_vm4, %v787_v10, %v789_v11  ;;  %v788_v24 = vsel %vm745_vm4, %v786_v14, %v787_v10 }
  0x4a   : > { %v616_v40 = vsel %vm568_vm5, %v614_v29, %v615_v27  ;;  %v339_v29 = vrot.slane %v303_v9, 1 }
  0x4d   : > { %852 = vrot.lane.b32.xlu1 %v780_v34, %s4925_s11  ;;  %850 = vrot.lane.b32.xlu0 %v778_v37, %s4925_s11  ;;  %v407_v34 = vrot.slane %v300_v21, 7  ;;  %v792_v37 = vrot.slane %v5196_v17, 2 }
  0x4f   : > { %v5217_v42 = vsel %vm375_vm3, %v406_v31, %v407_v34  ;;  %v530_v43 = vsel %vm375_vm3, %v407_v34, %v482_v35  ;;  %v795_v51 = vsel %vm745_vm4, %v792_v37, %v794_v38  ;;  %v793_v53 = vsel %vm745_vm4, %v791_v41, %v792_v37  ;;  %v305_v41 = vld [vmem:[%s4995_s10 + $0xd0] sm:$0xff] }
  0x50   : > { %v620_v55 = vrot.slane %v5217_v42, 1  ;;  %v622_v56 = vrot.slane %v530_v43, 1  ;;  %v797_v62 = vrot.slane %v5217_v42, 2  ;;  %v799_v63 = vrot.slane %v530_v43, 2  ;;  %v306_v43 = vld [vmem:[%s4995_s10 + $0xd8] sm:$0xff] }
  0x51   : > { %679 = vrot.lane.b32.xlu1 %v608_v48, %s4926_s12  ;;  %677 = vrot.lane.b32.xlu0 %v606_v50, %s4926_s12  ;;  %v301_v48 = vld [vmem:[%s4995_s10 + $0xb0] sm:$0xff]  ;;  %v302_v50 = vld [vmem:[%s4995_s10 + $0xb8] sm:$0xff] }
  0x52   : > { %v409_v58 = vrot.slane %v301_v48, 7  ;;  %v483_v60 = vrot.slane %v302_v50, 5  ;;  %v623_v7 = vsel %vm568_vm5, %v620_v55, %v622_v56  ;;  %v621_v8 = vsel %vm568_vm5, %v619_v57, %v620_v55 }
  0x53   : > { %v800_v14 = vsel %vm745_vm4, %v797_v62, %v799_v63  ;;  %v798_v18 = vsel %vm745_vm4, %v796_v5, %v797_v62  ;;  %v415_v56 = vrot.slane %v305_v41, 7  ;;  %v416_v57 = vrot.slane %v306_v43, 7 }
  0x55   : > { %856 = vrot.lane.b32.xlu1 %v785_v59, %s4925_s11  ;;  %854 = vrot.lane.b32.xlu0 %v783_v61, %s4925_s11  ;;  %v410_v59 = vrot.slane %v302_v50, 7  ;;  %v338_v61 = vrot.slane %v301_v48, 1 }
  0x57   : > { %v5239_v10 = vsel %vm375_vm3, %v409_v58, %v410_v59  ;;  %v531_v11 = vsel %vm375_vm3, %v410_v59, %v483_v60  ;;  %v340_v59 = vrot.slane %v305_v41, 1 }
  0x58   : > { %v625_v21 = vrot.slane %v5239_v10, 1  ;;  %v802_v31 = vrot.slane %v5239_v10, 2  ;;  %v804_v34 = vrot.slane %v531_v11, 2 }
  0x59   : > { %683 = vrot.lane.b32.xlu1 %v613_v12, %s4926_s12  ;;  %681 = vrot.lane.b32.xlu0 %v611_v13, %s4926_s12  ;;  %v5243_v12 = vsel %vm375_vm3, %v338_v61, %v409_v58  ;;  %v304_v13 = vld [vmem:[%s4995_s10 + $0xc8] sm:$0xff]  ;;  %v485_v58 = vrot.slane %v306_v43, 5  ;;  %v5284_v9 = vsel %vm375_vm3, %v340_v59, %v415_v56 }
  0x5a   : > { %v413_v27 = vrot.slane %v304_v13, 7  ;;  %v484_v28 = vrot.slane %v304_v13, 5  ;;  %v801_v37 = vrot.slane %v5243_v12, 2  ;;  %v805_v50 = vsel %vm745_vm4, %v802_v31, %v804_v34  ;;  %v308_v13 = vld [vmem:[%s4995_s10 + $0xe8] sm:$0xff] }
  0x5c   : > { %v5259_v38 = vsel %vm375_vm3, %v412_v20, %v413_v27 }
  0x5d   : > { %860 = vrot.lane.b32.xlu1 %v790_v22, %s4925_s11  ;;  %858 = vrot.lane.b32.xlu0 %v788_v24, %s4925_s11  ;;  %v627_v22 = vrot.slane %v531_v11, 1  ;;  %v624_v24 = vrot.slane %v5243_v12, 1  ;;  %v630_v48 = vrot.slane %v5259_v38, 1  ;;  %v807_v60 = vrot.slane %v5259_v38, 2  ;;  %v307_v11 = vld [vmem:[%s4995_s10 + $0xe0] sm:$0xff] }
  0x5f   : > { %v628_v35 = vsel %vm568_vm5, %v625_v21, %v627_v22  ;;  %v626_v36 = vsel %vm568_vm5, %v624_v24, %v625_v21  ;;  %v634_v22 = vrot.slane %v5284_v9, 1  ;;  %v418_v24 = vrot.slane %v307_v11, 7 }
  0x61   : > { %687 = vrot.lane.b32.xlu1 %v618_v39, %s4926_s12  ;;  %685 = vrot.lane.b32.xlu0 %v616_v40, %s4926_s12  ;;  %v532_v39 = vsel %vm375_vm3, %v413_v27, %v484_v28  ;;  %v5263_v40 = vsel %vm375_vm3, %v339_v29, %v412_v20  ;;  %v419_v27 = vrot.slane %v308_v13, 7  ;;  %v486_v28 = vrot.slane %v308_v13, 5 }
  0x62   : > { %v629_v55 = vrot.slane %v5263_v40, 1  ;;  %v809_v61 = vrot.slane %v532_v39, 2  ;;  %v806_v5 = vrot.slane %v5263_v40, 2  ;;  %v341_v29 = vrot.slane %v307_v11, 1 }
  0x63   : > { %v534_v41 = vsel %vm375_vm3, %v419_v27, %v486_v28 }
  0x64   : > { %v631_v63 = vsel %vm568_vm5, %v629_v55, %v630_v48  ;;  %v5305_v43 = vsel %vm375_vm3, %v341_v29, %v418_v24 }
  0x65   : > { %864 = vrot.lane.b32.xlu1 %v795_v51, %s4925_s11  ;;  %862 = vrot.lane.b32.xlu0 %v793_v53, %s4925_s11  ;;  %v803_v51 = vsel %vm745_vm4, %v801_v37, %v802_v31  ;;  %v632_v53 = vrot.slane %v532_v39, 1  ;;  %v811_v37 = vrot.slane %v5284_v9, 2  ;;  %v5301_v39 = vsel %vm375_vm3, %v418_v24, %v419_v27 }
  0x66   : > { %v640_v55 = vrot.slane %v5301_v39, 1  ;;  %v816_v11 = vrot.slane %v5305_v43, 2 }
  0x67   : > { %v633_v62 = vsel %vm568_vm5, %v630_v48, %v632_v53  ;;  %v309_v48 = vld [vmem:[%s4995_s10 + $0xf0] sm:$0xff] }
  0x69   : > { %691 = vrot.lane.b32.xlu1 %v623_v7, %s4926_s12  ;;  %689 = vrot.lane.b32.xlu0 %v621_v8, %s4926_s12  ;;  %v5280_v7 = vsel %vm375_vm3, %v415_v56, %v416_v57  ;;  %v533_v8 = vsel %vm375_vm3, %v416_v57, %v485_v58  ;;  %v642_v56 = vrot.slane %v534_v41, 1  ;;  %v639_v57 = vrot.slane %v5305_v43, 1 }
  0x6a   : > { %v635_v20 = vrot.slane %v5280_v7, 1  ;;  %v637_v21 = vrot.slane %v533_v8, 1  ;;  %v812_v31 = vrot.slane %v5280_v7, 2  ;;  %v814_v34 = vrot.slane %v533_v8, 2 }
  0x6b   : > { %v421_v58 = vrot.slane %v309_v48, 7  ;;  %v641_v8 = vsel %vm568_vm5, %v639_v57, %v640_v55 }
  0x6c   : > { %v813_v53 = vsel %vm745_vm4, %v811_v37, %v812_v31  ;;  %v4048_v37 = vld [vmem:[%s7379_s1 + $0x28] sm:$0xf] }
  0x6d   : > { %868 = vrot.lane.b32.xlu1 %v800_v14, %s4925_s11  ;;  %866 = vrot.lane.b32.xlu0 %v798_v18, %s4925_s11  ;;  %v810_v14 = vsel %vm745_vm4, %v807_v60, %v809_v61  ;;  %v808_v18 = vsel %vm745_vm4, %v806_v5, %v807_v60  ;;  %v342_v61 = vrot.slane %v309_v48, 1  ;;  %v643_v5 = vsel %vm568_vm5, %v640_v55, %v642_v56 }
  0x71   : > { %695 = vrot.lane.b32.xlu1 %v628_v35, %s4926_s12  ;;  %693 = vrot.lane.b32.xlu0 %v626_v36, %s4926_s12  ;;  %v638_v35 = vsel %vm568_vm5, %v635_v20, %v637_v21  ;;  %v636_v36 = vsel %vm568_vm5, %v634_v22, %v635_v20 }
  0x75   : > { %872 = vrot.lane.b32.xlu1 %v805_v50, %s4925_s11  ;;  %870 = vrot.lane.b32.xlu0 %v803_v51, %s4925_s11  ;;  %v310_v50 = vld [vmem:[%s4995_s10 + $0xf8] sm:$0xff]  ;;  %v815_v51 = vsel %vm745_vm4, %v812_v31, %v814_v34 }
  0x76   : > { %v422_v59 = vrot.slane %v310_v50, 7  ;;  %v487_v60 = vrot.slane %v310_v50, 5 }
  0x78   : > { %v5322_v13 = vsel %vm375_vm3, %v421_v58, %v422_v59 }
  0x79   : > { %699 = vrot.lane.b32.xlu1 %v633_v62, %s4926_s12  ;;  %697 = vrot.lane.b32.xlu0 %v631_v63, %s4926_s12  ;;  %v817_v62 = vrot.slane %v5301_v39, 2  ;;  %v819_v63 = vrot.slane %v534_v41, 2  ;;  %v645_v22 = vrot.slane %v5322_v13, 1 }
  0x7b   : > { %v820_v20 = vsel %vm745_vm4, %v817_v62, %v819_v63  ;;  %v818_v21 = vsel %vm745_vm4, %v816_v11, %v817_v62 }
  0x7d   : > { %876 = vrot.lane.b32.xlu1 %v810_v14, %s4925_s11  ;;  %874 = vrot.lane.b32.xlu0 %v808_v18, %s4925_s11  ;;  %v535_v14 = vsel %vm375_vm3, %v422_v59, %v487_v60  ;;  %v5326_v18 = vsel %vm375_vm3, %v342_v61, %v421_v58 }
  0x7e   : > { %v647_v24 = vrot.slane %v535_v14, 1  ;;  %v644_v27 = vrot.slane %v5326_v18, 1  ;;  %v824_v48 = vrot.slane %v535_v14, 2  ;;  %v821_v50 = vrot.slane %v5326_v18, 2 }
  0x80   : > { %v646_v41 = vsel %vm568_vm5, %v644_v27, %v645_v22 }
  0x81   : > { %703 = vrot.lane.b32.xlu1 %v638_v35, %s4926_s12  ;;  %701 = vrot.lane.b32.xlu0 %v636_v36, %s4926_s12  ;;  %v822_v35 = vrot.slane %v5322_v13, 2  ;;  %v4047_v36 = vld [vmem:[%s7379_s1 + $0x20] sm:$0xff] }
  0x82   : > { %v5355_v56 = vpack.c.bf16 %v4048_v37, %v4047_v36 }
  0x83   : > { %v825_v58 = vsel %vm745_vm4, %v822_v35, %v824_v48  ;;  %v823_v59 = vsel %vm745_vm4, %v821_v50, %v822_v35 }
  0x85   : > { %880 = vrot.lane.b32.xlu1 %v815_v51, %s4925_s11  ;;  %878 = vrot.lane.b32.xlu0 %v813_v53, %s4925_s11 }
  0x89   : > { %707 = vrot.lane.b32.xlu1 %v643_v5, %s4926_s12  ;;  %705 = vrot.lane.b32.xlu0 %v641_v8, %s4926_s12 }
  0x8b   : > { %v827_v28 = vpop.permute.xlu1 %826  ;;  %v650_v29 = vpop.permute.xlu0 %649 }
  0x8c   : > { %v923_v31 = vsel %vm922_vm6, %v5007_v16, %v650_v29  ;;  %v648_v16 = vsel %vm568_vm5, %v645_v22, %v647_v24 }
  0x8d   : > { %884 = vrot.lane.b32.xlu1 %v820_v20, %s4925_s11  ;;  %882 = vrot.lane.b32.xlu0 %v818_v21, %s4925_s11  ;;  %v5339_v34 = vsel %vm955_vm7, %v923_v31, %v827_v28 }
  0x8e   : > { %4397 = vmatprep.mubr.msk.f32.mxu0 %vm993_vm8, %v5339_v34 }
  0x8f   : > { %v829_v51 = vpop.permute.xlu1 %828  ;;  %v652_v53 = vpop.permute.xlu0 %651 }
  0x90   : > { %v924_v55 = vsel %vm922_vm6, %v5004_v15, %v652_v53 }
  0x91   : > { %711 = vrot.lane.b32.xlu1 %v648_v16, %s4926_s12  ;;  %709 = vrot.lane.b32.xlu0 %v646_v41, %s4926_s12  ;;  %v5360_v57 = vsel %vm955_vm7, %v924_v55, %v829_v51 }
  0x92   : > { %4398 = vmatmul.mubr.msk.f32.vlgmr.msra.gmra.mrb[0].mxu0 %vm993_vm8, %v5360_v57 }
  0x93   : > { %v656_v60 = vpop.permute.xlu1 %655  ;;  %v654_v61 = vpop.permute.xlu0 %653  ;;  %4716 = vmatpush3.bf16.msk.msra.mxu0 %vm4983_vm2, %v5184_v0 }
  0x94   : > { %4719 = vmatprep.subr.msk.bf16.mxu0 %vm4983_vm2, %v5355_v56  ;;  %v926_v15 = vsel %vm922_vm6, %v5015_v25, %v656_v60  ;;  %v925_v62 = vsel %vm922_vm6, %v5026_v32, %v654_v61 }
  0x95   : > { %888 = vrot.lane.b32.xlu1 %v825_v58, %s4925_s11  ;;  %886 = vrot.lane.b32.xlu0 %v823_v59, %s4925_s11 }
  0x97   : > { %v833_v63 = vpop.permute.xlu1 %832  ;;  %v831_v5 = vpop.permute.xlu0 %830 }
  0x98   : > { %v5379_v8 = vsel %vm955_vm7, %v926_v15, %v833_v63  ;;  %v5382_v0 = vsel %vm955_vm7, %v925_v62, %v831_v5 }
  0x99   : > { %4400 = vmatprep.mubr.msk.f32.mxu0 %vm993_vm8, %v5382_v0 }
  0x9a   : > { %4401 = vmatmul.mubr.msk.f32.gmra.mrb[2].mxu0 %vm993_vm8, %v5379_v8 }
  0x9b   : > { %v660_v11 = vpop.permute.xlu1 %659  ;;  %v658_v14 = vpop.permute.xlu0 %657 }
  0x9c   : > { %v928_v25 = vsel %vm922_vm6, %v5039_v47, %v660_v11  ;;  %v927_v32 = vsel %vm922_vm6, %v5043_v49, %v658_v14 }
  0x9f   : > { %v837_v20 = vpop.permute.xlu1 %836  ;;  %v835_v21 = vpop.permute.xlu0 %834 }
  0xa0   : > { %v5393_v22 = vsel %vm955_vm7, %v928_v25, %v837_v20  ;;  %v5396_v24 = vsel %vm955_vm7, %v927_v32, %v835_v21 }
  0xa1   : > { %4403 = vmatprep.mubr.msk.f32.mxu0 %vm993_vm8, %v5396_v24 }
  0xa2   : > { %4404 = vmatmul.mubr.msk.f32.gmra.mrb[4].mxu0 %vm993_vm8, %v5393_v22 }
  0xa3   : > { %v664_v27 = vpop.permute.xlu1 %663  ;;  %v662_v28 = vpop.permute.xlu0 %661 }
  0xa4   : > { %v930_v47 = vsel %vm922_vm6, %v5059_v1, %v664_v27  ;;  %v929_v49 = vsel %vm922_vm6, %v5063_v4, %v662_v28 }
  0xa7   : > { %v841_v29 = vpop.permute.xlu1 %840  ;;  %v839_v31 = vpop.permute.xlu0 %838 }
  0xa8   : > { %v5407_v35 = vsel %vm955_vm7, %v930_v47, %v841_v29  ;;  %v5410_v36 = vsel %vm955_vm7, %v929_v49, %v839_v31 }
  0xa9   : > { %4406 = vmatprep.mubr.msk.f32.mxu0 %vm993_vm8, %v5410_v36 }
  0xaa   : > { %4407 = vmatmul.mubr.msk.f32.gmra.mrb[6].mxu0 %vm993_vm8, %v5407_v35 }
  0xab   : > { %v668_v37 = vpop.permute.xlu1 %667  ;;  %v666_v16 = vpop.permute.xlu0 %665 }
  0xac   : > { %v932_v1 = vsel %vm922_vm6, %v5080_v23, %v668_v37  ;;  %v931_v4 = vsel %vm922_vm6, %v5084_v26, %v666_v16 }
  0xaf   : > { %v845_v41 = vpop.permute.xlu1 %844  ;;  %v843_v48 = vpop.permute.xlu0 %842 }
  0xb0   : > { %v5421_v50 = vsel %vm955_vm7, %v932_v1, %v845_v41  ;;  %v5424_v51 = vsel %vm955_vm7, %v931_v4, %v843_v48 }
  0xb1   : > { %4409 = vmatprep.mubr.msk.f32.mxu0 %vm993_vm8, %v5424_v51 }
  0xb2   : > { %4410 = vmatmul.mubr.msk.f32.gmra.mrb[8].mxu0 %vm993_vm8, %v5421_v50 }
  0xb3   : > { %v672_v53 = vpop.permute.xlu1 %671  ;;  %v670_v55 = vpop.permute.xlu0 %669 }
  0xb4   : > { %v934_v23 = vsel %vm922_vm6, %v5101_v44, %v672_v53  ;;  %v933_v26 = vsel %vm922_vm6, %v5105_v46, %v670_v55 }
  0xb7   : > { %v849_v58 = vpop.permute.xlu1 %848  ;;  %v847_v59 = vpop.permute.xlu0 %846 }
  0xb8   : > { %v5435_v60 = vsel %vm955_vm7, %v934_v23, %v849_v58  ;;  %v5438_v61 = vsel %vm955_vm7, %v933_v26, %v847_v59 }
  0xb9   : > { %4412 = vmatprep.mubr.msk.f32.mxu0 %vm993_vm8, %v5438_v61 }
  0xba   : > { %4413 = vmatmul.mubr.msk.f32.gmra.mrb[10].mxu0 %vm993_vm8, %v5435_v60 }
  0xbb   : > { %v676_v15 = vpop.permute.xlu1 %675  ;;  %v674_v62 = vpop.permute.xlu0 %673 }
  0xbc   : > { %v936_v44 = vsel %vm922_vm6, %v5122_v2, %v676_v15  ;;  %v935_v46 = vsel %vm922_vm6, %v5126_v6, %v674_v62 }
  0xbf   : > { %v853_v63 = vpop.permute.xlu1 %852  ;;  %v851_v5 = vpop.permute.xlu0 %850 }
  0xc0   : > { %v5449_v11 = vsel %vm955_vm7, %v936_v44, %v853_v63  ;;  %v5452_v14 = vsel %vm955_vm7, %v935_v46, %v851_v5 }
  0xc1   : > { %4415 = vmatprep.mubr.msk.f32.mxu0 %vm993_vm8, %v5452_v14 }
  0xc2   : > { %4416 = vmatmul.mubr.msk.f32.gmra.mrb[12].mxu0 %vm993_vm8, %v5449_v11 }
  0xc3   : > { %v680_v25 = vpop.permute.xlu1 %679  ;;  %v678_v32 = vpop.permute.xlu0 %677 }
  0xc4   : > { %v938_v2 = vsel %vm922_vm6, %v5145_v30, %v680_v25  ;;  %v937_v6 = vsel %vm922_vm6, %v5149_v33, %v678_v32 }
  0xc7   : > { %v857_v20 = vpop.permute.xlu1 %856  ;;  %v855_v21 = vpop.permute.xlu0 %854 }
  0xc8   : > { %v5463_v27 = vsel %vm955_vm7, %v938_v2, %v857_v20  ;;  %v5466_v28 = vsel %vm955_vm7, %v937_v6, %v855_v21 }
  0xc9   : > { %4418 = vmatprep.mubr.msk.f32.mxu0 %vm993_vm8, %v5466_v28 }
  0xca   : > { %4419 = vmatmul.mubr.msk.f32.gmra.mrb[14].mxu0 %vm993_vm8, %v5463_v27 }
  0xcb   : > { %v684_v47 = vpop.permute.xlu1 %683  ;;  %v682_v49 = vpop.permute.xlu0 %681 }
  0xcc   : > { %v940_v30 = vsel %vm922_vm6, %v5164_v52, %v684_v47  ;;  %v939_v33 = vsel %vm922_vm6, %v5168_v54, %v682_v49 }
  0xcf   : > { %v861_v29 = vpop.permute.xlu1 %860  ;;  %v859_v31 = vpop.permute.xlu0 %858 }
  0xd0   : > { %v5477_v37 = vsel %vm955_vm7, %v940_v30, %v861_v29  ;;  %v5480_v16 = vsel %vm955_vm7, %v939_v33, %v859_v31 }
  0xd1   : > { %4421 = vmatprep.mubr.msk.f32.mxu0 %vm993_vm8, %v5480_v16 }
  0xd2   : > { %4422 = vmatmul.mubr.msk.f32.gmra.mrb[16].mxu0 %vm993_vm8, %v5477_v37 }
  0xd3   : > { %v688_v1 = vpop.permute.xlu1 %687  ;;  %v686_v4 = vpop.permute.xlu0 %685 }
  0xd4   : > { %v942_v52 = vsel %vm922_vm6, %v5196_v17, %v688_v1  ;;  %v941_v54 = vsel %vm922_vm6, %v5200_v19, %v686_v4 }
  0xd7   : > { %v865_v41 = vpop.permute.xlu1 %864  ;;  %v863_v48 = vpop.permute.xlu0 %862 }
  0xd8   : > { %v5491_v53 = vsel %vm955_vm7, %v942_v52, %v865_v41  ;;  %v5494_v55 = vsel %vm955_vm7, %v941_v54, %v863_v48 }
  0xd9   : > { %4424 = vmatprep.mubr.msk.f32.mxu0 %vm993_vm8, %v5494_v55 }
  0xda   : > { %4425 = vmatmul.mubr.msk.f32.gmra.mrb[18].mxu0 %vm993_vm8, %v5491_v53 }
  0xdb   : > { %v692_v23 = vpop.permute.xlu1 %691  ;;  %v690_v26 = vpop.permute.xlu0 %689 }
  0xdc   : > { %v944_v17 = vsel %vm922_vm6, %v5217_v42, %v692_v23  ;;  %v943_v19 = vsel %vm922_vm6, %v5221_v45, %v690_v26 }
  0xdf   : > { %v869_v58 = vpop.permute.xlu1 %868  ;;  %v867_v59 = vpop.permute.xlu0 %866 }
  0xe0   : > { %v5505_v15 = vsel %vm955_vm7, %v944_v17, %v869_v58  ;;  %v5508_v62 = vsel %vm955_vm7, %v943_v19, %v867_v59 }
  0xe1   : > { %4427 = vmatprep.mubr.msk.f32.mxu0 %vm993_vm8, %v5508_v62 }
  0xe2   : > { %4428 = vmatmul.mubr.msk.f32.gmra.mrb[20].mxu0 %vm993_vm8, %v5505_v15 }
  0xe3   : > { %v696_v44 = vpop.permute.xlu1 %695  ;;  %v694_v46 = vpop.permute.xlu0 %693 }
  0xe4   : > { %v946_v42 = vsel %vm922_vm6, %v5239_v10, %v696_v44  ;;  %v945_v45 = vsel %vm922_vm6, %v5243_v12, %v694_v46 }
  0xe7   : > { %v873_v63 = vpop.permute.xlu1 %872  ;;  %v871_v5 = vpop.permute.xlu0 %870 }
  0xe8   : > { %v5519_v25 = vsel %vm955_vm7, %v946_v42, %v873_v63  ;;  %v5522_v32 = vsel %vm955_vm7, %v945_v45, %v871_v5 }
  0xe9   : > { %4430 = vmatprep.mubr.msk.f32.mxu0 %vm993_vm8, %v5522_v32 }
  0xea   : > { %4431 = vmatmul.mubr.msk.f32.gmra.mrb[22].mxu0 %vm993_vm8, %v5519_v25 }
  0xeb   : > { %v700_v2 = vpop.permute.xlu1 %699  ;;  %v698_v6 = vpop.permute.xlu0 %697 }
  0xec   : > { %v948_v10 = vsel %vm922_vm6, %v5259_v38, %v700_v2  ;;  %v947_v12 = vsel %vm922_vm6, %v5263_v40, %v698_v6 }
  0xef   : > { %v877_v20 = vpop.permute.xlu1 %876  ;;  %v875_v21 = vpop.permute.xlu0 %874 }
  0xf0   : > { %v5533_v47 = vsel %vm955_vm7, %v948_v10, %v877_v20  ;;  %v5536_v49 = vsel %vm955_vm7, %v947_v12, %v875_v21 }
  0xf1   : > { %4433 = vmatprep.mubr.msk.f32.mxu0 %vm993_vm8, %v5536_v49 }
  0xf2   : > { %4434 = vmatmul.mubr.msk.f32.gmra.mrb[24].mxu0 %vm993_vm8, %v5533_v47 }
  0xf3   : > { %v704_v30 = vpop.permute.xlu1 %703  ;;  %v702_v33 = vpop.permute.xlu0 %701 }
  0xf4   : > { %v950_v38 = vsel %vm922_vm6, %v5280_v7, %v704_v30  ;;  %v949_v40 = vsel %vm922_vm6, %v5284_v9, %v702_v33 }
  0xf7   : > { %v881_v29 = vpop.permute.xlu1 %880  ;;  %v879_v31 = vpop.permute.xlu0 %878 }
  0xf8   : > { %v5547_v1 = vsel %vm955_vm7, %v950_v38, %v881_v29  ;;  %v5550_v4 = vsel %vm955_vm7, %v949_v40, %v879_v31 }
  0xf9   : > { %4436 = vmatprep.mubr.msk.f32.mxu0 %vm993_vm8, %v5550_v4 }
  0xfa   : > { %4437 = vmatmul.mubr.msk.f32.gmra.mrb[26].mxu0 %vm993_vm8, %v5547_v1 }
  0xfb   : > { %v708_v52 = vpop.permute.xlu1 %707  ;;  %v706_v54 = vpop.permute.xlu0 %705 }
  0xfc   : > { %v952_v7 = vsel %vm922_vm6, %v5301_v39, %v708_v52  ;;  %v951_v9 = vsel %vm922_vm6, %v5305_v43, %v706_v54 }
  0xff   : > { %v885_v41 = vpop.permute.xlu1 %884  ;;  %v883_v48 = vpop.permute.xlu0 %882 }
 0x100   : > { %v5561_v23 = vsel %vm955_vm7, %v952_v7, %v885_v41  ;;  %v5564_v26 = vsel %vm955_vm7, %v951_v9, %v883_v48 }
 0x101   : > { %4439 = vmatprep.mubr.msk.f32.mxu0 %vm993_vm8, %v5564_v26 }
 0x102   : > { %4440 = vmatmul.mubr.msk.f32.gmra.mrb[28].mxu0 %vm993_vm8, %v5561_v23 }
 0x103   : > { %v712_v17 = vpop.permute.xlu1 %711  ;;  %v710_v19 = vpop.permute.xlu0 %709 }
 0x104   : > { %v954_v39 = vsel %vm922_vm6, %v5322_v13, %v712_v17  ;;  %v953_v43 = vsel %vm922_vm6, %v5326_v18, %v710_v19 }
 0x107   : > { %v889_v58 = vpop.permute.xlu1 %888  ;;  %v887_v59 = vpop.permute.xlu0 %886 }
 0x108   : > { %v5575_v44 = vsel %vm955_vm7, %v954_v39, %v889_v58  ;;  %v5578_v46 = vsel %vm955_vm7, %v953_v43, %v887_v59 }
 0x109   : > { %4442 = vmatprep.mubr.msk.f32.mxu0 %vm993_vm8, %v5578_v46 }
 0x10a   : > { %4443 = vmatmul.mubr.msk.f32.gmra.mrb[30].mxu0 %vm993_vm8, %v5575_v44 }
 0x10b   : > { %4449 = vmatprep.mubr.msk.f32.mxu0 %vm993_vm8, %v5382_v0 }
 0x10e   : > { %4450 = vmatmul.mubr.msk.f32.vlgmr.msra.gmra.mrb[0].mxu0 %vm993_vm8, %v5379_v8 }
 0x10f   : > { %4722 = vmatpush3.bf16.msk.msra.mxu0 %vm4983_vm2, %v5355_v56  ;;  %4452 = vmatprep.mubr.msk.f32.mxu0 %vm993_vm8, %v5339_v34 }
 0x112   : > { %4453 = vmatmul.mubr.msk.f32.gmra.mrb[2].mxu0 %vm993_vm8, %v5360_v57 }
 0x113   : > { %4455 = vmatprep.mubr.msk.f32.mxu0 %vm993_vm8, %v5382_v0 }
 0x116   : > { %4456 = vmatmul.mubr.msk.f32.gmra.mrb[4].mxu0 %vm993_vm8, %v5379_v8 }
 0x117   : > { %4458 = vmatprep.mubr.msk.f32.mxu0 %vm993_vm8, %v5396_v24 }
 0x11a   : > { %4459 = vmatmul.mubr.msk.f32.gmra.mrb[6].mxu0 %vm993_vm8, %v5393_v22 }
 0x11b   : > { %4461 = vmatprep.mubr.msk.f32.mxu0 %vm993_vm8, %v5410_v36 }
 0x11e   : > { %4462 = vmatmul.mubr.msk.f32.gmra.mrb[8].mxu0 %vm993_vm8, %v5407_v35 }
 0x11f   : > { %4464 = vmatprep.mubr.msk.f32.mxu0 %vm993_vm8, %v5424_v51 }
 0x122   : > { %4465 = vmatmul.mubr.msk.f32.gmra.mrb[10].mxu0 %vm993_vm8, %v5421_v50 }
 0x123   : > { %4467 = vmatprep.mubr.msk.f32.mxu0 %vm993_vm8, %v5438_v61 }
 0x126   : > { %4468 = vmatmul.mubr.msk.f32.gmra.mrb[12].mxu0 %vm993_vm8, %v5435_v60 }
 0x127   : > { %4470 = vmatprep.mubr.msk.f32.mxu0 %vm993_vm8, %v5452_v14 }
 0x12a   : > { %4471 = vmatmul.mubr.msk.f32.gmra.mrb[14].mxu0 %vm993_vm8, %v5449_v11 }
 0x12b   : > { %4473 = vmatprep.mubr.msk.f32.mxu0 %vm993_vm8, %v5466_v28 }
 0x12e   : > { %4474 = vmatmul.mubr.msk.f32.gmra.mrb[16].mxu0 %vm993_vm8, %v5463_v27 }
 0x12f   : > { %4476 = vmatprep.mubr.msk.f32.mxu0 %vm993_vm8, %v5480_v16 }
 0x132   : > { %4477 = vmatmul.mubr.msk.f32.gmra.mrb[18].mxu0 %vm993_vm8, %v5477_v37 }
 0x133   : > { %4479 = vmatprep.mubr.msk.f32.mxu0 %vm993_vm8, %v5494_v55 }
 0x136   : > { %4480 = vmatmul.mubr.msk.f32.gmra.mrb[20].mxu0 %vm993_vm8, %v5491_v53 }
 0x137   : > { %4482 = vmatprep.mubr.msk.f32.mxu0 %vm993_vm8, %v5508_v62 }
 0x13a   : > { %4483 = vmatmul.mubr.msk.f32.gmra.mrb[22].mxu0 %vm993_vm8, %v5505_v15 }
 0x13b   : > { %4485 = vmatprep.mubr.msk.f32.mxu0 %vm993_vm8, %v5522_v32 }
 0x13e   : > { %4486 = vmatmul.mubr.msk.f32.gmra.mrb[24].mxu0 %vm993_vm8, %v5519_v25 }
 0x13f   : > { %4488 = vmatprep.mubr.msk.f32.mxu0 %vm993_vm8, %v5536_v49 }
 0x142   : > { %4489 = vmatmul.mubr.msk.f32.gmra.mrb[26].mxu0 %vm993_vm8, %v5533_v47 }
 0x143   : > { %4491 = vmatprep.mubr.msk.f32.mxu0 %vm993_vm8, %v5550_v4 }
 0x146   : > { %4492 = vmatmul.mubr.msk.f32.gmra.mrb[28].mxu0 %vm993_vm8, %v5547_v1 }
 0x147   : > { %4494 = vmatprep.mubr.msk.f32.mxu0 %vm993_vm8, %v5564_v26 }
 0x14a   : > { %4495 = vmatmul.mubr.msk.f32.gmra.mrb[30].mxu0 %vm993_vm8, %v5561_v23 }
 0x14b   : > { %4501 = vmatprep.mubr.msk.f32.mxu0 %vm993_vm8, %v5382_v0 }
 0x14e   : > { %4502 = vmatmul.mubr.msk.f32.vlgmr.msra.gmra.mrb[0].mxu0 %vm993_vm8, %v5379_v8 }
 0x14f   : > { %4504 = vmatprep.mubr.msk.f32.mxu0 %vm993_vm8, %v5396_v24 }
 0x152   : > { %4505 = vmatmul.mubr.msk.f32.gmra.mrb[2].mxu0 %vm993_vm8, %v5393_v22 }
 0x153   : > { %4507 = vmatprep.mubr.msk.f32.mxu0 %vm993_vm8, %v5410_v36 }
 0x156   : > { %4508 = vmatmul.mubr.msk.f32.gmra.mrb[4].mxu0 %vm993_vm8, %v5407_v35 }
 0x157   : > { %4510 = vmatprep.mubr.msk.f32.mxu0 %vm993_vm8, %v5424_v51 }
 0x15a   : > { %4511 = vmatmul.mubr.msk.f32.gmra.mrb[6].mxu0 %vm993_vm8, %v5421_v50 }
 0x15b   : > { %4513 = vmatprep.mubr.msk.f32.mxu0 %vm993_vm8, %v5438_v61 }
 0x15e   : > { %4514 = vmatmul.mubr.msk.f32.gmra.mrb[8].mxu0 %vm993_vm8, %v5435_v60 }
 0x15f   : > { %4516 = vmatprep.mubr.msk.f32.mxu0 %vm993_vm8, %v5452_v14 }
 0x162   : > { %4517 = vmatmul.mubr.msk.f32.gmra.mrb[10].mxu0 %vm993_vm8, %v5449_v11 }
 0x163   : > { %4519 = vmatprep.mubr.msk.f32.mxu0 %vm993_vm8, %v5466_v28 }
 0x166   : > { %4520 = vmatmul.mubr.msk.f32.gmra.mrb[12].mxu0 %vm993_vm8, %v5463_v27 }
 0x167   : > { %4522 = vmatprep.mubr.msk.f32.mxu0 %vm993_vm8, %v5480_v16 }
 0x16a   : > { %4523 = vmatmul.mubr.msk.f32.gmra.mrb[14].mxu0 %vm993_vm8, %v5477_v37 }
 0x16b   : > { %4525 = vmatprep.mubr.msk.f32.mxu0 %vm993_vm8, %v5494_v55 }
 0x16e   : > { %4526 = vmatmul.mubr.msk.f32.gmra.mrb[16].mxu0 %vm993_vm8, %v5491_v53 }
 0x16f   : > { %4528 = vmatprep.mubr.msk.f32.mxu0 %vm993_vm8, %v5508_v62 }
 0x172   : > { %4529 = vmatmul.mubr.msk.f32.gmra.mrb[18].mxu0 %vm993_vm8, %v5505_v15 }
 0x173   : > { %4531 = vmatprep.mubr.msk.f32.mxu0 %vm993_vm8, %v5522_v32 }
 0x176   : > { %4532 = vmatmul.mubr.msk.f32.gmra.mrb[20].mxu0 %vm993_vm8, %v5519_v25 }
 0x177   : > { %4534 = vmatprep.mubr.msk.f32.mxu0 %vm993_vm8, %v5536_v49 }
 0x17a   : > { %4535 = vmatmul.mubr.msk.f32.gmra.mrb[22].mxu0 %vm993_vm8, %v5533_v47 }
 0x17b   : > { %4537 = vmatprep.mubr.msk.f32.mxu0 %vm993_vm8, %v5550_v4 }
 0x17e   : > { %4538 = vmatmul.mubr.msk.f32.gmra.mrb[24].mxu0 %vm993_vm8, %v5547_v1 }
 0x17f   : > { %4540 = vmatprep.mubr.msk.f32.mxu0 %vm993_vm8, %v5564_v26 }
 0x182   : > { %4541 = vmatmul.mubr.msk.f32.gmra.mrb[26].mxu0 %vm993_vm8, %v5561_v23 }
 0x183   : > { %4543 = vmatprep.mubr.msk.f32.mxu0 %vm993_vm8, %v5578_v46 }
 0x186   : > { %4544 = vmatmul.mubr.msk.f32.gmra.mrb[28].mxu0 %vm993_vm8, %v5575_v44 }
 0x187   : > { %4546 = vmatprep.mubr.msk.f32.mxu0 %vm993_vm8, %v5564_v26 }
 0x18a   : > { %4547 = vmatmul.mubr.msk.f32.gmra.mrb[30].mxu0 %vm993_vm8, %v5561_v23 }
 0x221   : > { %v5715_v13 = vpop.f32.mrb[0].mxu0 }
 0x222   : > { %v1813_v18 = vsel %vm922_vm6, %v5715_v13, 0.0  ;;  %v1884_v34 = vmul.f32 %v5715_v13, %v5715_v13  ;;  %v5721_v56 = vpop.f32.mrb[1].mxu0 }
 0x223   : > { %v1812_v57 = vsel %vm922_vm6, %v5721_v56, 0.0  ;;  %v1883_v8 = vmul.f32 %v5721_v56, %v5721_v56 }
 0x224   : > { %v1916_v0 = vsel %vm922_vm6, %v1884_v34, 0.0  ;;  %v1814_v22 = vadd.f32 %v1813_v18, %v1812_v57 }
 0x225   : > { %v1915_v24 = vsel %vm922_vm6, %v1883_v8, 0.0  ;;  %v5729_v35 = vpop.f32.mrb[2].mxu0 }
 0x226   : > { %v1917_v36 = vadd.f32 %v1916_v0, %v1915_v24  ;;  %v5731_v50 = vpop.f32.mrb[3].mxu0  ;;  %v1886_v51 = vmul.f32 %v5729_v35, %v5729_v35  ;;  %v1817_v14 = vsel %vm922_vm6, %v5729_v35, 0.0 }
 0x227   : > { %v1815_v60 = vsel %vm922_vm6, %v5731_v50, 0.0  ;;  %v1885_v61 = vmul.f32 %v5731_v50, %v5731_v50 }
 0x228   : > { %v1816_v11 = vadd.f32 %v1815_v60, %v1814_v22  ;;  %v1920_v55 = vsel %vm922_vm6, %v1886_v51, 0.0 }
 0x229   : > { %v1918_v27 = vsel %vm922_vm6, %v1885_v61, 0.0  ;;  %v5742_v28 = vpop.f32.mrb[4].mxu0 }
 0x22a   : > { %v1919_v37 = vadd.f32 %v1918_v27, %v1917_v36  ;;  %v5744_v16 = vpop.f32.mrb[5].mxu0  ;;  %v1818_v53 = vadd.f32 %v1817_v14, %v1816_v11  ;;  %v1888_v15 = vmul.f32 %v5742_v28, %v5742_v28  ;;  %v1821_v5 = vsel %vm922_vm6, %v5742_v28, 0.0 }
 0x22b   : > { %v1819_v62 = vsel %vm922_vm6, %v5744_v16, 0.0  ;;  %v1887_v42 = vmul.f32 %v5744_v16, %v5744_v16 }
 0x22c   : > { %v1820_v45 = vadd.f32 %v1819_v62, %v1818_v53  ;;  %v1921_v63 = vadd.f32 %v1920_v55, %v1919_v37  ;;  %v1924_v12 = vsel %vm922_vm6, %v1888_v15, 0.0 }
 0x22d   : > { %v1922_v25 = vsel %vm922_vm6, %v1887_v42, 0.0  ;;  %v5756_v32 = vpop.f32.mrb[6].mxu0 }
 0x22e   : > { %v1923_v2 = vadd.f32 %v1922_v25, %v1921_v63  ;;  %v5758_v6 = vpop.f32.mrb[7].mxu0  ;;  %v1822_v10 = vadd.f32 %v1821_v5, %v1820_v45  ;;  %v1890_v20 = vmul.f32 %v5756_v32, %v5756_v32  ;;  %v1825_v33 = vsel %vm922_vm6, %v5756_v32, 0.0 }
 0x22f   : > { %v1823_v21 = vsel %vm922_vm6, %v5758_v6, 0.0  ;;  %v1889_v47 = vmul.f32 %v5758_v6, %v5758_v6 }
 0x230   : > { %v1824_v49 = vadd.f32 %v1823_v21, %v1822_v10  ;;  %v1925_v30 = vadd.f32 %v1924_v12, %v1923_v2  ;;  %v1928_v4 = vsel %vm922_vm6, %v1890_v20, 0.0 }
 0x231   : > { %v1926_v38 = vsel %vm922_vm6, %v1889_v47, 0.0  ;;  %v5770_v40 = vpop.f32.mrb[8].mxu0 }
 0x232   : > { %v1927_v29 = vadd.f32 %v1926_v38, %v1925_v30  ;;  %v5772_v31 = vpop.f32.mrb[9].mxu0  ;;  %v1826_v1 = vadd.f32 %v1825_v33, %v1824_v49  ;;  %v1892_v52 = vmul.f32 %v5770_v40, %v5770_v40  ;;  %v1829_v48 = vsel %vm922_vm6, %v5770_v40, 0.0 }
 0x233   : > { %v1827_v54 = vsel %vm922_vm6, %v5772_v31, 0.0  ;;  %v1891_v7 = vmul.f32 %v5772_v31, %v5772_v31 }
 0x234   : > { %v1828_v9 = vadd.f32 %v1827_v54, %v1826_v1  ;;  %v1929_v41 = vadd.f32 %v1928_v4, %v1927_v29  ;;  %v1932_v43 = vsel %vm922_vm6, %v1892_v52, 0.0 }
 0x235   : > { %v1930_v23 = vsel %vm922_vm6, %v1891_v7, 0.0  ;;  %v5784_v26 = vpop.f32.mrb[10].mxu0 }
 0x236   : > { %v1931_v17 = vadd.f32 %v1930_v23, %v1929_v41  ;;  %v5786_v19 = vpop.f32.mrb[11].mxu0  ;;  %v1830_v39 = vadd.f32 %v1829_v48, %v1828_v9  ;;  %v1894_v58 = vmul.f32 %v5784_v26, %v5784_v26  ;;  %v1833_v34 = vsel %vm922_vm6, %v5784_v26, 0.0 }
 0x237   : > { %v1831_v59 = vsel %vm922_vm6, %v5786_v19, 0.0  ;;  %v1893_v44 = vmul.f32 %v5786_v19, %v5786_v19 }
 0x238   : > { %v1832_v46 = vadd.f32 %v1831_v59, %v1830_v39  ;;  %v1933_v18 = vadd.f32 %v1932_v43, %v1931_v17  ;;  %v1936_v36 = vsel %vm922_vm6, %v1894_v58, 0.0 }
 0x239   : > { %v1934_v57 = vsel %vm922_vm6, %v1893_v44, 0.0  ;;  %v5798_v8 = vpop.f32.mrb[12].mxu0 }
 0x23a   : > { %v1935_v0 = vadd.f32 %v1934_v57, %v1933_v18  ;;  %v5800_v22 = vpop.f32.mrb[13].mxu0  ;;  %v1834_v24 = vadd.f32 %v1833_v34, %v1832_v46  ;;  %v1896_v51 = vmul.f32 %v5798_v8, %v5798_v8  ;;  %v1837_v27 = vsel %vm922_vm6, %v5798_v8, 0.0 }
 0x23b   : > { %v1835_v60 = vsel %vm922_vm6, %v5800_v22, 0.0  ;;  %v1895_v61 = vmul.f32 %v5800_v22, %v5800_v22 }
 0x23c   : > { %v1836_v11 = vadd.f32 %v1835_v60, %v1834_v24  ;;  %v1937_v14 = vadd.f32 %v1936_v36, %v1935_v0  ;;  %v1940_v42 = vsel %vm922_vm6, %v1896_v51, 0.0 }
 0x23d   : > { %v1938_v37 = vsel %vm922_vm6, %v1895_v61, 0.0  ;;  %v5812_v53 = vpop.f32.mrb[14].mxu0 }
 0x23e   : > { %v1939_v55 = vadd.f32 %v1938_v37, %v1937_v14  ;;  %v5814_v15 = vpop.f32.mrb[15].mxu0  ;;  %v1838_v62 = vadd.f32 %v1837_v27, %v1836_v11  ;;  %v1898_v45 = vmul.f32 %v5812_v53, %v5812_v53  ;;  %v1841_v10 = vsel %vm922_vm6, %v5812_v53, 0.0 }
 0x23f   : > { %v1839_v63 = vsel %vm922_vm6, %v5814_v15, 0.0  ;;  %v1897_v5 = vmul.f32 %v5814_v15, %v5814_v15 }
 0x240   : > { %v1840_v25 = vadd.f32 %v1839_v63, %v1838_v62  ;;  %v1941_v2 = vadd.f32 %v1940_v42, %v1939_v55  ;;  %v1944_v30 = vsel %vm922_vm6, %v1898_v45, 0.0 }
 0x241   : > { %v1942_v12 = vsel %vm922_vm6, %v1897_v5, 0.0  ;;  %v5826_v20 = vpop.f32.mrb[16].mxu0 }
 0x242   : > { %v1943_v21 = vadd.f32 %v1942_v12, %v1941_v2  ;;  %v5828_v47 = vpop.f32.mrb[17].mxu0  ;;  %v1842_v49 = vadd.f32 %v1841_v10, %v1840_v25  ;;  %v1900_v33 = vmul.f32 %v5826_v20, %v5826_v20  ;;  %v1845_v52 = vsel %vm922_vm6, %v5826_v20, 0.0 }
 0x243   : > { %v1843_v38 = vsel %vm922_vm6, %v5828_v47, 0.0  ;;  %v1899_v29 = vmul.f32 %v5828_v47, %v5828_v47 }
 0x244   : > { %v1844_v1 = vadd.f32 %v1843_v38, %v1842_v49  ;;  %v1945_v4 = vadd.f32 %v1944_v30, %v1943_v21  ;;  %v1948_v23 = vsel %vm922_vm6, %v1900_v33, 0.0 }
 0x245   : > { %v1946_v54 = vsel %vm922_vm6, %v1899_v29, 0.0  ;;  %v5840_v7 = vpop.f32.mrb[18].mxu0 }
 0x246   : > { %v1947_v9 = vadd.f32 %v1946_v54, %v1945_v4  ;;  %v5842_v41 = vpop.f32.mrb[19].mxu0  ;;  %v1846_v48 = vadd.f32 %v1845_v52, %v1844_v1  ;;  %v1902_v17 = vmul.f32 %v5840_v7, %v5840_v7  ;;  %v1849_v44 = vsel %vm922_vm6, %v5840_v7, 0.0 }
 0x247   : > { %v1847_v39 = vsel %vm922_vm6, %v5842_v41, 0.0  ;;  %v1901_v43 = vmul.f32 %v5842_v41, %v5842_v41 }
 0x248   : > { %v1848_v58 = vadd.f32 %v1847_v39, %v1846_v48  ;;  %v1949_v59 = vadd.f32 %v1948_v23, %v1947_v9  ;;  %v1952_v24 = vsel %vm922_vm6, %v1902_v17, 0.0 }
 0x249   : > { %v1950_v46 = vsel %vm922_vm6, %v1901_v43, 0.0  ;;  %v5854_v18 = vpop.f32.mrb[20].mxu0 }
 0x24a   : > { %v1951_v34 = vadd.f32 %v1950_v46, %v1949_v59  ;;  %v5856_v57 = vpop.f32.mrb[21].mxu0  ;;  %v1850_v0 = vadd.f32 %v1849_v44, %v1848_v58  ;;  %v1904_v36 = vmul.f32 %v5854_v18, %v5854_v18  ;;  %v1853_v14 = vsel %vm922_vm6, %v5854_v18, 0.0 }
 0x24b   : > { %v1851_v51 = vsel %vm922_vm6, %v5856_v57, 0.0  ;;  %v1903_v60 = vmul.f32 %v5856_v57, %v5856_v57 }
 0x24c   : > { %v1852_v61 = vadd.f32 %v1851_v51, %v1850_v0  ;;  %v1953_v11 = vadd.f32 %v1952_v24, %v1951_v34  ;;  %v1956_v45 = vsel %vm922_vm6, %v1904_v36, 0.0 }
 0x24d   : > { %v1954_v27 = vsel %vm922_vm6, %v1903_v60, 0.0  ;;  %v5868_v37 = vpop.f32.mrb[22].mxu0 }
 0x24e   : > { %v1955_v55 = vadd.f32 %v1954_v27, %v1953_v11  ;;  %v5870_v62 = vpop.f32.mrb[23].mxu0  ;;  %v1854_v42 = vadd.f32 %v1853_v14, %v1852_v61  ;;  %v1906_v63 = vmul.f32 %v5868_v37, %v5868_v37  ;;  %v1857_v12 = vsel %vm922_vm6, %v5868_v37, 0.0 }
 0x24f   : > { %v1855_v5 = vsel %vm922_vm6, %v5870_v62, 0.0  ;;  %v1905_v25 = vmul.f32 %v5870_v62, %v5870_v62 }
 0x250   : > { %v1856_v2 = vadd.f32 %v1855_v5, %v1854_v42  ;;  %v1957_v10 = vadd.f32 %v1956_v45, %v1955_v55  ;;  %v1960_v29 = vsel %vm922_vm6, %v1906_v63, 0.0 }
 0x251   : > { %v1958_v21 = vsel %vm922_vm6, %v1905_v25, 0.0  ;;  %v5882_v49 = vpop.f32.mrb[24].mxu0 }
 0x252   : > { %v1959_v30 = vadd.f32 %v1958_v21, %v1957_v10  ;;  %v5884_v33 = vpop.f32.mrb[25].mxu0  ;;  %v1858_v38 = vadd.f32 %v1857_v12, %v1856_v2  ;;  %v1908_v1 = vmul.f32 %v5882_v49, %v5882_v49  ;;  %v1861_v48 = vsel %vm922_vm6, %v5882_v49, 0.0 }
 0x253   : > { %v1859_v4 = vsel %vm922_vm6, %v5884_v33, 0.0  ;;  %v1907_v52 = vmul.f32 %v5884_v33, %v5884_v33 }
 0x254   : > { %v1860_v54 = vadd.f32 %v1859_v4, %v1858_v38  ;;  %v1961_v9 = vadd.f32 %v1960_v29, %v1959_v30  ;;  %v1964_v59 = vsel %vm922_vm6, %v1908_v1, 0.0 }
 0x255   : > { %v1962_v23 = vsel %vm922_vm6, %v1907_v52, 0.0  ;;  %v5896_v17 = vpop.f32.mrb[26].mxu0 }
 0x256   : > { %v1963_v39 = vadd.f32 %v1962_v23, %v1961_v9  ;;  %v5898_v43 = vpop.f32.mrb[27].mxu0  ;;  %v1862_v58 = vadd.f32 %v1861_v48, %v1860_v54  ;;  %v1910_v44 = vmul.f32 %v5896_v17, %v5896_v17  ;;  %v1865_v36 = vsel %vm922_vm6, %v5896_v17, 0.0 }
 0x257   : > { %v1863_v46 = vsel %vm922_vm6, %v5898_v43, 0.0  ;;  %v1909_v34 = vmul.f32 %v5898_v43, %v5898_v43 }
 0x258   : > { %v1864_v0 = vadd.f32 %v1863_v46, %v1862_v58  ;;  %v1965_v24 = vadd.f32 %v1964_v59, %v1963_v39  ;;  %v1968_v27 = vsel %vm922_vm6, %v1910_v44, 0.0 }
 0x259   : > { %v1966_v51 = vsel %vm922_vm6, %v1909_v34, 0.0  ;;  %v5910_v60 = vpop.f32.mrb[28].mxu0 }
 0x25a   : > { %v1967_v61 = vadd.f32 %v1966_v51, %v1965_v24  ;;  %v5912_v11 = vpop.f32.mrb[29].mxu0  ;;  %v1866_v14 = vadd.f32 %v1865_v36, %v1864_v0  ;;  %v1912_v55 = vmul.f32 %v5910_v60, %v5910_v60  ;;  %v1869_v25 = vsel %vm922_vm6, %v5910_v60, 0.0 }
 0x25b   : > { %v1867_v42 = vsel %vm922_vm6, %v5912_v11, 0.0  ;;  %v1911_v45 = vmul.f32 %v5912_v11, %v5912_v11 }
 0x25c   : > { %v1868_v63 = vadd.f32 %v1867_v42, %v1866_v14  ;;  %v1969_v5 = vadd.f32 %v1968_v27, %v1967_v61  ;;  %v1972_v38 = vsel %vm922_vm6, %v1912_v55, 0.0 }
 0x25d   : > { %v1970_v2 = vsel %vm922_vm6, %v1911_v45, 0.0  ;;  %v5924_v10 = vpop.f32.mrb[30].mxu0 }
 0x25e   : > { %v1971_v12 = vadd.f32 %v1970_v2, %v1969_v5  ;;  %v1769_v21 = vpop.f32.mrb[31].mxu0  ;;  %v1870_v30 = vadd.f32 %v1869_v25, %v1868_v63  ;;  %v1914_v29 = vmul.f32 %v5924_v10, %v5924_v10  ;;  %v1873_v9 = vsel %vm922_vm6, %v5924_v10, 0.0 }
 0x25f   : > { %v1871_v1 = vsel %vm922_vm6, %v1769_v21, 0.0  ;;  %v1913_v4 = vmul.f32 %v1769_v21, %v1769_v21 }
 0x260   : > { %v1872_v52 = vadd.f32 %v1871_v1, %v1870_v30  ;;  %v1973_v54 = vadd.f32 %v1972_v38, %v1971_v12  ;;  %v1976_v58 = vsel %vm922_vm6, %v1914_v29, 0.0  ;;  %v1994_v30 = vlaneseq  ;;  %v1810_v29 = vld [vmem:[%s7380_s2] sm:$0x1] }
 0x261   : > { %v1974_v48 = vsel %vm922_vm6, %v1913_v4, 0.0 }
 0x262   : > { %v1874_v23 = vadd.f32 %v1873_v9, %v1872_v52  ;;  %v1975_v39 = vadd.f32 %v1974_v48, %v1973_v54  ;;  %v1995_v38 = vshrl.u32 %v1994_v30, 7  ;;  %v1811_v54 = vld [vmem:[%s7381_s3] sm:$0x1] }
 0x264   : > { %v1875_v59 = vrot.slane %v1874_v23, 4  ;;  %v1977_v44 = vadd.f32 %v1976_v58, %v1975_v39  ;;  %v5937_v1 = vsub.s32 0, %v1995_v38 }
 0x266   : > { %v1876_v46 = vadd.f32 %v1875_v59, %v1874_v23  ;;  %v1978_v34 = vrot.slane %v1977_v44, 4  ;;  %7414 = vst [vmem:[#allocation2_spill] sm:$0xff] %v5937_v1 }
 0x268   : > { %v1877_v0 = vrot.slane %v1876_v46, 2  ;;  %v1979_v24 = vadd.f32 %v1978_v34, %v1977_v44 }
 0x26a   : > { %v1878_v36 = vadd.f32 %v1877_v0, %v1876_v46  ;;  %v1980_v51 = vrot.slane %v1979_v24, 2 }
 0x26c   : > { %v1879_v61 = vrot.slane %v1878_v36, 1  ;;  %v1981_v14 = vadd.f32 %v1980_v51, %v1979_v24 }
 0x26e   : > { %v1880_v27 = vadd.f32 %v1879_v61, %v1878_v36  ;;  %v1982_v55 = vrot.slane %v1981_v14, 1 }
 0x270   : > { %v1882_v42 = vmul.f32 0.00390625, %v1880_v27  ;;  %v1983_v45 = vadd.f32 %v1982_v55, %v1981_v14 }
 0x272   : > { %v1984_v63 = vmul.f32 0.00390625, %v1983_v45  ;;  %v1985_v5 = vmul.f32 %v1882_v42, %v1882_v42 }
 0x274   : > { %v1986_v25 = vsub.f32 %v1984_v63, %v1985_v5 }
 0x276   : > { %v1987_v2 = vmax.f32 %v1986_v25, 0.0 }
 0x278   : > { %v1988_v12 = vadd.f32 1e-05, %v1987_v2 }
 0x27a   : > { %4880 = vrsqrt.f32 %v1988_v12 }
 0x284   : > { %v4881_v4 = vpop.eup %4880 }
 0x285   : > { %v1990_v52 = vmul.f32 %v4881_v4, %v1810_v29 }
 0x287   : > { %v1991_v9 = vmul.f32 %v1990_v52, %v1882_v42  ;;  %v1997_v48 = vrot.slane %v1990_v52, %v5937_v1 }
 0x289   : > { %v1992_v23 = vsub.f32 %v1811_v54, %v1991_v9  ;;  %v2029_v39 = vmul.f32 %v1997_v48, %v1769_v21  ;;  %v1999_v58 = vmul.f32 %v1997_v48, %v5721_v56  ;;  %v2000_v59 = vmul.f32 %v5715_v13, %v1997_v48 }
 0x28a   : > { %v2001_v44 = vmul.f32 %v1997_v48, %v5731_v50  ;;  %v2002_v46 = vmul.f32 %v5729_v35, %v1997_v48  ;;  %v2003_v34 = vmul.f32 %v1997_v48, %v5744_v16  ;;  %v2004_v0 = vmul.f32 %v5742_v28, %v1997_v48 }
 0x28b   : > { %v5950_v24 = vrot.slane %v1992_v23, %v5937_v1  ;;  %v2005_v36 = vmul.f32 %v1997_v48, %v5758_v6  ;;  %v2006_v51 = vmul.f32 %v5756_v32, %v1997_v48  ;;  %v2007_v21 = vmul.f32 %v1997_v48, %v5772_v31 }
 0x28c   : > { %v2008_v56 = vmul.f32 %v5770_v40, %v1997_v48  ;;  %v2009_v13 = vmul.f32 %v1997_v48, %v5786_v19  ;;  %v2010_v50 = vmul.f32 %v5784_v26, %v1997_v48  ;;  %v2011_v35 = vmul.f32 %v1997_v48, %v5800_v22 }
 0x28d   : > { %v5960_v16 = vadd.f32 %v5950_v24, %v2029_v39  ;;  %v2012_v28 = vmul.f32 %v5798_v8, %v1997_v48  ;;  %v2013_v61 = vmul.f32 %v1997_v48, %v5814_v15  ;;  %v2014_v6 = vmul.f32 %v5812_v53, %v1997_v48 }
 0x28e   : > { %v2015_v32 = vmul.f32 %v1997_v48, %v5828_v47  ;;  %v2016_v31 = vmul.f32 %v5826_v20, %v1997_v48  ;;  %v2017_v40 = vmul.f32 %v1997_v48, %v5842_v41  ;;  %v2018_v19 = vmul.f32 %v5840_v7, %v1997_v48 }
 0x28f   : > { %v2019_v26 = vmul.f32 %v1997_v48, %v5856_v57  ;;  %v2020_v22 = vmul.f32 %v5854_v18, %v1997_v48  ;;  %v2021_v14 = vmul.f32 %v1997_v48, %v5870_v62  ;;  %v2022_v8 = vmul.f32 %v5868_v37, %v1997_v48 }
 0x290   : > { %v2023_v15 = vmul.f32 %v1997_v48, %v5884_v33  ;;  %v2024_v53 = vmul.f32 %v5882_v49, %v1997_v48  ;;  %v2025_v47 = vmul.f32 %v1997_v48, %v5898_v43  ;;  %v2026_v20 = vmul.f32 %v5896_v17, %v1997_v48 }
 0x291   : > { %v2027_v41 = vmul.f32 %v1997_v48, %v5912_v11  ;;  %v2028_v7 = vmul.f32 %v5910_v60, %v1997_v48  ;;  %v2030_v57 = vmul.f32 %v5924_v10, %v1997_v48  ;;  %v2037_v18 = vadd.f32 %v5950_v24, %v1999_v58 }
 0x292   : > { %v2038_v62 = vadd.f32 %v5950_v24, %v2000_v59  ;;  %v2039_v37 = vadd.f32 %v5950_v24, %v2001_v44  ;;  %v2040_v33 = vadd.f32 %v5950_v24, %v2002_v46  ;;  %v5985_v49 = vadd.f32 %v5950_v24, %v2003_v34 }
 0x293   : > { %v2042_v43 = vadd.f32 %v5950_v24, %v2004_v0  ;;  %v2069_v17 = vmax.f32 %v2037_v18, 0.0  ;;  %v5989_v11 = vadd.f32 %v5950_v24, %v2005_v36  ;;  %v5992_v60 = vadd.f32 %v5950_v24, %v2006_v51 }
 0x294   : > { %v2070_v27 = vmax.f32 %v2038_v62, 0.0  ;;  %v5995_v10 = vadd.f32 %v5950_v24, %v2007_v21  ;;  %v5998_v55 = vadd.f32 %v5950_v24, %v2008_v56  ;;  %v6001_v42 = vadd.f32 %v5950_v24, %v2009_v13 }
 0x295   : > { %v6004_v45 = vadd.f32 %v5950_v24, %v2010_v50  ;;  %v2165_v63 = vrot.slane %v2069_v17, 7  ;;  %v6007_v2 = vadd.f32 %v5950_v24, %v2011_v35  ;;  %v6010_v12 = vadd.f32 %v5950_v24, %v2012_v28 }
 0x296   : > { %v2166_v5 = vrot.slane %v2070_v27, 7  ;;  %v2261_v25 = vrot.slane %v2070_v27, 5  ;;  %v6013_v30 = vadd.f32 %v5950_v24, %v2013_v61  ;;  %v6016_v38 = vadd.f32 %v5950_v24, %v2014_v6 }
 0x297   : > { %v6019_v29 = vadd.f32 %v5950_v24, %v2015_v32  ;;  %v6026_v54 = vadd.f32 %v5950_v24, %v2016_v31  ;;  %v6029_v9 = vadd.f32 %v5950_v24, %v2017_v40  ;;  %v6033_v39 = vadd.f32 %v5950_v24, %v2018_v19 }
 0x298   : > { %v6022_v4 = vsel %vm375_vm3, %v2165_v63, %v2166_v5  ;;  %v2309_v52 = vsel %vm375_vm3, %v2166_v5, %v2261_v25  ;;  %v6036_v58 = vadd.f32 %v5950_v24, %v2019_v26  ;;  %v6039_v59 = vadd.f32 %v5950_v24, %v2020_v22 }
 0x299   : > { %v2358_v48 = vrot.slane %v6022_v4, 1  ;;  %v2360_v23 = vrot.slane %v2309_v52, 1  ;;  %v6042_v44 = vadd.f32 %v5950_v24, %v2021_v14  ;;  %v6045_v46 = vadd.f32 %v5950_v24, %v2022_v8 }
 0x29a   : > { %v6048_v34 = vadd.f32 %v5950_v24, %v2023_v15  ;;  %v6052_v36 = vadd.f32 %v5950_v24, %v2024_v53  ;;  %v6055_v51 = vadd.f32 %v5950_v24, %v2025_v47  ;;  %v6058_v21 = vadd.f32 %v5950_v24, %v2026_v20 }
 0x29b   : > { %v2361_v0 = vsel %vm568_vm5, %v2358_v48, %v2360_v23  ;;  %v6062_v56 = vadd.f32 %v5950_v24, %v2027_v41  ;;  %v6065_v13 = vadd.f32 %v5950_v24, %v2028_v7  ;;  %v6068_v50 = vadd.f32 %v5950_v24, %v2030_v57 }
 0x29c   : > { %2439 = vrot.lane.b32.xlu1 %v2361_v0, %s4926_s12  ;;  %v2117_v35 = vrot.slane %v2069_v17, 1  ;;  %v2534_v32 = vrot.slane %v6022_v4, 2  ;;  %v2536_v31 = vrot.slane %v2309_v52, 2  ;;  %v2071_v19 = vmax.f32 %v2039_v37, 0.0 }
 0x29d   : > { %v2072_v24 = vmax.f32 %v2040_v33, 0.0  ;;  %v2073_v26 = vmax.f32 %v5985_v49, 0.0  ;;  %v2074_v22 = vmax.f32 %v2042_v43, 0.0  ;;  %v2075_v47 = vmax.f32 %v5989_v11, 0.0 }
 0x29e   : > { %v6071_v28 = vsel %vm375_vm3, %v2117_v35, %v2165_v63  ;;  %v2537_v40 = vsel %vm745_vm4, %v2534_v32, %v2536_v31  ;;  %v2168_v14 = vrot.slane %v2071_v19, 7  ;;  %v2118_v53 = vrot.slane %v2071_v19, 1 }
 0x29f   : > { %v2357_v61 = vrot.slane %v6071_v28, 1  ;;  %v2169_v8 = vrot.slane %v2072_v24, 7  ;;  %v2262_v15 = vrot.slane %v2072_v24, 5  ;;  %v2076_v20 = vmax.f32 %v5992_v60, 0.0 }
 0x2a0   : > { %2615 = vrot.lane.b32.xlu1 %v2537_v40, %s4925_s11  ;;  %v2077_v41 = vmax.f32 %v5995_v10, 0.0  ;;  %v2078_v7 = vmax.f32 %v5998_v55, 0.0  ;;  %v2171_v57 = vrot.slane %v2073_v26, 7  ;;  %v2172_v18 = vrot.slane %v2074_v22, 7 }
 0x2a1   : > { %v2359_v6 = vsel %vm568_vm5, %v2357_v61, %v2358_v48  ;;  %v2263_v62 = vrot.slane %v2074_v22, 5  ;;  %v2533_v37 = vrot.slane %v6071_v28, 2  ;;  %v6086_v33 = vsel %vm375_vm3, %v2168_v14, %v2169_v8 }
 0x2a2   : > { %2437 = vrot.lane.b32.xlu0 %v2359_v6, %s4926_s12  ;;  %7415 = vst [vmem:[#allocation3_spill] sm:$0xff] %v6086_v33  ;;  %v2310_v49 = vsel %vm375_vm3, %v2169_v8, %v2262_v15  ;;  %v2119_v43 = vrot.slane %v2073_v26, 1  ;;  %v2363_v17 = vrot.slane %v6086_v33, 1  ;;  %v6091_v11 = vsel %vm375_vm3, %v2118_v53, %v2168_v14 }
 0x2a3   : > { %v2365_v27 = vrot.slane %v2310_v49, 1  ;;  %7416 = vst [vmem:[#allocation4_spill] sm:$0xff] %v6091_v11  ;;  %v2174_v60 = vrot.slane %v2075_v47, 7  ;;  %v2175_v63 = vrot.slane %v2076_v20, 7  ;;  %v2535_v5 = vsel %vm745_vm4, %v2533_v37, %v2534_v32 }
 0x2a4   : > { %v2362_v25 = vrot.slane %v6091_v11, 1  ;;  %v2539_v48 = vrot.slane %v6086_v33, 2  ;;  %v2541_v23 = vrot.slane %v2310_v49, 2  ;;  %v6099_v0 = vsel %vm375_vm3, %v2171_v57, %v2172_v18 }
 0x2a5   : > { %v2366_v52 = vsel %vm568_vm5, %v2363_v17, %v2365_v27  ;;  %7417 = vst [vmem:[#allocation5_spill] sm:$0xff] %v6099_v0  ;;  %v7388_v35 = vmax.f32 %v6001_v42, 0.0  ;;  %v2080_v61 = vmax.f32 %v6004_v45, 0.0  ;;  %v2311_v6 = vsel %vm375_vm3, %v2172_v18, %v2263_v62 }
 0x2a6   : > { %2613 = vrot.lane.b32.xlu0 %v2535_v5, %s4925_s11  ;;  %2443 = vrot.lane.b32.xlu1 %v2366_v52, %s4926_s12  ;;  %v7386_v32 = vmax.f32 %v6007_v2, 0.0  ;;  %v7387_v31 = vmax.f32 %v6010_v12, 0.0  ;;  %v6109_v40 = vrot.slane %v2077_v41, 7  ;;  %v2178_v19 = vrot.slane %v2078_v7, 7 }
 0x2a7   : > { %v2364_v24 = vsel %vm568_vm5, %v2362_v25, %v2363_v17  ;;  %v2538_v26 = vrot.slane %v6091_v11, 2  ;;  %v6116_v22 = vsel %vm375_vm3, %v2174_v60, %v2175_v63  ;;  %v2542_v14 = vsel %vm745_vm4, %v2539_v48, %v2541_v23 }
 0x2a8   : > { %7418 = vst [vmem:[#allocation6_spill] sm:$0xff] %v6116_v22  ;;  %v2368_v8 = vrot.slane %v6099_v0, 1  ;;  %v2370_v15 = vrot.slane %v2311_v6, 1  ;;  %v6122_v53 = vsel %vm375_vm3, %v2119_v43, %v2171_v57  ;;  %v6126_v18 = vrot.slane %v7388_v35, 7 }
 0x2a9   : > { %7419 = vst [vmem:[#allocation7_spill] sm:$0xff] %v6122_v53  ;;  %v2264_v62 = vrot.slane %v2076_v20, 5  ;;  %v6131_v37 = vrot.slane %v2080_v61, 7  ;;  %v6135_v49 = vrot.slane %v7386_v32, 7  ;;  %v6139_v17 = vrot.slane %v7387_v31, 7 }
 0x2aa   : > { %2441 = vrot.lane.b32.xlu0 %v2364_v24, %s4926_s12  ;;  %2619 = vrot.lane.b32.xlu1 %v2542_v14, %s4925_s11  ;;  %v6143_v57 = vsel %vm375_vm3, %v6109_v40, %v2178_v19  ;;  %v7389_v20 = vmax.f32 %v6013_v30, 0.0  ;;  %v7390_v43 = vmax.f32 %v6016_v38, 0.0  ;;  %v2540_v27 = vsel %vm745_vm4, %v2538_v26, %v2539_v48 }
 0x2ab   : > { %7420 = vst [vmem:[#allocation8_spill] sm:$0xff] %v6143_v57  ;;  %v2367_v5 = vrot.slane %v6122_v53, 1  ;;  %v2120_v25 = vrot.slane %v2075_v47, 1  ;;  %v2371_v52 = vsel %vm568_vm5, %v2368_v8, %v2370_v15  ;;  %v2544_v23 = vrot.slane %v6099_v0, 2 }
 0x2ac   : > { %v2546_v24 = vrot.slane %v2311_v6, 2  ;;  %v2312_v14 = vsel %vm375_vm3, %v2175_v63, %v2264_v62  ;;  %v7391_v32 = vmax.f32 %v6019_v29, 0.0  ;;  %v7394_v31 = vmax.f32 %v6026_v54, 0.0 }
 0x2ad   : > { %v6159_v48 = vsel %vm375_vm3, %v6126_v18, %v6131_v37  ;;  %v6164_v47 = vsel %vm375_vm3, %v6135_v49, %v6139_v17  ;;  %v6168_v6 = vrot.slane %v7389_v20, 7  ;;  %v6172_v63 = vrot.slane %v7390_v43, 7 }
 0x2ae   : > { %2617 = vrot.lane.b32.xlu0 %v2540_v27, %s4925_s11  ;;  %2447 = vrot.lane.b32.xlu1 %v2371_v52, %s4926_s12  ;;  %7421 = vst [vmem:[#allocation9_spill] sm:$0xff] %v6159_v48  ;;  %v2369_v26 = vsel %vm568_vm5, %v2367_v5, %v2368_v8  ;;  %v2543_v15 = vrot.slane %v6122_v53, 2  ;;  %v2547_v62 = vsel %vm745_vm4, %v2544_v23, %v2546_v24  ;;  %v2373_v27 = vrot.slane %v6116_v22, 1 }
 0x2af   : > { %v2375_v52 = vrot.slane %v2312_v14, 1  ;;  %v6180_v35 = vsel %vm375_vm3, %v2120_v25, %v2174_v60  ;;  %v2265_v20 = vrot.slane %v2078_v7, 5  ;;  %v7392_v43 = vmax.f32 %v6029_v9, 0.0 }
 0x2b0   : > { %7422 = vst [vmem:[#allocation10_spill] sm:$0xff] %v6180_v35  ;;  %v7393_v8 = vmax.f32 %v6033_v39, 0.0  ;;  %v2121_v5 = vrot.slane %v2077_v41, 1  ;;  %v6191_v24 = vrot.slane %v7391_v32, 7  ;;  %v6195_v60 = vrot.slane %v7394_v31, 7 }
 0x2b1   : > { %v2545_v55 = vsel %vm745_vm4, %v2543_v15, %v2544_v23  ;;  %v2372_v7 = vrot.slane %v6180_v35, 1  ;;  %v2376_v25 = vsel %vm568_vm5, %v2373_v27, %v2375_v52  ;;  %v2551_v10 = vrot.slane %v2312_v14, 2 }
 0x2b2   : > { %2445 = vrot.lane.b32.xlu0 %v2369_v26, %s4926_s12  ;;  %2623 = vrot.lane.b32.xlu1 %v2547_v62, %s4925_s11  ;;  %v2549_v26 = vrot.slane %v6116_v22, 2  ;;  %v6205_v41 = vsel %vm375_vm3, %v6168_v6, %v6172_v63  ;;  %v2313_v62 = vsel %vm375_vm3, %v2178_v19, %v2265_v20  ;;  %v7395_v23 = vmax.f32 %v6036_v58, 0.0 }
 0x2b3   : > { %v7396_v15 = vmax.f32 %v6039_v59, 0.0  ;;  %v6217_v14 = vrot.slane %v7393_v8, 7  ;;  %v2374_v52 = vsel %vm568_vm5, %v2372_v7, %v2373_v27  ;;  %v2548_v32 = vrot.slane %v6180_v35, 2 }
 0x2b4   : > { %v6224_v19 = vsel %vm375_vm3, %v6191_v24, %v6195_v60  ;;  %v2552_v20 = vsel %vm745_vm4, %v2549_v26, %v2551_v10  ;;  %v6231_v8 = vsel %vm375_vm3, %v2121_v5, %v6109_v40  ;;  %v2266_v31 = vrot.slane %v2080_v61, 5 }
 0x2b5   : > { %7423 = vst [vmem:[#allocation11_spill] sm:$0xff] %v6231_v8  ;;  %v6244_v10 = vrot.slane %v7396_v15, 7  ;;  %v7402_v45 = vmax.f32 %v6052_v36, 0.0  ;;  %v2550_v61 = vsel %vm745_vm4, %v2548_v32, %v2549_v26  ;;  %v2554_v27 = vrot.slane %v6143_v57, 2 }
 0x2b6   : > { %2621 = vrot.lane.b32.xlu0 %v2545_v55, %s4925_s11  ;;  %2451 = vrot.lane.b32.xlu1 %v2376_v25, %s4926_s12  ;;  %v6213_v55 = vrot.slane %v7392_v43, 7  ;;  %v2378_v25 = vrot.slane %v6143_v57, 1  ;;  %v2380_v43 = vrot.slane %v2313_v62, 1  ;;  %v2556_v1 = vrot.slane %v2313_v62, 2 }
 0x2b7   : > { %v7425_v5 = vmax.f32 %v6042_v44, 0.0  ;;  %v7426_v32 = vmax.f32 %v6045_v46, 0.0 }
 0x2b8   : > { %v6249_v40 = vsel %vm375_vm3, %v6213_v55, %v6217_v14  ;;  %v2381_v15 = vsel %vm568_vm5, %v2378_v25, %v2380_v43  ;;  %v2557_v62 = vsel %vm745_vm4, %v2554_v27, %v2556_v1 }
 0x2b9   : > { %v6263_v22 = vrot.slane %v7425_v5, 7  ;;  %v6267_v26 = vrot.slane %v7426_v32, 7 }
 0x2ba   : > { %2449 = vrot.lane.b32.xlu0 %v2374_v52, %s4926_s12  ;;  %2627 = vrot.lane.b32.xlu1 %v2552_v20, %s4925_s11  ;;  %v6240_v52 = vrot.slane %v7395_v23, 7  ;;  %v2377_v20 = vrot.slane %v6231_v8, 1  ;;  %v7424_v23 = vmax.f32 %v6001_v42, 0.0  ;;  %v2314_v42 = vsel %vm375_vm3, %v6131_v37, %v2266_v31 }
 0x2bb   : > { %v2553_v37 = vrot.slane %v6231_v8, 2  ;;  %v2385_v43 = vrot.slane %v2314_v42, 1 }
 0x2bc   : > { %v2122_v7 = vrot.slane %v7424_v23, 1  ;;  %v6278_v5 = vsel %vm375_vm3, %v6240_v52, %v6244_v10  ;;  %v2379_v31 = vsel %vm568_vm5, %v2377_v20, %v2378_v25  ;;  %v2383_v23 = vrot.slane %v6159_v48, 1 }
 0x2bd   : > { %v6303_v25 = vsel %vm375_vm3, %v6263_v22, %v6267_v26  ;;  %v7430_v20 = vmax.f32 %v6007_v2, 0.0  ;;  %v2555_v53 = vsel %vm745_vm4, %v2553_v37, %v2554_v27  ;;  %v7408_v27 = vmax.f32 %v5960_v16, 0.0 }
 0x2be   : > { %2625 = vrot.lane.b32.xlu0 %v2550_v61, %s4925_s11  ;;  %2455 = vrot.lane.b32.xlu1 %v2381_v15, %s4926_s12  ;;  %v7427_v61 = vmax.f32 %v6048_v34, 0.0  ;;  %v6286_v15 = vrot.slane %v7402_v45, 7  ;;  %v6295_v35 = vsel %vm375_vm3, %v2122_v7, %v6126_v18  ;;  %v7432_v18 = vmax.f32 %v6058_v21, 0.0 }
 0x2bf   : > { %7428 = vst [vmem:[#allocation12_spill] sm:$0xff] %v6295_v35  ;;  %v2123_v1 = vrot.slane %v7430_v20, 1  ;;  %v2382_v2 = vrot.slane %v6295_v35, 1  ;;  %v2386_v20 = vsel %vm568_vm5, %v2383_v23, %v2385_v43  ;;  %v7409_v37 = vmax.f32 %v6068_v50, 0.0 }
 0x2c0   : > { %v6282_v32 = vrot.slane %v7427_v61, 7  ;;  %v7429_v61 = vmax.f32 %v6010_v12, 0.0  ;;  %v6313_v7 = vrot.slane %v7432_v18, 7  ;;  %v7433_v12 = vmax.f32 %v6062_v56, 0.0 }
 0x2c1   : > { %v2561_v18 = vrot.slane %v2314_v42, 2  ;;  %v2558_v43 = vrot.slane %v6295_v35, 2  ;;  %v2388_v42 = vrot.slane %v6164_v47, 1  ;;  %v4082_v35 = vld [vmem:[%s7382_s4 + $0x10] sm:$0xff] }
 0x2c2   : > { %2453 = vrot.lane.b32.xlu0 %v2379_v31, %s4926_s12  ;;  %v2267_v57 = vrot.slane %v7429_v61, 5  ;;  %2631 = vrot.lane.b32.xlu1 %v2557_v62, %s4925_s11  ;;  %v7431_v31 = vmax.f32 %v6055_v51, 0.0  ;;  %v6317_v61 = vrot.slane %v7433_v12, 7  ;;  %v7434_v62 = vmax.f32 %v6065_v13, 0.0 }
 0x2c3   : > { %v6331_v12 = vsel %vm375_vm3, %v6282_v32, %v6286_v15 }
 0x2c4   : > { %v6309_v45 = vrot.slane %v7431_v31, 7  ;;  %v6321_v8 = vrot.slane %v7434_v62, 7  ;;  %v2559_v31 = vrot.slane %v6159_v48, 2  ;;  %v2315_v62 = vsel %vm375_vm3, %v6139_v17, %v2267_v57 }
 0x2c5   : > { %v6343_v48 = vsel %vm375_vm3, %v2123_v1, %v6135_v49  ;;  %v2390_v0 = vrot.slane %v2315_v62, 1  ;;  %v6362_v49 = vrot.slane %v7408_v27, 7  ;;  %v6366_v1 = vrot.slane %v7409_v37, 7 }
 0x2c6   : > { %2629 = vrot.lane.b32.xlu0 %v2555_v53, %s4925_s11  ;;  %2459 = vrot.lane.b32.xlu1 %v2386_v20, %s4926_s12  ;;  %v2384_v53 = vsel %vm568_vm5, %v2382_v2, %v2383_v23  ;;  %v2562_v20 = vsel %vm745_vm4, %v2559_v31, %v2561_v18  ;;  %v6350_v17 = vsel %vm375_vm3, %v6309_v45, %v6313_v7  ;;  %v7435_v23 = vmax.f32 %v6016_v38, 0.0  ;;  %v4083_v38 = vld [vmem:[%s7382_s4 + $0x18] sm:$0xf] }
 0x2c7   : > { %v6355_v57 = vsel %vm375_vm3, %v6317_v61, %v6321_v8  ;;  %v2560_v18 = vsel %vm745_vm4, %v2558_v43, %v2559_v31  ;;  %v2391_v27 = vsel %vm568_vm5, %v2388_v42, %v2390_v0  ;;  %v2564_v37 = vrot.slane %v6164_v47, 2 }
 0x2c8   : > { %v2268_v2 = vrot.slane %v7435_v23, 5  ;;  %v2566_v31 = vrot.slane %v2315_v62, 2  ;;  %v4723_v11 = vpack.c.bf16 %v4083_v38, %v4082_v35  ;;  %v6387_v33 = vsel %vm375_vm3, %v6362_v49, %v6366_v1 }
 0x2c9   : > { %v2393_v62 = vrot.slane %v6205_v41, 1  ;;  %v7437_v35 = vmax.f32 %v6026_v54, 0.0  ;;  %v2774_v54 = vld [vmem:[%s7382_s4 + $0x8] sm:$0xf] }
 0x2ca   : > { %2457 = vrot.lane.b32.xlu0 %v2384_v53, %s4926_s12  ;;  %2635 = vrot.lane.b32.xlu1 %v2562_v20, %s4925_s11  ;;  %v2387_v53 = vrot.slane %v6343_v48, 1  ;;  %v7436_v20 = vmax.f32 %v6013_v30, 0.0  ;;  %v2316_v43 = vsel %vm375_vm3, %v6172_v63, %v2268_v2  ;;  %v2567_v0 = vsel %vm745_vm4, %v2564_v37, %v2566_v31 }
 0x2cb   : > { %4725 = vmatprep.subr.msk.bf16.mxu1 %vm4983_vm2, %v4723_v11  ;;  %v2269_v2 = vrot.slane %v7437_v35, 5 }
 0x2cc   : > { %v2124_v23 = vrot.slane %v7436_v20, 1  ;;  %v2389_v30 = vsel %vm568_vm5, %v2387_v53, %v2388_v42  ;;  %4728 = vmatpush3.bf16.msk.msra.mxu1 %vm4983_vm2, %v4723_v11  ;;  %v7438_v42 = vmax.f32 %v6019_v29, 0.0  ;;  %v2569_v11 = vrot.slane %v6205_v41, 2 }
 0x2cd   : > { %v2571_v29 = vrot.slane %v2316_v43, 2 }
 0x2ce   : > { %2633 = vrot.lane.b32.xlu0 %v2560_v18, %s4925_s11  ;;  %2463 = vrot.lane.b32.xlu1 %v2391_v27, %s4926_s12  ;;  %v2563_v18 = vrot.slane %v6343_v48, 2  ;;  %v2395_v27 = vrot.slane %v2316_v43, 1  ;;  %v6396_v63 = vsel %vm375_vm3, %v2124_v23, %v6168_v6  ;;  %v2125_v53 = vrot.slane %v7438_v42, 1  ;;  %v2773_v6 = vld [vmem:[%s7382_s4] sm:$0xff] }
 0x2cf   : > { %v2392_v20 = vrot.slane %v6396_v63, 1  ;;  %v6418_v31 = vpack.c.bf16 %v2774_v54, %v2773_v6  ;;  %v2398_v43 = vrot.slane %v6224_v19, 1  ;;  %v2574_v54 = vrot.slane %v6224_v19, 2 }
 0x2d0   : > { %v2565_v38 = vsel %vm745_vm4, %v2563_v18, %v2564_v37  ;;  %v2396_v23 = vsel %vm568_vm5, %v2393_v62, %v2395_v27  ;;  %v2317_v37 = vsel %vm375_vm3, %v6195_v60, %v2269_v2  ;;  %v2568_v18 = vrot.slane %v6396_v63, 2 }
 0x2d1   : > { %4731 = vmatprep.subr.msk.bf16.mxu1 %vm4983_vm2, %v6418_v31  ;;  %v2400_v27 = vrot.slane %v2317_v37, 1  ;;  %v6433_v35 = vsel %vm375_vm3, %v2125_v53, %v6191_v24  ;;  %v7439_v60 = vmax.f32 %v6033_v39, 0.0  ;;  %v2576_v24 = vrot.slane %v2317_v37, 2 }
 0x2d2   : > { %2461 = vrot.lane.b32.xlu0 %v2389_v30, %s4926_s12  ;;  %2639 = vrot.lane.b32.xlu1 %v2567_v0, %s4925_s11  ;;  %v2394_v30 = vsel %vm568_vm5, %v2392_v20, %v2393_v62  ;;  %v2572_v0 = vsel %vm745_vm4, %v2569_v11, %v2571_v29  ;;  %v2570_v62 = vsel %vm745_vm4, %v2568_v18, %v2569_v11  ;;  %v2397_v42 = vrot.slane %v6433_v35, 1 }
 0x2d3   : > { %v2270_v2 = vrot.slane %v7439_v60, 5  ;;  %v2401_v6 = vsel %vm568_vm5, %v2398_v43, %v2400_v27  ;;  %v2403_v11 = vrot.slane %v6249_v40, 1  ;;  %v7441_v37 = vmax.f32 %v6039_v59, 0.0 }
 0x2d4   : > { %v2399_v53 = vsel %vm568_vm5, %v2397_v42, %v2398_v43  ;;  %v7442_v43 = vmax.f32 %v6036_v58, 0.0 }
 0x2d5   : > { %v2318_v39 = vsel %vm375_vm3, %v6217_v14, %v2270_v2  ;;  %v2271_v18 = vrot.slane %v7441_v37, 5  ;;  %v2579_v2 = vrot.slane %v6249_v40, 2 }
 0x2d6   : > { %2637 = vrot.lane.b32.xlu0 %v2565_v38, %s4925_s11  ;;  %2467 = vrot.lane.b32.xlu1 %v2396_v23, %s4926_s12  ;;  %v7440_v38 = vmax.f32 %v6029_v9, 0.0  ;;  %v2573_v23 = vrot.slane %v6433_v35, 2  ;;  %v2577_v9 = vsel %vm745_vm4, %v2574_v54, %v2576_v24  ;;  %v2405_v29 = vrot.slane %v2318_v39, 1 }
 0x2d7   : > { %v2127_v27 = vrot.slane %v7442_v43, 1  ;;  %v2319_v59 = vsel %vm375_vm3, %v6244_v10, %v2271_v18  ;;  %v2413_v18 = vrot.slane %v6303_v25, 1  ;;  %v7445_v43 = vmax.f32 %v6052_v36, 0.0 }
 0x2d8   : > { %v2126_v20 = vrot.slane %v7440_v38, 1  ;;  %v2575_v14 = vsel %vm745_vm4, %v2573_v23, %v2574_v54  ;;  %v2406_v60 = vsel %vm568_vm5, %v2403_v11, %v2405_v29  ;;  %v2408_v38 = vrot.slane %v6278_v5, 1 }
 0x2d9   : > { %v7443_v54 = vmax.f32 %v6045_v46, 0.0 }
 0x2da   : > { %2465 = vrot.lane.b32.xlu0 %v2394_v30, %s4926_s12  ;;  %2643 = vrot.lane.b32.xlu1 %v2572_v0, %s4925_s11  ;;  %v6455_v30 = vsel %vm375_vm3, %v2126_v20, %v6213_v55  ;;  %v2581_v55 = vrot.slane %v2318_v39, 2  ;;  %v2410_v20 = vrot.slane %v2319_v59, 1 }
 0x2db   : > { %v2402_v0 = vrot.slane %v6455_v30, 1  ;;  %v2578_v42 = vrot.slane %v6455_v30, 2  ;;  %v2272_v24 = vrot.slane %v7443_v54, 5 }
 0x2dc   : > { %v2582_v58 = vsel %vm745_vm4, %v2579_v2, %v2581_v55 }
 0x2dd   : > { %v2580_v10 = vsel %vm745_vm4, %v2578_v42, %v2579_v2  ;;  %v2320_v46 = vsel %vm375_vm3, %v6267_v26, %v2272_v24  ;;  %v7446_v2 = vmax.f32 %v6048_v34, 0.0  ;;  %v7447_v24 = vmax.f32 %v6058_v21, 0.0 }
 0x2de   : > { %2641 = vrot.lane.b32.xlu0 %v2570_v62, %s4925_s11  ;;  %2471 = vrot.lane.b32.xlu1 %v2401_v6, %s4926_s12  ;;  %v2404_v62 = vsel %vm568_vm5, %v2402_v0, %v2403_v11  ;;  %v6477_v6 = vsel %vm375_vm3, %v2127_v27, %v6240_v52  ;;  %v2584_v11 = vrot.slane %v6278_v5, 2  ;;  %v2586_v52 = vrot.slane %v2319_v59, 2 }
 0x2df   : > { %v2407_v39 = vrot.slane %v6477_v6, 1  ;;  %v2583_v37 = vrot.slane %v6477_v6, 2  ;;  %v2273_v27 = vrot.slane %v7445_v43, 5  ;;  %v2129_v55 = vrot.slane %v7446_v2, 1 }
 0x2e0   : > { %v2599_v2 = vrot.slane %v6350_v17, 2 }
 0x2e1   : > { %v2409_v29 = vsel %vm568_vm5, %v2407_v39, %v2408_v38  ;;  %v2585_v26 = vsel %vm745_vm4, %v2583_v37, %v2584_v11  ;;  %v2321_v36 = vsel %vm375_vm3, %v6286_v15, %v2273_v27  ;;  %v6521_v54 = vsel %vm375_vm3, %v2129_v55, %v6282_v32 }
 0x2e2   : > { %2469 = vrot.lane.b32.xlu0 %v2399_v53, %s4926_s12  ;;  %2647 = vrot.lane.b32.xlu1 %v2577_v9, %s4925_s11  ;;  %v7444_v53 = vmax.f32 %v6042_v44, 0.0  ;;  %v2411_v9 = vsel %vm568_vm5, %v2408_v38, %v2410_v20  ;;  %v2587_v44 = vsel %vm745_vm4, %v2584_v11, %v2586_v52  ;;  %v2418_v38 = vrot.slane %v6331_v12, 1 }
 0x2e3   : > { %v2420_v20 = vrot.slane %v2321_v36, 1  ;;  %v2417_v39 = vrot.slane %v6521_v54, 1  ;;  %v2594_v11 = vrot.slane %v6331_v12, 2  ;;  %v2596_v32 = vrot.slane %v2321_v36, 2 }
 0x2e4   : > { %v2128_v23 = vrot.slane %v7444_v53, 1  ;;  %v7448_v53 = vmax.f32 %v6055_v51, 0.0  ;;  %v7450_v27 = vmax.f32 %v6062_v56, 0.0 }
 0x2e5   : > { %v2419_v52 = vsel %vm568_vm5, %v2417_v39, %v2418_v38  ;;  %v2597_v51 = vsel %vm745_vm4, %v2594_v11, %v2596_v32 }
 0x2e6   : > { %2645 = vrot.lane.b32.xlu0 %v2575_v14, %s4925_s11  ;;  %2475 = vrot.lane.b32.xlu1 %v2406_v60, %s4926_s12  ;;  %v2415_v14 = vrot.slane %v2320_v46, 1  ;;  %v6499_v0 = vsel %vm375_vm3, %v2128_v23, %v6263_v22  ;;  %v2591_v22 = vrot.slane %v2320_v46, 2  ;;  %v2130_v23 = vrot.slane %v7448_v53, 1 }
 0x2e7   : > { %v2412_v60 = vrot.slane %v6499_v0, 1  ;;  %v2593_v46 = vrot.slane %v6521_v54, 2 }
 0x2e8   : > { %v2416_v59 = vsel %vm568_vm5, %v2413_v18, %v2415_v14 }
 0x2e9   : > { %v2414_v42 = vsel %vm568_vm5, %v2412_v60, %v2413_v18  ;;  %v7449_v18 = vmax.f32 %v6065_v13, 0.0 }
 0x2ea   : > { %2473 = vrot.lane.b32.xlu0 %v2404_v62, %s4926_s12  ;;  %2651 = vrot.lane.b32.xlu1 %v2582_v58, %s4925_s11  ;;  %v2589_v62 = vrot.slane %v6303_v25, 2  ;;  %v2588_v58 = vrot.slane %v6499_v0, 2 }
 0x2eb   : > { %v2275_v14 = vrot.slane %v7449_v18, 5 }
 0x2ec   : > { %v2592_v34 = vsel %vm745_vm4, %v2589_v62, %v2591_v22  ;;  %v2590_v15 = vsel %vm745_vm4, %v2588_v58, %v2589_v62  ;;  %v2428_v62 = vrot.slane %v6355_v57, 1 }
 0x2ed   : > { %v2323_v13 = vsel %vm375_vm3, %v6321_v8, %v2275_v14 }
 0x2ee   : > { %2649 = vrot.lane.b32.xlu0 %v2580_v10, %s4925_s11  ;;  %2479 = vrot.lane.b32.xlu1 %v2411_v9, %s4926_s12  ;;  %v2274_v10 = vrot.slane %v7447_v24, 5  ;;  %v2421_v9 = vsel %vm568_vm5, %v2418_v38, %v2420_v20  ;;  %v2430_v22 = vrot.slane %v2323_v13, 1  ;;  %v7452_v20 = vmax.f32 %v5960_v16, 0.0 }
 0x2f0   : > { %v2322_v21 = vsel %vm375_vm3, %v6313_v7, %v2274_v10  ;;  %v2595_v7 = vsel %vm745_vm4, %v2593_v46, %v2594_v11  ;;  %v2132_v24 = vrot.slane %v7452_v20, 1  ;;  %v2431_v10 = vsel %vm568_vm5, %v2428_v62, %v2430_v22  ;;  %v7455_v20 = vld [vmem:[#allocation5_spill] sm:$0xff] }
 0x2f1   : > { %v2425_v37 = vrot.slane %v2322_v21, 1 }
 0x2f2   : > { %2477 = vrot.lane.b32.xlu0 %v2409_v29, %s4926_s12  ;;  %2655 = vrot.lane.b32.xlu1 %v2587_v44, %s4925_s11  ;;  %v2423_v29 = vrot.slane %v6350_v17, 1  ;;  %v6543_v44 = vsel %vm375_vm3, %v2130_v23, %v6309_v45  ;;  %v2601_v45 = vrot.slane %v2322_v21, 2  ;;  %v6587_v32 = vsel %vm375_vm3, %v2132_v24, %v6362_v49  ;;  %v4151_v49 = vld [vmem:[%s7382_s4 + $0x28] sm:$0xf] }
 0x2f3   : > { %v2422_v43 = vrot.slane %v6543_v44, 1 }
 0x2f4   : > { %v2426_v60 = vsel %vm568_vm5, %v2423_v29, %v2425_v37  ;;  %v2602_v56 = vsel %vm745_vm4, %v2599_v2, %v2601_v45  ;;  %v4150_v37 = vld [vmem:[%s7382_s4 + $0x20] sm:$0xff] }
 0x2f5   : > { %v2424_v55 = vsel %vm568_vm5, %v2422_v43, %v2423_v29  ;;  %v6614_v45 = vpack.c.bf16 %v4151_v49, %v4150_v37 }
 0x2f6   : > { %2653 = vrot.lane.b32.xlu0 %v2585_v26, %s4925_s11  ;;  %2483 = vrot.lane.b32.xlu1 %v2416_v59, %s4926_s12  ;;  %v2131_v26 = vrot.slane %v7450_v27, 1  ;;  %v2598_v59 = vrot.slane %v6543_v44, 2 }
 0x2f8   : > { %v6565_v36 = vsel %vm375_vm3, %v2131_v26, %v6317_v61  ;;  %v2600_v8 = vsel %vm745_vm4, %v2598_v59, %v2599_v2  ;;  %v2604_v61 = vrot.slane %v6355_v57, 2  ;;  %v2608_v2 = vrot.slane %v6587_v32, 2  ;;  %v7453_v59 = vld [vmem:[#allocation3_spill] sm:$0xff] }
 0x2f9   : > { %v2603_v53 = vrot.slane %v6565_v36, 2 }
 0x2fa   : > { %2481 = vrot.lane.b32.xlu0 %v2414_v42, %s4926_s12  ;;  %2659 = vrot.lane.b32.xlu1 %v2592_v34, %s4925_s11  ;;  %v7451_v42 = vmax.f32 %v6068_v50, 0.0  ;;  %v2427_v34 = vrot.slane %v6565_v36, 1 }
 0x2fc   : > { %v2276_v58 = vrot.slane %v7451_v42, 5  ;;  %v2429_v39 = vsel %vm568_vm5, %v2427_v34, %v2428_v62  ;;  %v7454_v62 = vld [vmem:[#allocation4_spill] sm:$0xff] }
 0x2fe   : > { %2657 = vrot.lane.b32.xlu0 %v2590_v15, %s4925_s11  ;;  %2487 = vrot.lane.b32.xlu1 %v2421_v9, %s4926_s12  ;;  %v2606_v15 = vrot.slane %v2323_v13, 2  ;;  %v2324_v50 = vsel %vm375_vm3, %v6366_v1, %v2276_v58  ;;  %v2433_v9 = vrot.slane %v6387_v33, 1  ;;  %v2605_v1 = vsel %vm745_vm4, %v2603_v53, %v2604_v61 }
 0x2ff   : > { %v2435_v11 = vrot.slane %v2324_v50, 1  ;;  %v2611_v29 = vrot.slane %v2324_v50, 2 }
 0x300   : > { %v2607_v23 = vsel %vm745_vm4, %v2604_v61, %v2606_v15 }
 0x301   : > { %v2436_v46 = vsel %vm568_vm5, %v2433_v9, %v2435_v11 }
 0x302   : > { %2485 = vrot.lane.b32.xlu0 %v2419_v52, %s4926_s12  ;;  %2663 = vrot.lane.b32.xlu1 %v2597_v51, %s4925_s11  ;;  %v2432_v52 = vrot.slane %v6587_v32, 1  ;;  %v2609_v51 = vrot.slane %v6387_v33, 2 }
 0x304   : > { %v2434_v27 = vsel %vm568_vm5, %v2432_v52, %v2433_v9  ;;  %v2610_v13 = vsel %vm745_vm4, %v2608_v2, %v2609_v51  ;;  %v7457_v9 = vld [vmem:[#allocation6_spill] sm:$0xff] }
 0x306   : > { %2661 = vrot.lane.b32.xlu0 %v2595_v7, %s4925_s11  ;;  %2491 = vrot.lane.b32.xlu1 %v2426_v60, %s4926_s12 }
 0x30a   : > { %2489 = vrot.lane.b32.xlu0 %v2424_v55, %s4926_s12  ;;  %2667 = vrot.lane.b32.xlu1 %v2602_v56, %s4925_s11 }
 0x30e   : > { %v2440_v38 = vpop.permute.xlu1 %2439  ;;  %2665 = vrot.lane.b32.xlu0 %v2600_v8, %s4925_s11  ;;  %2495 = vrot.lane.b32.xlu1 %v2431_v10, %s4926_s12  ;;  %v7456_v10 = vld [vmem:[#allocation7_spill] sm:$0xff] }
 0x30f   : > { %v2710_v18 = vsel %vm922_vm6, %v6022_v4, %v2440_v38  ;;  %v2612_v4 = vsel %vm745_vm4, %v2609_v51, %v2611_v29 }
 0x312   : > { %2493 = vrot.lane.b32.xlu0 %v2429_v39, %s4926_s12  ;;  %2671 = vrot.lane.b32.xlu1 %v2607_v23, %s4925_s11  ;;  %v2616_v21 = vpop.permute.xlu1 %2615 }
 0x313   : > { %v6607_v7 = vsel %vm955_vm7, %v2710_v18, %v2616_v21  ;;  %v7458_v21 = vld [vmem:[#allocation10_spill] sm:$0xff]  ;;  %v7459_v18 = vld [vmem:[#allocation8_spill] sm:$0xff] }
 0x314   : > { %v2438_v16 = vpop.permute.xlu0 %2437 }
 0x315   : > { %v2709_v14 = vsel %vm922_vm6, %v6071_v28, %v2438_v16 }
 0x316   : > { %2669 = vrot.lane.b32.xlu0 %v2605_v1, %s4925_s11  ;;  %2499 = vrot.lane.b32.xlu1 %v2436_v46, %s4926_s12 }
 0x318   : > { %v2614_v43 = vpop.permute.xlu0 %2613  ;;  %v2444_v60 = vpop.permute.xlu1 %2443 }
 0x319   : > { %v6611_v26 = vsel %vm955_vm7, %v2709_v14, %v2614_v43  ;;  %v2712_v56 = vsel %vm922_vm6, %v7453_v59, %v2444_v60  ;;  %v7460_v43 = vld [vmem:[#allocation11_spill] sm:$0xff]  ;;  %v7461_v59 = vld [vmem:[#allocation9_spill] sm:$0xff] }
 0x31a   : > { %2497 = vrot.lane.b32.xlu0 %v2434_v27, %s4926_s12  ;;  %4553 = vmatprep.mubr.msk.f32.mxu1 %vm993_vm8, %v6611_v26 }
 0x31b   : > { %4554 = vmatmul.mubr.msk.f32.vlgmr.msra.gmra.mrb[0].mxu1 %vm993_vm8, %v6607_v7  ;;  %2675 = vrot.lane.b32.xlu1 %v2612_v4, %s4925_s11 }
 0x31c   : > { %v2442_v28 = vpop.permute.xlu0 %2441  ;;  %4734 = vmatpush3.bf16.msk.msra.mxu1 %vm4983_vm2, %v6418_v31  ;;  %v2620_v55 = vpop.permute.xlu1 %2619 }
 0x31d   : > { %4737 = vmatprep.subr.msk.bf16.mxu1 %vm4983_vm2, %v6614_v45  ;;  %v2711_v22 = vsel %vm922_vm6, %v7454_v62, %v2442_v28  ;;  %v6636_v42 = vsel %vm955_vm7, %v2712_v56, %v2620_v55  ;;  %v7462_v62 = vld [vmem:[#allocation12_spill] sm:$0xff] }
 0x31e   : > { %2673 = vrot.lane.b32.xlu0 %v2610_v13, %s4925_s11 }
 0x320   : > { %v2618_v58 = vpop.permute.xlu0 %2617  ;;  %v2448_v8 = vpop.permute.xlu1 %2447 }
 0x321   : > { %v6639_v31 = vsel %vm955_vm7, %v2711_v22, %v2618_v58  ;;  %v2714_v24 = vsel %vm922_vm6, %v7455_v20, %v2448_v8 }
 0x322   : > { %4556 = vmatprep.mubr.msk.f32.mxu1 %vm993_vm8, %v6639_v31 }
 0x323   : > { %4557 = vmatmul.mubr.msk.f32.gmra.mrb[2].mxu1 %vm993_vm8, %v6636_v42 }
 0x324   : > { %v2446_v34 = vpop.permute.xlu0 %2445  ;;  %v2624_v38 = vpop.permute.xlu1 %2623 }
 0x325   : > { %v2713_v61 = vsel %vm922_vm6, %v7456_v10, %v2446_v34  ;;  %v6650_v15 = vsel %vm955_vm7, %v2714_v24, %v2624_v38 }
 0x328   : > { %v2622_v50 = vpop.permute.xlu0 %2621  ;;  %v2452_v53 = vpop.permute.xlu1 %2451 }
 0x329   : > { %v6653_v39 = vsel %vm955_vm7, %v2713_v61, %v2622_v50  ;;  %v2716_v11 = vsel %vm922_vm6, %v7457_v9, %v2452_v53 }
 0x32a   : > { %4559 = vmatprep.mubr.msk.f32.mxu1 %vm993_vm8, %v6653_v39 }
 0x32b   : > { %4560 = vmatmul.mubr.msk.f32.gmra.mrb[4].mxu1 %vm993_vm8, %v6650_v15 }
 0x32c   : > { %v2450_v16 = vpop.permute.xlu0 %2449  ;;  %v2628_v23 = vpop.permute.xlu1 %2627 }
 0x32d   : > { %v2715_v1 = vsel %vm922_vm6, %v7458_v21, %v2450_v16  ;;  %v6664_v52 = vsel %vm955_vm7, %v2716_v11, %v2628_v23 }
 0x330   : > { %v2626_v46 = vpop.permute.xlu0 %2625  ;;  %v2456_v29 = vpop.permute.xlu1 %2455 }
 0x331   : > { %v6667_v51 = vsel %vm955_vm7, %v2715_v1, %v2626_v46  ;;  %v2718_v14 = vsel %vm922_vm6, %v7459_v18, %v2456_v29 }
 0x332   : > { %4562 = vmatprep.mubr.msk.f32.mxu1 %vm993_vm8, %v6667_v51 }
 0x333   : > { %4563 = vmatmul.mubr.msk.f32.gmra.mrb[6].mxu1 %vm993_vm8, %v6664_v52 }
 0x334   : > { %v2454_v37 = vpop.permute.xlu0 %2453  ;;  %v2632_v49 = vpop.permute.xlu1 %2631 }
 0x335   : > { %v2717_v27 = vsel %vm922_vm6, %v7460_v43, %v2454_v37  ;;  %v6678_v60 = vsel %vm955_vm7, %v2718_v14, %v2632_v49 }
 0x338   : > { %v2630_v2 = vpop.permute.xlu0 %2629  ;;  %v2460_v28 = vpop.permute.xlu1 %2459 }
 0x339   : > { %v6681_v4 = vsel %vm955_vm7, %v2717_v27, %v2630_v2  ;;  %v2720_v56 = vsel %vm922_vm6, %v7461_v59, %v2460_v28 }
 0x33a   : > { %4565 = vmatprep.mubr.msk.f32.mxu1 %vm993_vm8, %v6681_v4 }
 0x33b   : > { %4566 = vmatmul.mubr.msk.f32.gmra.mrb[8].mxu1 %vm993_vm8, %v6678_v60 }
 0x33c   : > { %v2458_v13 = vpop.permute.xlu0 %2457  ;;  %v2636_v55 = vpop.permute.xlu1 %2635 }
 0x33d   : > { %v2719_v22 = vsel %vm922_vm6, %v7462_v62, %v2458_v13  ;;  %v6692_v58 = vsel %vm955_vm7, %v2720_v56, %v2636_v55 }
 0x340   : > { %v2634_v8 = vpop.permute.xlu0 %2633  ;;  %v2464_v38 = vpop.permute.xlu1 %2463 }
 0x341   : > { %v6695_v34 = vsel %vm955_vm7, %v2719_v22, %v2634_v8  ;;  %v2722_v10 = vsel %vm922_vm6, %v6164_v47, %v2464_v38 }
 0x342   : > { %4568 = vmatprep.mubr.msk.f32.mxu1 %vm993_vm8, %v6695_v34 }
 0x343   : > { %4569 = vmatmul.mubr.msk.f32.gmra.mrb[10].mxu1 %vm993_vm8, %v6692_v58 }
 0x344   : > { %v2462_v20 = vpop.permute.xlu0 %2461  ;;  %v2640_v24 = vpop.permute.xlu1 %2639 }
 0x345   : > { %v2721_v61 = vsel %vm922_vm6, %v6343_v48, %v2462_v20  ;;  %v6706_v50 = vsel %vm955_vm7, %v2722_v10, %v2640_v24 }
 0x348   : > { %v2638_v53 = vpop.permute.xlu0 %2637  ;;  %v2468_v23 = vpop.permute.xlu1 %2467 }
 0x349   : > { %v6709_v16 = vsel %vm955_vm7, %v2721_v61, %v2638_v53  ;;  %v2724_v47 = vsel %vm922_vm6, %v6205_v41, %v2468_v23 }
 0x34a   : > { %4571 = vmatprep.mubr.msk.f32.mxu1 %vm993_vm8, %v6709_v16 }
 0x34b   : > { %4572 = vmatmul.mubr.msk.f32.gmra.mrb[12].mxu1 %vm993_vm8, %v6706_v50 }
 0x34c   : > { %v2466_v9 = vpop.permute.xlu0 %2465  ;;  %v2644_v11 = vpop.permute.xlu1 %2643 }
 0x34d   : > { %v2723_v48 = vsel %vm922_vm6, %v6396_v63, %v2466_v9  ;;  %v6720_v21 = vsel %vm955_vm7, %v2724_v47, %v2644_v11 }
 0x350   : > { %v2642_v1 = vpop.permute.xlu0 %2641  ;;  %v2472_v29 = vpop.permute.xlu1 %2471 }
 0x351   : > { %v6723_v46 = vsel %vm955_vm7, %v2723_v48, %v2642_v1  ;;  %v2726_v41 = vsel %vm922_vm6, %v6224_v19, %v2472_v29 }
 0x352   : > { %4574 = vmatprep.mubr.msk.f32.mxu1 %vm993_vm8, %v6723_v46 }
 0x353   : > { %4575 = vmatmul.mubr.msk.f32.gmra.mrb[14].mxu1 %vm993_vm8, %v6720_v21 }
 0x354   : > { %v2470_v37 = vpop.permute.xlu0 %2469  ;;  %v2648_v49 = vpop.permute.xlu1 %2647 }
 0x355   : > { %v2725_v63 = vsel %vm922_vm6, %v6433_v35, %v2470_v37  ;;  %v6734_v18 = vsel %vm955_vm7, %v2726_v41, %v2648_v49 }
 0x358   : > { %v2646_v14 = vpop.permute.xlu0 %2645  ;;  %v2476_v27 = vpop.permute.xlu1 %2475 }
 0x359   : > { %v6737_v43 = vsel %vm955_vm7, %v2725_v63, %v2646_v14  ;;  %v2728_v19 = vsel %vm922_vm6, %v6249_v40, %v2476_v27 }
 0x35a   : > { %4577 = vmatprep.mubr.msk.f32.mxu1 %vm993_vm8, %v6737_v43 }
 0x35b   : > { %4578 = vmatmul.mubr.msk.f32.gmra.mrb[16].mxu1 %vm993_vm8, %v6734_v18 }
 0x35c   : > { %v2474_v2 = vpop.permute.xlu0 %2473  ;;  %v2652_v28 = vpop.permute.xlu1 %2651 }
 0x35d   : > { %v2727_v35 = vsel %vm922_vm6, %v6455_v30, %v2474_v2  ;;  %v6748_v13 = vsel %vm955_vm7, %v2728_v19, %v2652_v28 }
 0x360   : > { %v2650_v55 = vpop.permute.xlu0 %2649  ;;  %v2480_v56 = vpop.permute.xlu1 %2479 }
 0x361   : > { %v6751_v59 = vsel %vm955_vm7, %v2727_v35, %v2650_v55  ;;  %v2730_v40 = vsel %vm922_vm6, %v6278_v5, %v2480_v56 }
 0x362   : > { %4580 = vmatprep.mubr.msk.f32.mxu1 %vm993_vm8, %v6751_v59 }
 0x363   : > { %4581 = vmatmul.mubr.msk.f32.gmra.mrb[18].mxu1 %vm993_vm8, %v6748_v13 }
 0x364   : > { %v2478_v62 = vpop.permute.xlu0 %2477  ;;  %v2656_v22 = vpop.permute.xlu1 %2655 }
 0x365   : > { %v2729_v30 = vsel %vm922_vm6, %v6477_v6, %v2478_v62  ;;  %v6762_v8 = vsel %vm955_vm7, %v2730_v40, %v2656_v22 }
 0x368   : > { %v2654_v38 = vpop.permute.xlu0 %2653  ;;  %v2484_v24 = vpop.permute.xlu1 %2483 }
 0x369   : > { %v6765_v20 = vsel %vm955_vm7, %v2729_v30, %v2654_v38  ;;  %v2732_v5 = vsel %vm922_vm6, %v6303_v25, %v2484_v24 }
 0x36a   : > { %4583 = vmatprep.mubr.msk.f32.mxu1 %vm993_vm8, %v6765_v20 }
 0x36b   : > { %4584 = vmatmul.mubr.msk.f32.gmra.mrb[20].mxu1 %vm993_vm8, %v6762_v8 }
 0x36c   : > { %v2482_v10 = vpop.permute.xlu0 %2481  ;;  %v2660_v61 = vpop.permute.xlu1 %2659 }
 0x36d   : > { %v2731_v6 = vsel %vm922_vm6, %v6499_v0, %v2482_v10  ;;  %v6776_v53 = vsel %vm955_vm7, %v2732_v5, %v2660_v61 }
 0x370   : > { %v2658_v23 = vpop.permute.xlu0 %2657  ;;  %v2488_v11 = vpop.permute.xlu1 %2487 }
 0x371   : > { %v6779_v9 = vsel %vm955_vm7, %v2731_v6, %v2658_v23  ;;  %v2734_v25 = vsel %vm922_vm6, %v6331_v12, %v2488_v11 }
 0x372   : > { %4586 = vmatprep.mubr.msk.f32.mxu1 %vm993_vm8, %v6779_v9 }
 0x373   : > { %4587 = vmatmul.mubr.msk.f32.gmra.mrb[22].mxu1 %vm993_vm8, %v6776_v53 }
 0x374   : > { %v2486_v47 = vpop.permute.xlu0 %2485  ;;  %v2664_v48 = vpop.permute.xlu1 %2663 }
 0x375   : > { %v2733_v0 = vsel %vm922_vm6, %v6521_v54, %v2486_v47  ;;  %v6790_v1 = vsel %vm955_vm7, %v2734_v25, %v2664_v48 }
 0x378   : > { %v2662_v29 = vpop.permute.xlu0 %2661  ;;  %v2492_v49 = vpop.permute.xlu1 %2491 }
 0x379   : > { %v6793_v37 = vsel %vm955_vm7, %v2733_v0, %v2662_v29  ;;  %v2736_v12 = vsel %vm922_vm6, %v6350_v17, %v2492_v49 }
 0x37a   : > { %4589 = vmatprep.mubr.msk.f32.mxu1 %vm993_vm8, %v6793_v37 }
 0x37b   : > { %4590 = vmatmul.mubr.msk.f32.gmra.mrb[24].mxu1 %vm993_vm8, %v6790_v1 }
 0x37c   : > { %v2490_v41 = vpop.permute.xlu0 %2489  ;;  %v2668_v63 = vpop.permute.xlu1 %2667 }
 0x37d   : > { %v2735_v54 = vsel %vm922_vm6, %v6543_v44, %v2490_v41  ;;  %v6804_v14 = vsel %vm955_vm7, %v2736_v12, %v2668_v63 }
 0x380   : > { %v2666_v27 = vpop.permute.xlu0 %2665  ;;  %v2496_v28 = vpop.permute.xlu1 %2495 }
 0x381   : > { %v6807_v2 = vsel %vm955_vm7, %v2735_v54, %v2666_v27  ;;  %v2738_v17 = vsel %vm922_vm6, %v6355_v57, %v2496_v28 }
 0x382   : > { %4592 = vmatprep.mubr.msk.f32.mxu1 %vm993_vm8, %v6807_v2 }
 0x383   : > { %4593 = vmatmul.mubr.msk.f32.gmra.mrb[26].mxu1 %vm993_vm8, %v6804_v14 }
 0x384   : > { %v2494_v19 = vpop.permute.xlu0 %2493  ;;  %v2672_v35 = vpop.permute.xlu1 %2671 }
 0x385   : > { %v2737_v44 = vsel %vm922_vm6, %v6565_v36, %v2494_v19  ;;  %v6818_v55 = vsel %vm955_vm7, %v2738_v17, %v2672_v35 }
 0x388   : > { %v2670_v56 = vpop.permute.xlu0 %2669  ;;  %v2500_v22 = vpop.permute.xlu1 %2499 }
 0x389   : > { %v6821_v62 = vsel %vm955_vm7, %v2737_v44, %v2670_v56  ;;  %v2740_v57 = vsel %vm922_vm6, %v6387_v33, %v2500_v22 }
 0x38a   : > { %4595 = vmatprep.mubr.msk.f32.mxu1 %vm993_vm8, %v6821_v62 }
 0x38b   : > { %4596 = vmatmul.mubr.msk.f32.gmra.mrb[28].mxu1 %vm993_vm8, %v6818_v55 }
 0x38c   : > { %v2498_v40 = vpop.permute.xlu0 %2497 }
 0x38d   : > { %v2676_v30 = vpop.permute.xlu1 %2675  ;;  %v2739_v36 = vsel %vm922_vm6, %v6587_v32, %v2498_v40 }
 0x38e   : > { %v6832_v38 = vsel %vm955_vm7, %v2740_v57, %v2676_v30 }
 0x390   : > { %v2674_v24 = vpop.permute.xlu0 %2673 }
 0x391   : > { %v6835_v10 = vsel %vm955_vm7, %v2739_v36, %v2674_v24 }
 0x392   : > { %4598 = vmatprep.mubr.msk.f32.mxu1 %vm993_vm8, %v6835_v10 }
 0x393   : > { %4599 = vmatmul.mubr.msk.f32.gmra.mrb[30].mxu1 %vm993_vm8, %v6832_v38 }
 0x394   : > { %4605 = vmatprep.mubr.msk.f32.mxu1 %vm993_vm8, %v6639_v31 }
 0x397   : > { %4606 = vmatmul.mubr.msk.f32.vlgmr.msra.gmra.mrb[0].mxu1 %vm993_vm8, %v6636_v42 }
 0x398   : > { %4740 = vmatpush3.bf16.msk.msra.mxu1 %vm4983_vm2, %v6614_v45  ;;  %4608 = vmatprep.mubr.msk.f32.mxu1 %vm993_vm8, %v6611_v26 }
 0x39b   : > { %4609 = vmatmul.mubr.msk.f32.gmra.mrb[2].mxu1 %vm993_vm8, %v6607_v7 }
 0x39c   : > { %4611 = vmatprep.mubr.msk.f32.mxu1 %vm993_vm8, %v6639_v31 }
 0x39f   : > { %4612 = vmatmul.mubr.msk.f32.gmra.mrb[4].mxu1 %vm993_vm8, %v6636_v42 }
 0x3a0   : > { %4614 = vmatprep.mubr.msk.f32.mxu1 %vm993_vm8, %v6653_v39 }
 0x3a3   : > { %4615 = vmatmul.mubr.msk.f32.gmra.mrb[6].mxu1 %vm993_vm8, %v6650_v15 }
 0x3a4   : > { %4617 = vmatprep.mubr.msk.f32.mxu1 %vm993_vm8, %v6667_v51 }
 0x3a7   : > { %4618 = vmatmul.mubr.msk.f32.gmra.mrb[8].mxu1 %vm993_vm8, %v6664_v52 }
 0x3a8   : > { %4620 = vmatprep.mubr.msk.f32.mxu1 %vm993_vm8, %v6681_v4 }
 0x3ab   : > { %4621 = vmatmul.mubr.msk.f32.gmra.mrb[10].mxu1 %vm993_vm8, %v6678_v60 }
 0x3ac   : > { %4623 = vmatprep.mubr.msk.f32.mxu1 %vm993_vm8, %v6695_v34 }
 0x3af   : > { %4624 = vmatmul.mubr.msk.f32.gmra.mrb[12].mxu1 %vm993_vm8, %v6692_v58 }
 0x3b0   : > { %4626 = vmatprep.mubr.msk.f32.mxu1 %vm993_vm8, %v6709_v16 }
 0x3b3   : > { %4627 = vmatmul.mubr.msk.f32.gmra.mrb[14].mxu1 %vm993_vm8, %v6706_v50 }
 0x3b4   : > { %4629 = vmatprep.mubr.msk.f32.mxu1 %vm993_vm8, %v6723_v46 }
 0x3b7   : > { %4630 = vmatmul.mubr.msk.f32.gmra.mrb[16].mxu1 %vm993_vm8, %v6720_v21 }
 0x3b8   : > { %4632 = vmatprep.mubr.msk.f32.mxu1 %vm993_vm8, %v6737_v43 }
 0x3bb   : > { %4633 = vmatmul.mubr.msk.f32.gmra.mrb[18].mxu1 %vm993_vm8, %v6734_v18 }
 0x3bc   : > { %4635 = vmatprep.mubr.msk.f32.mxu1 %vm993_vm8, %v6751_v59 }
 0x3bf   : > { %4636 = vmatmul.mubr.msk.f32.gmra.mrb[20].mxu1 %vm993_vm8, %v6748_v13 }
 0x3c0   : > { %4638 = vmatprep.mubr.msk.f32.mxu1 %vm993_vm8, %v6765_v20 }
 0x3c3   : > { %4639 = vmatmul.mubr.msk.f32.gmra.mrb[22].mxu1 %vm993_vm8, %v6762_v8 }
 0x3c4   : > { %4641 = vmatprep.mubr.msk.f32.mxu1 %vm993_vm8, %v6779_v9 }
 0x3c7   : > { %4642 = vmatmul.mubr.msk.f32.gmra.mrb[24].mxu1 %vm993_vm8, %v6776_v53 }
 0x3c8   : > { %4644 = vmatprep.mubr.msk.f32.mxu1 %vm993_vm8, %v6793_v37 }
 0x3cb   : > { %4645 = vmatmul.mubr.msk.f32.gmra.mrb[26].mxu1 %vm993_vm8, %v6790_v1 }
 0x3cc   : > { %4647 = vmatprep.mubr.msk.f32.mxu1 %vm993_vm8, %v6807_v2 }
 0x3cf   : > { %4648 = vmatmul.mubr.msk.f32.gmra.mrb[28].mxu1 %vm993_vm8, %v6804_v14 }
 0x3d0   : > { %4650 = vmatprep.mubr.msk.f32.mxu1 %vm993_vm8, %v6821_v62 }
 0x3d3   : > { %4651 = vmatmul.mubr.msk.f32.gmra.mrb[30].mxu1 %vm993_vm8, %v6818_v55 }
 0x3d4   : > { %4657 = vmatprep.mubr.msk.f32.mxu1 %vm993_vm8, %v6639_v31 }
 0x3d7   : > { %4658 = vmatmul.mubr.msk.f32.vlgmr.msra.gmra.mrb[0].mxu1 %vm993_vm8, %v6636_v42 }
 0x3d8   : > { %4660 = vmatprep.mubr.msk.f32.mxu1 %vm993_vm8, %v6653_v39 }
 0x3db   : > { %4661 = vmatmul.mubr.msk.f32.gmra.mrb[2].mxu1 %vm993_vm8, %v6650_v15 }
 0x3dc   : > { %4663 = vmatprep.mubr.msk.f32.mxu1 %vm993_vm8, %v6667_v51 }
 0x3df   : > { %4664 = vmatmul.mubr.msk.f32.gmra.mrb[4].mxu1 %vm993_vm8, %v6664_v52 }
 0x3e0   : > { %4666 = vmatprep.mubr.msk.f32.mxu1 %vm993_vm8, %v6681_v4 }
 0x3e3   : > { %4667 = vmatmul.mubr.msk.f32.gmra.mrb[6].mxu1 %vm993_vm8, %v6678_v60 }
 0x3e4   : > { %4669 = vmatprep.mubr.msk.f32.mxu1 %vm993_vm8, %v6695_v34 }
 0x3e7   : > { %4670 = vmatmul.mubr.msk.f32.gmra.mrb[8].mxu1 %vm993_vm8, %v6692_v58 }
 0x3e8   : > { %4672 = vmatprep.mubr.msk.f32.mxu1 %vm993_vm8, %v6709_v16 }
 0x3eb   : > { %4673 = vmatmul.mubr.msk.f32.gmra.mrb[10].mxu1 %vm993_vm8, %v6706_v50 }
 0x3ec   : > { %4675 = vmatprep.mubr.msk.f32.mxu1 %vm993_vm8, %v6723_v46 }
 0x3ef   : > { %4676 = vmatmul.mubr.msk.f32.gmra.mrb[12].mxu1 %vm993_vm8, %v6720_v21 }
 0x3f0   : > { %4678 = vmatprep.mubr.msk.f32.mxu1 %vm993_vm8, %v6737_v43 }
 0x3f3   : > { %4679 = vmatmul.mubr.msk.f32.gmra.mrb[14].mxu1 %vm993_vm8, %v6734_v18 }
 0x3f4   : > { %4681 = vmatprep.mubr.msk.f32.mxu1 %vm993_vm8, %v6751_v59 }
 0x3f7   : > { %4682 = vmatmul.mubr.msk.f32.gmra.mrb[16].mxu1 %vm993_vm8, %v6748_v13 }
 0x3f8   : > { %4684 = vmatprep.mubr.msk.f32.mxu1 %vm993_vm8, %v6765_v20 }
 0x3fb   : > { %4685 = vmatmul.mubr.msk.f32.gmra.mrb[18].mxu1 %vm993_vm8, %v6762_v8 }
 0x3fc   : > { %4687 = vmatprep.mubr.msk.f32.mxu1 %vm993_vm8, %v6779_v9 }
 0x3ff   : > { %4688 = vmatmul.mubr.msk.f32.gmra.mrb[20].mxu1 %vm993_vm8, %v6776_v53 }
 0x400   : > { %4690 = vmatprep.mubr.msk.f32.mxu1 %vm993_vm8, %v6793_v37 }
 0x403   : > { %4691 = vmatmul.mubr.msk.f32.gmra.mrb[22].mxu1 %vm993_vm8, %v6790_v1 }
 0x404   : > { %4693 = vmatprep.mubr.msk.f32.mxu1 %vm993_vm8, %v6807_v2 }
 0x407   : > { %4694 = vmatmul.mubr.msk.f32.gmra.mrb[24].mxu1 %vm993_vm8, %v6804_v14 }
 0x408   : > { %4696 = vmatprep.mubr.msk.f32.mxu1 %vm993_vm8, %v6821_v62 }
 0x40b   : > { %4697 = vmatmul.mubr.msk.f32.gmra.mrb[26].mxu1 %vm993_vm8, %v6818_v55 }
 0x40c   : > { %4699 = vmatprep.mubr.msk.f32.mxu1 %vm993_vm8, %v6835_v10 }
 0x40f   : > { %4700 = vmatmul.mubr.msk.f32.gmra.mrb[28].mxu1 %vm993_vm8, %v6832_v38 }
 0x410   : > { %4702 = vmatprep.mubr.msk.f32.mxu1 %vm993_vm8, %v6821_v62 }
 0x413   : > { %4703 = vmatmul.mubr.msk.f32.gmra.mrb[30].mxu1 %vm993_vm8, %v6818_v55 }
 0x4aa   : > { %v6972_v3 = vpop.f32.mrb[0].mxu1 }
 0x4ab   : > { %v3596_v33 = vsel %vm922_vm6, %v6972_v3, 0.0  ;;  %v3666_v32 = vmul.f32 %v6972_v3, %v6972_v3  ;;  %v6978_v7 = vpop.f32.mrb[1].mxu1 }
 0x4ac   : > { %v3595_v26 = vsel %vm922_vm6, %v6978_v7, 0.0  ;;  %v3665_v45 = vmul.f32 %v6978_v7, %v6978_v7 }
 0x4ad   : > { %v3698_v42 = vsel %vm922_vm6, %v3666_v32, 0.0  ;;  %v3597_v31 = vadd.f32 %v3596_v33, %v3595_v26 }
 0x4ae   : > { %v3697_v15 = vsel %vm922_vm6, %v3665_v45, 0.0  ;;  %v6986_v39 = vpop.f32.mrb[2].mxu1 }
 0x4af   : > { %v3699_v52 = vadd.f32 %v3698_v42, %v3697_v15  ;;  %v6988_v51 = vpop.f32.mrb[3].mxu1  ;;  %v3668_v60 = vmul.f32 %v6986_v39, %v6986_v39  ;;  %v3600_v50 = vsel %vm922_vm6, %v6986_v39, 0.0 }
 0x4b0   : > { %v3598_v4 = vsel %vm922_vm6, %v6988_v51, 0.0  ;;  %v3667_v58 = vmul.f32 %v6988_v51, %v6988_v51 }
 0x4b1   : > { %v3599_v34 = vadd.f32 %v3598_v4, %v3597_v31  ;;  %v3702_v13 = vsel %vm922_vm6, %v3668_v60, 0.0 }
 0x4b2   : > { %v3700_v16 = vsel %vm922_vm6, %v3667_v58, 0.0  ;;  %v6999_v21 = vpop.f32.mrb[4].mxu1 }
 0x4b3   : > { %v3701_v46 = vadd.f32 %v3700_v16, %v3699_v52  ;;  %v7001_v18 = vpop.f32.mrb[5].mxu1  ;;  %v3601_v43 = vadd.f32 %v3600_v50, %v3599_v34  ;;  %v3670_v59 = vmul.f32 %v6999_v21, %v6999_v21  ;;  %v3604_v6 = vsel %vm922_vm6, %v6999_v21, 0.0 }
 0x4b4   : > { %v3602_v8 = vsel %vm922_vm6, %v7001_v18, 0.0  ;;  %v3669_v20 = vmul.f32 %v7001_v18, %v7001_v18 }
 0x4b5   : > { %v3603_v61 = vadd.f32 %v3602_v8, %v3601_v43  ;;  %v3703_v5 = vadd.f32 %v3702_v13, %v3701_v46  ;;  %v3706_v48 = vsel %vm922_vm6, %v3670_v59, 0.0 }
 0x4b6   : > { %v3704_v53 = vsel %vm922_vm6, %v3669_v20, 0.0  ;;  %v7013_v23 = vpop.f32.mrb[6].mxu1 }
 0x4b7   : > { %v3705_v9 = vadd.f32 %v3704_v53, %v3703_v5  ;;  %v7015_v11 = vpop.f32.mrb[7].mxu1  ;;  %v3605_v47 = vadd.f32 %v3604_v6, %v3603_v61  ;;  %v3672_v25 = vmul.f32 %v7013_v23, %v7013_v23  ;;  %v3608_v49 = vsel %vm922_vm6, %v7013_v23, 0.0 }
 0x4b8   : > { %v3606_v0 = vsel %vm922_vm6, %v7015_v11, 0.0  ;;  %v3671_v1 = vmul.f32 %v7015_v11, %v7015_v11 }
 0x4b9   : > { %v3607_v29 = vadd.f32 %v3606_v0, %v3605_v47  ;;  %v3707_v37 = vadd.f32 %v3706_v48, %v3705_v9  ;;  %v3710_v27 = vsel %vm922_vm6, %v3672_v25, 0.0 }
 0x4ba   : > { %v3708_v41 = vsel %vm922_vm6, %v3671_v1, 0.0  ;;  %v7027_v63 = vpop.f32.mrb[8].mxu1 }
 0x4bb   : > { %v3709_v12 = vadd.f32 %v3708_v41, %v3707_v37  ;;  %v7029_v54 = vpop.f32.mrb[9].mxu1  ;;  %v3609_v14 = vadd.f32 %v3608_v49, %v3607_v29  ;;  %v3674_v2 = vmul.f32 %v7027_v63, %v7027_v63  ;;  %v3612_v44 = vsel %vm922_vm6, %v7027_v63, 0.0 }
 0x4bc   : > { %v3610_v28 = vsel %vm922_vm6, %v7029_v54, 0.0  ;;  %v3673_v19 = vmul.f32 %v7029_v54, %v7029_v54 }
 0x4bd   : > { %v3611_v35 = vadd.f32 %v3610_v28, %v3609_v14  ;;  %v3711_v17 = vadd.f32 %v3710_v27, %v3709_v12  ;;  %v3714_v30 = vsel %vm922_vm6, %v3674_v2, 0.0 }
 0x4be   : > { %v3712_v55 = vsel %vm922_vm6, %v3673_v19, 0.0  ;;  %v7041_v56 = vpop.f32.mrb[10].mxu1 }
 0x4bf   : > { %v3713_v62 = vadd.f32 %v3712_v55, %v3711_v17  ;;  %v7043_v22 = vpop.f32.mrb[11].mxu1  ;;  %v3613_v40 = vadd.f32 %v3612_v44, %v3611_v35  ;;  %v3676_v57 = vmul.f32 %v7041_v56, %v7041_v56  ;;  %v3616_v33 = vsel %vm922_vm6, %v7041_v56, 0.0 }
 0x4c0   : > { %v3614_v36 = vsel %vm922_vm6, %v7043_v22, 0.0  ;;  %v3675_v38 = vmul.f32 %v7043_v22, %v7043_v22 }
 0x4c1   : > { %v3615_v24 = vadd.f32 %v3614_v36, %v3613_v40  ;;  %v3715_v10 = vadd.f32 %v3714_v30, %v3713_v62  ;;  %v3718_v15 = vsel %vm922_vm6, %v3676_v57, 0.0 }
 0x4c2   : > { %v3716_v32 = vsel %vm922_vm6, %v3675_v38, 0.0  ;;  %v7055_v26 = vpop.f32.mrb[12].mxu1 }
 0x4c3   : > { %v3717_v45 = vadd.f32 %v3716_v32, %v3715_v10  ;;  %v7057_v42 = vpop.f32.mrb[13].mxu1  ;;  %v3617_v31 = vadd.f32 %v3616_v33, %v3615_v24  ;;  %v3678_v52 = vmul.f32 %v7055_v26, %v7055_v26  ;;  %v3620_v50 = vsel %vm922_vm6, %v7055_v26, 0.0 }
 0x4c4   : > { %v3618_v60 = vsel %vm922_vm6, %v7057_v42, 0.0  ;;  %v3677_v4 = vmul.f32 %v7057_v42, %v7057_v42 }
 0x4c5   : > { %v3619_v58 = vadd.f32 %v3618_v60, %v3617_v31  ;;  %v3719_v34 = vadd.f32 %v3718_v15, %v3717_v45  ;;  %v3722_v8 = vsel %vm922_vm6, %v3678_v52, 0.0 }
 0x4c6   : > { %v3720_v16 = vsel %vm922_vm6, %v3677_v4, 0.0  ;;  %v7069_v46 = vpop.f32.mrb[14].mxu1 }
 0x4c7   : > { %v3721_v43 = vadd.f32 %v3720_v16, %v3719_v34  ;;  %v7071_v13 = vpop.f32.mrb[15].mxu1  ;;  %v3621_v59 = vadd.f32 %v3620_v50, %v3619_v58  ;;  %v3680_v20 = vmul.f32 %v7069_v46, %v7069_v46  ;;  %v3624_v9 = vsel %vm922_vm6, %v7069_v46, 0.0 }
 0x4c8   : > { %v3622_v61 = vsel %vm922_vm6, %v7071_v13, 0.0  ;;  %v3679_v5 = vmul.f32 %v7071_v13, %v7071_v13 }
 0x4c9   : > { %v3623_v6 = vadd.f32 %v3622_v61, %v3621_v59  ;;  %v3723_v53 = vadd.f32 %v3722_v8, %v3721_v43  ;;  %v3726_v29 = vsel %vm922_vm6, %v3680_v20, 0.0 }
 0x4ca   : > { %v3724_v47 = vsel %vm922_vm6, %v3679_v5, 0.0  ;;  %v7083_v48 = vpop.f32.mrb[16].mxu1 }
 0x4cb   : > { %v3725_v25 = vadd.f32 %v3724_v47, %v3723_v53  ;;  %v7085_v0 = vpop.f32.mrb[17].mxu1  ;;  %v3625_v1 = vadd.f32 %v3624_v9, %v3623_v6  ;;  %v3682_v37 = vmul.f32 %v7083_v48, %v7083_v48  ;;  %v3628_v27 = vsel %vm922_vm6, %v7083_v48, 0.0 }
 0x4cc   : > { %v3626_v49 = vsel %vm922_vm6, %v7085_v0, 0.0  ;;  %v3681_v41 = vmul.f32 %v7085_v0, %v7085_v0 }
 0x4cd   : > { %v3627_v12 = vadd.f32 %v3626_v49, %v3625_v1  ;;  %v3727_v14 = vadd.f32 %v3726_v29, %v3725_v25  ;;  %v3730_v44 = vsel %vm922_vm6, %v3682_v37, 0.0 }
 0x4ce   : > { %v3728_v2 = vsel %vm922_vm6, %v3681_v41, 0.0  ;;  %v7097_v28 = vpop.f32.mrb[18].mxu1 }
 0x4cf   : > { %v3729_v19 = vadd.f32 %v3728_v2, %v3727_v14  ;;  %v7099_v35 = vpop.f32.mrb[19].mxu1  ;;  %v3629_v17 = vadd.f32 %v3628_v27, %v3627_v12  ;;  %v3684_v55 = vmul.f32 %v7097_v28, %v7097_v28  ;;  %v3632_v36 = vsel %vm922_vm6, %v7097_v28, 0.0 }
 0x4d0   : > { %v3630_v62 = vsel %vm922_vm6, %v7099_v35, 0.0  ;;  %v3683_v40 = vmul.f32 %v7099_v35, %v7099_v35 }
 0x4d1   : > { %v3631_v30 = vadd.f32 %v3630_v62, %v3629_v17  ;;  %v3731_v57 = vadd.f32 %v3730_v44, %v3729_v19  ;;  %v3734_v45 = vsel %vm922_vm6, %v3684_v55, 0.0 }
 0x4d2   : > { %v3732_v38 = vsel %vm922_vm6, %v3683_v40, 0.0  ;;  %v7111_v24 = vpop.f32.mrb[20].mxu1 }
 0x4d3   : > { %v3733_v10 = vadd.f32 %v3732_v38, %v3731_v57  ;;  %v7113_v33 = vpop.f32.mrb[21].mxu1  ;;  %v3633_v32 = vadd.f32 %v3632_v36, %v3631_v30  ;;  %v3686_v31 = vmul.f32 %v7111_v24, %v7111_v24  ;;  %v3636_v58 = vsel %vm922_vm6, %v7111_v24, 0.0 }
 0x4d4   : > { %v3634_v15 = vsel %vm922_vm6, %v7113_v33, 0.0  ;;  %v3685_v52 = vmul.f32 %v7113_v33, %v7113_v33 }
 0x4d5   : > { %v3635_v60 = vadd.f32 %v3634_v15, %v3633_v32  ;;  %v3735_v4 = vadd.f32 %v3734_v45, %v3733_v10  ;;  %v3738_v8 = vsel %vm922_vm6, %v3686_v31, 0.0 }
 0x4d6   : > { %v3736_v34 = vsel %vm922_vm6, %v3685_v52, 0.0  ;;  %v7125_v50 = vpop.f32.mrb[22].mxu1 }
 0x4d7   : > { %v3737_v16 = vadd.f32 %v3736_v34, %v3735_v4  ;;  %v7127_v43 = vpop.f32.mrb[23].mxu1  ;;  %v3637_v59 = vadd.f32 %v3636_v58, %v3635_v60  ;;  %v3688_v20 = vmul.f32 %v7125_v50, %v7125_v50  ;;  %v3640_v9 = vsel %vm922_vm6, %v7125_v50, 0.0 }
 0x4d8   : > { %v3638_v61 = vsel %vm922_vm6, %v7127_v43, 0.0  ;;  %v3687_v5 = vmul.f32 %v7127_v43, %v7127_v43 }
 0x4d9   : > { %v3639_v6 = vadd.f32 %v3638_v61, %v3637_v59  ;;  %v3739_v53 = vadd.f32 %v3738_v8, %v3737_v16  ;;  %v3742_v49 = vsel %vm922_vm6, %v3688_v20, 0.0 }
 0x4da   : > { %v3740_v47 = vsel %vm922_vm6, %v3687_v5, 0.0  ;;  %v7139_v25 = vpop.f32.mrb[24].mxu1 }
 0x4db   : > { %v3741_v1 = vadd.f32 %v3740_v47, %v3739_v53  ;;  %v7141_v29 = vpop.f32.mrb[25].mxu1  ;;  %v3641_v37 = vadd.f32 %v3640_v9, %v3639_v6  ;;  %v3690_v41 = vmul.f32 %v7139_v25, %v7139_v25  ;;  %v3644_v19 = vsel %vm922_vm6, %v7139_v25, 0.0 }
 0x4dc   : > { %v3642_v12 = vsel %vm922_vm6, %v7141_v29, 0.0  ;;  %v3689_v14 = vmul.f32 %v7141_v29, %v7141_v29 }
 0x4dd   : > { %v3643_v27 = vadd.f32 %v3642_v12, %v3641_v37  ;;  %v3743_v2 = vadd.f32 %v3742_v49, %v3741_v1  ;;  %v3746_v30 = vsel %vm922_vm6, %v3690_v41, 0.0 }
 0x4de   : > { %v3744_v17 = vsel %vm922_vm6, %v3689_v14, 0.0  ;;  %v7153_v44 = vpop.f32.mrb[26].mxu1 }
 0x4df   : > { %v3745_v55 = vadd.f32 %v3744_v17, %v3743_v2  ;;  %v7155_v62 = vpop.f32.mrb[27].mxu1  ;;  %v3645_v40 = vadd.f32 %v3644_v19, %v3643_v27  ;;  %v3692_v57 = vmul.f32 %v7153_v44, %v7153_v44  ;;  %v3648_v45 = vsel %vm922_vm6, %v7153_v44, 0.0 }
 0x4e0   : > { %v3646_v36 = vsel %vm922_vm6, %v7155_v62, 0.0  ;;  %v3691_v38 = vmul.f32 %v7155_v62, %v7155_v62 }
 0x4e1   : > { %v3647_v10 = vadd.f32 %v3646_v36, %v3645_v40  ;;  %v3747_v32 = vadd.f32 %v3746_v30, %v3745_v55  ;;  %v3750_v58 = vsel %vm922_vm6, %v3692_v57, 0.0 }
 0x4e2   : > { %v3748_v31 = vsel %vm922_vm6, %v3691_v38, 0.0  ;;  %v7167_v15 = vpop.f32.mrb[28].mxu1 }
 0x4e3   : > { %v3749_v52 = vadd.f32 %v3748_v31, %v3747_v32  ;;  %v7169_v60 = vpop.f32.mrb[29].mxu1  ;;  %v3649_v4 = vadd.f32 %v3648_v45, %v3647_v10  ;;  %v3694_v34 = vmul.f32 %v7167_v15, %v7167_v15  ;;  %v3652_v61 = vsel %vm922_vm6, %v7167_v15, 0.0 }
 0x4e4   : > { %v3650_v16 = vsel %vm922_vm6, %v7169_v60, 0.0  ;;  %v3693_v59 = vmul.f32 %v7169_v60, %v7169_v60 }
 0x4e5   : > { %v3651_v8 = vadd.f32 %v3650_v16, %v3649_v4  ;;  %v3751_v20 = vadd.f32 %v3750_v58, %v3749_v52  ;;  %v3754_v1 = vsel %vm922_vm6, %v3694_v34, 0.0 }
 0x4e6   : > { %v3752_v5 = vsel %vm922_vm6, %v3693_v59, 0.0  ;;  %v7181_v6 = vpop.f32.mrb[30].mxu1 }
 0x4e7   : > { %v3753_v53 = vadd.f32 %v3752_v5, %v3751_v20  ;;  %v7183_v9 = vpop.f32.mrb[31].mxu1  ;;  %v3653_v47 = vadd.f32 %v3652_v61, %v3651_v8  ;;  %v3696_v37 = vmul.f32 %v7181_v6, %v7181_v6  ;;  %v3656_v27 = vsel %vm922_vm6, %v7181_v6, 0.0 }
 0x4e8   : > { %v3654_v49 = vsel %vm922_vm6, %v7183_v9, 0.0  ;;  %v3695_v41 = vmul.f32 %v7183_v9, %v7183_v9 }
 0x4e9   : > { %v3655_v12 = vadd.f32 %v3654_v49, %v3653_v47  ;;  %v3755_v14 = vadd.f32 %v3754_v1, %v3753_v53  ;;  %v3758_v55 = vsel %vm922_vm6, %v3696_v37, 0.0  ;;  %v3593_v53 = vld [vmem:[%s7383_s5] sm:$0x1] }
 0x4ea   : > { %v3756_v2 = vsel %vm922_vm6, %v3695_v41, 0.0  ;;  %v3594_v37 = vld [vmem:[%s7384_s6] sm:$0x1] }
 0x4eb   : > { %v3657_v19 = vadd.f32 %v3656_v27, %v3655_v12  ;;  %v3757_v17 = vadd.f32 %v3756_v2, %v3755_v14  ;;  %v7463_v41 = vld [vmem:[#allocation2_spill] sm:$0xff] }
 0x4ed   : > { %v3658_v40 = vrot.slane %v3657_v19, 4  ;;  %v3759_v30 = vadd.f32 %v3758_v55, %v3757_v17 }
 0x4ef   : > { %v3659_v57 = vadd.f32 %v3658_v40, %v3657_v19  ;;  %v3760_v36 = vrot.slane %v3759_v30, 4 }
 0x4f1   : > { %v3660_v38 = vrot.slane %v3659_v57, 2  ;;  %v3761_v10 = vadd.f32 %v3760_v36, %v3759_v30 }
 0x4f3   : > { %v3661_v32 = vadd.f32 %v3660_v38, %v3659_v57  ;;  %v3762_v45 = vrot.slane %v3761_v10, 2 }
 0x4f5   : > { %v3662_v31 = vrot.slane %v3661_v32, 1  ;;  %v3763_v52 = vadd.f32 %v3762_v45, %v3761_v10 }
 0x4f7   : > { %v3663_v4 = vadd.f32 %v3662_v31, %v3661_v32  ;;  %v3764_v58 = vrot.slane %v3763_v52, 1 }
 0x4f9   : > { %v3664_v34 = vmul.f32 0.00390625, %v3663_v4  ;;  %v3765_v16 = vadd.f32 %v3764_v58, %v3763_v52 }
 0x4fb   : > { %v3766_v59 = vmul.f32 0.00390625, %v3765_v16  ;;  %v3767_v8 = vmul.f32 %v3664_v34, %v3664_v34 }
 0x4fd   : > { %v3768_v20 = vsub.f32 %v3766_v59, %v3767_v8 }
 0x4ff   : > { %v3769_v61 = vmax.f32 %v3768_v20, 0.0 }
 0x501   : > { %v3770_v5 = vadd.f32 1e-05, %v3769_v61 }
 0x503   : > { %4882 = vrsqrt.f32 %v3770_v5 }
 0x50d   : > { %v4883_v47 = vpop.eup %4882 }
 0x50e   : > { %v3772_v1 = vmul.f32 %v4883_v47, %v3593_v53 }
 0x510   : > { %v3773_v49 = vmul.f32 %v3772_v1, %v3664_v34  ;;  %v3779_v12 = vrot.slane %v3772_v1, %v7463_v41 }
 0x512   : > { %v3774_v14 = vsub.f32 %v3594_v37, %v3773_v49  ;;  %v3781_v27 = vmul.f32 %v3779_v12, %v6978_v7  ;;  %v3782_v2 = vmul.f32 %v6972_v3, %v3779_v12  ;;  %v3783_v19 = vmul.f32 %v3779_v12, %v6988_v51 }
 0x513   : > { %v3784_v17 = vmul.f32 %v6986_v39, %v3779_v12  ;;  %v3785_v55 = vmul.f32 %v3779_v12, %v7001_v18  ;;  %v3786_v40 = vmul.f32 %v6999_v21, %v3779_v12  ;;  %v3787_v30 = vmul.f32 %v3779_v12, %v7015_v11 }
 0x514   : > { %v3788_v57 = vmul.f32 %v7013_v23, %v3779_v12  ;;  %v3789_v36 = vmul.f32 %v3779_v12, %v7029_v54  ;;  %v3790_v38 = vmul.f32 %v7027_v63, %v3779_v12  ;;  %v3791_v7 = vmul.f32 %v3779_v12, %v7043_v22 }
 0x515   : > { %v3792_v3 = vmul.f32 %v7041_v56, %v3779_v12  ;;  %v3793_v51 = vmul.f32 %v3779_v12, %v7057_v42  ;;  %v3794_v39 = vmul.f32 %v7055_v26, %v3779_v12  ;;  %v3795_v18 = vmul.f32 %v3779_v12, %v7071_v13 }
 0x516   : > { %v3796_v21 = vmul.f32 %v7069_v46, %v3779_v12  ;;  %v3797_v11 = vmul.f32 %v3779_v12, %v7085_v0  ;;  %v3798_v23 = vmul.f32 %v7083_v48, %v3779_v12  ;;  %v3799_v54 = vmul.f32 %v3779_v12, %v7099_v35 }
 0x517   : > { %v3800_v63 = vmul.f32 %v7097_v28, %v3779_v12  ;;  %v3801_v22 = vmul.f32 %v3779_v12, %v7113_v33  ;;  %v3802_v56 = vmul.f32 %v7111_v24, %v3779_v12  ;;  %v3803_v42 = vmul.f32 %v3779_v12, %v7127_v43 }
 0x518   : > { %v3804_v26 = vmul.f32 %v7125_v50, %v3779_v12  ;;  %v3805_v13 = vmul.f32 %v3779_v12, %v7141_v29  ;;  %v3806_v46 = vmul.f32 %v7139_v25, %v3779_v12  ;;  %v3807_v0 = vmul.f32 %v3779_v12, %v7155_v62 }
 0x519   : > { %v3808_v48 = vmul.f32 %v7153_v44, %v3779_v12  ;;  %v3809_v35 = vmul.f32 %v3779_v12, %v7169_v60  ;;  %v3810_v28 = vmul.f32 %v7167_v15, %v3779_v12  ;;  %v3811_v33 = vmul.f32 %v3779_v12, %v7183_v9 }
 0x51a   : > { %v3812_v24 = vmul.f32 %v7181_v6, %v3779_v12  ;;  %v3817_v43 = vrot.slane %v3774_v14, %v7463_v41 }
 0x51c   : > { %v3819_v10 = vadd.f32 %v3817_v43, %v3781_v27  ;;  %v3820_v50 = vadd.f32 %v3817_v43, %v3782_v2  ;;  %v3821_v32 = vadd.f32 %v3817_v43, %v3783_v19  ;;  %v3822_v29 = vadd.f32 %v3817_v43, %v3784_v17  ;;  %v4884_v2 = vld [vmem:[%s4995_s10] sm:$0xff]  ;;  %v4885_v17 = vld [vmem:[%s4995_s10 + $0x8] sm:$0xff] }
 0x51d   : > { %v3823_v45 = vadd.f32 %v3817_v43, %v3785_v55  ;;  %v3824_v25 = vadd.f32 %v3817_v43, %v3786_v40  ;;  %v3825_v31 = vadd.f32 %v3817_v43, %v3787_v30  ;;  %v3826_v62 = vadd.f32 %v3817_v43, %v3788_v57  ;;  %v4886_v40 = vld [vmem:[%s4995_s10 + $0x10] sm:$0xff]  ;;  %v4887_v57 = vld [vmem:[%s4995_s10 + $0x18] sm:$0xff] }
 0x51e   : > { %v3827_v52 = vadd.f32 %v3817_v43, %v3789_v36  ;;  %v3828_v44 = vadd.f32 %v3817_v43, %v3790_v38  ;;  %v3829_v4 = vadd.f32 %v3817_v43, %v3791_v7  ;;  %v3830_v60 = vadd.f32 %v3817_v43, %v3792_v3  ;;  %v4888_v38 = vld [vmem:[%s4995_s10 + $0x20] sm:$0xff]  ;;  %v4889_v3 = vld [vmem:[%s4995_s10 + $0x28] sm:$0xff] }
 0x51f   : > { %v3831_v58 = vadd.f32 %v3817_v43, %v3793_v51  ;;  %v3832_v15 = vadd.f32 %v3817_v43, %v3794_v39  ;;  %v3833_v9 = vadd.f32 %v3817_v43, %v3795_v18  ;;  %v3834_v34 = vadd.f32 %v3817_v43, %v3796_v21  ;;  %v4890_v39 = vld [vmem:[%s4995_s10 + $0x30] sm:$0xff]  ;;  %v4891_v21 = vld [vmem:[%s4995_s10 + $0x38] sm:$0xff] }
 0x520   : > { %v3835_v6 = vadd.f32 %v3817_v43, %v3797_v11  ;;  %v3836_v16 = vadd.f32 %v3817_v43, %v3798_v23  ;;  %v3837_v59 = vadd.f32 %v3817_v43, %v3799_v54  ;;  %v3838_v8 = vadd.f32 %v3817_v43, %v3800_v63  ;;  %v4892_v23 = vld [vmem:[%s4995_s10 + $0x40] sm:$0xff]  ;;  %v4893_v63 = vld [vmem:[%s4995_s10 + $0x48] sm:$0xff] }
 0x521   : > { %v7236_v20 = vadd.f32 %v3817_v43, %v3801_v22  ;;  %v7238_v61 = vadd.f32 %v3817_v43, %v3802_v56  ;;  %v7240_v5 = vadd.f32 %v3817_v43, %v3803_v42  ;;  %v7242_v53 = vadd.f32 %v3817_v43, %v3804_v26  ;;  %v4894_v56 = vld [vmem:[%s4995_s10 + $0x50] sm:$0xff]  ;;  %v4895_v26 = vld [vmem:[%s4995_s10 + $0x58] sm:$0xff] }
 0x522   : > { %v7244_v47 = vadd.f32 %v3817_v43, %v3805_v13  ;;  %v7246_v1 = vadd.f32 %v3817_v43, %v3806_v46  ;;  %v7248_v37 = vadd.f32 %v3817_v43, %v3807_v0  ;;  %v7250_v49 = vadd.f32 %v3817_v43, %v3808_v48  ;;  %v4896_v46 = vld [vmem:[%s4995_s10 + $0x60] sm:$0xff]  ;;  %v4897_v48 = vld [vmem:[%s4995_s10 + $0x68] sm:$0xff] }
 0x523   : > { %v7259_v41 = vadd.f32 %v3817_v43, %v3809_v35  ;;  %v7261_v12 = vadd.f32 %v3817_v43, %v3810_v28  ;;  %v7263_v14 = vadd.f32 %v3817_v43, %v3811_v33  ;;  %v7265_v27 = vadd.f32 %v3817_v43, %v3812_v24  ;;  %v4898_v28 = vld [vmem:[%s4995_s10 + $0x70] sm:$0xff]  ;;  %v4899_v24 = vld [vmem:[%s4995_s10 + $0x78] sm:$0xff] }
 0x524   : > { %v3851_v19 = vadd.f32 %v4884_v2, %v3819_v10  ;;  %v3852_v55 = vadd.f32 %v4885_v17, %v3820_v50  ;;  %v3853_v30 = vadd.f32 %v4886_v40, %v3821_v32  ;;  %v3854_v36 = vadd.f32 %v4887_v57, %v3822_v29  ;;  %v4900_v10 = vld [vmem:[%s4995_s10 + $0x80] sm:$0xff]  ;;  %v4901_v32 = vld [vmem:[%s4995_s10 + $0x88] sm:$0xff]  ;;  %v4914_v2 = vld [vmem:[%s4995_s10 + $0xf0] sm:$0xff] }
 0x525   : > { %v3855_v7 = vadd.f32 %v4888_v38, %v3823_v45  ;;  %v3856_v51 = vadd.f32 %v4889_v3, %v3824_v25  ;;  %v3857_v18 = vadd.f32 %v4890_v39, %v3825_v31  ;;  %v3858_v11 = vadd.f32 %v4891_v21, %v3826_v62  ;;  %v4902_v45 = vld [vmem:[%s4995_s10 + $0x90] sm:$0xff]  ;;  %v4903_v31 = vld [vmem:[%s4995_s10 + $0x98] sm:$0xff] }
 0x526   : > { %v3859_v54 = vadd.f32 %v4892_v23, %v3827_v52  ;;  %v3860_v22 = vadd.f32 %v4893_v63, %v3828_v44  ;;  %v3861_v42 = vadd.f32 %v4894_v56, %v3829_v4  ;;  %v3862_v13 = vadd.f32 %v4895_v26, %v3830_v60  ;;  %3883 = vst.msk [vmem:[%s7257_s26] sm:$0xff] %vm922_vm6, %v3851_v19  ;;  %v4904_v52 = vld [vmem:[%s4995_s10 + $0xa0] sm:$0xff]  ;;  %v4905_v4 = vld [vmem:[%s4995_s10 + $0xa8] sm:$0xff]  ;;  %v4915_v17 = vld [vmem:[%s4995_s10 + $0xf8] sm:$0xff] }
 0x527   : > { %3884 = vst.msk [vmem:[%s7257_s26 + $0x8] sm:$0xff] %vm922_vm6, %v3852_v55  ;;  %3885 = vst.msk [vmem:[%s7257_s26 + $0x10] sm:$0xff] %vm922_vm6, %v3853_v30  ;;  %v3863_v0 = vadd.f32 %v4896_v46, %v3831_v58  ;;  %v3864_v35 = vadd.f32 %v4897_v48, %v3832_v15  ;;  %v3865_v33 = vadd.f32 %v4898_v28, %v3833_v9  ;;  %v4906_v58 = vld [vmem:[%s4995_s10 + $0xb0] sm:$0xff]  ;;  %v4907_v9 = vld [vmem:[%s4995_s10 + $0xb8] sm:$0xff] }
 0x528   : > { %3886 = vst.msk [vmem:[%s7257_s26 + $0x18] sm:$0xff] %vm922_vm6, %v3854_v36  ;;  %v3866_v43 = vadd.f32 %v4899_v24, %v3834_v34  ;;  %3887 = vst.msk [vmem:[%s7257_s26 + $0x20] sm:$0xff] %vm922_vm6, %v3855_v7  ;;  %v3867_v50 = vadd.f32 %v4900_v10, %v3835_v6  ;;  %v3868_v29 = vadd.f32 %v4901_v32, %v3836_v16  ;;  %v4908_v6 = vld [vmem:[%s4995_s10 + $0xc0] sm:$0xff] }
 0x529   : > { %3888 = vst.msk [vmem:[%s7257_s26 + $0x28] sm:$0xff] %vm922_vm6, %v3856_v51  ;;  %3889 = vst.msk [vmem:[%s7257_s26 + $0x30] sm:$0xff] %vm922_vm6, %v3857_v18  ;;  %v3869_v25 = vadd.f32 %v4902_v45, %v3837_v59  ;;  %v3870_v62 = vadd.f32 %v4903_v31, %v3838_v8  ;;  %v3871_v44 = vadd.f32 %v4904_v52, %v7236_v20  ;;  %v4909_v59 = vld [vmem:[%s4995_s10 + $0xc8] sm:$0xff]  ;;  %v4910_v20 = vld [vmem:[%s4995_s10 + $0xd0] sm:$0xff] }
 0x52a   : > { %3890 = vst.msk [vmem:[%s7257_s26 + $0x38] sm:$0xff] %vm922_vm6, %v3858_v11  ;;  %3891 = vst.msk [vmem:[%s7257_s26 + $0x40] sm:$0xff] %vm922_vm6, %v3859_v54  ;;  %v3872_v60 = vadd.f32 %v4905_v4, %v7238_v61  ;;  %v3873_v15 = vadd.f32 %v4906_v58, %v7240_v5  ;;  %v3874_v34 = vadd.f32 %v4907_v9, %v7242_v53  ;;  %v4911_v5 = vld [vmem:[%s4995_s10 + $0xd8] sm:$0xff] }
 0x52b   : > { %3892 = vst.msk [vmem:[%s7257_s26 + $0x48] sm:$0xff] %vm922_vm6, %v3860_v22  ;;  %3893 = vst.msk [vmem:[%s7257_s26 + $0x50] sm:$0xff] %vm922_vm6, %v3861_v42  ;;  %v3875_v16 = vadd.f32 %v4908_v6, %v7244_v47  ;;  %v3876_v8 = vadd.f32 %v4909_v59, %v7246_v1  ;;  %v3877_v61 = vadd.f32 %v4910_v20, %v7248_v37  ;;  %v4912_v47 = vld [vmem:[%s4995_s10 + $0xe0] sm:$0xff]  ;;  %v4913_v37 = vld [vmem:[%s4995_s10 + $0xe8] sm:$0xff] }
 0x52c   : > { %3894 = vst.msk [vmem:[%s7257_s26 + $0x58] sm:$0xff] %vm922_vm6, %v3862_v13  ;;  %3895 = vst.msk [vmem:[%s7257_s26 + $0x60] sm:$0xff] %vm922_vm6, %v3863_v0  ;;  %v3878_v53 = vadd.f32 %v4911_v5, %v7250_v49  ;;  %v3879_v1 = vadd.f32 %v4912_v47, %v7259_v41  ;;  %v3880_v49 = vadd.f32 %v4913_v37, %v7261_v12 }
 0x52d   : > { %3896 = vst.msk [vmem:[%s7257_s26 + $0x68] sm:$0xff] %vm922_vm6, %v3864_v35  ;;  %3897 = vst.msk [vmem:[%s7257_s26 + $0x70] sm:$0xff] %vm922_vm6, %v3865_v33  ;;  %v3881_v19 = vadd.f32 %v4914_v2, %v7263_v14  ;;  %v3882_v55 = vadd.f32 %v4915_v17, %v7265_v27 }
 0x52e   : > { %3898 = vst.msk [vmem:[%s7257_s26 + $0x78] sm:$0xff] %vm922_vm6, %v3866_v43  ;;  %3899 = vst.msk [vmem:[%s7257_s26 + $0x80] sm:$0xff] %vm922_vm6, %v3867_v50 }
 0x52f   : > { %3900 = vst.msk [vmem:[%s7257_s26 + $0x88] sm:$0xff] %vm922_vm6, %v3868_v29  ;;  %3901 = vst.msk [vmem:[%s7257_s26 + $0x90] sm:$0xff] %vm922_vm6, %v3869_v25 }
 0x530   : > { %3902 = vst.msk [vmem:[%s7257_s26 + $0x98] sm:$0xff] %vm922_vm6, %v3870_v62  ;;  %3903 = vst.msk [vmem:[%s7257_s26 + $0xa0] sm:$0xff] %vm922_vm6, %v3871_v44 }
 0x531   : > { %3904 = vst.msk [vmem:[%s7257_s26 + $0xa8] sm:$0xff] %vm922_vm6, %v3872_v60  ;;  %3905 = vst.msk [vmem:[%s7257_s26 + $0xb0] sm:$0xff] %vm922_vm6, %v3873_v15 }
 0x532   : > { %3906 = vst.msk [vmem:[%s7257_s26 + $0xb8] sm:$0xff] %vm922_vm6, %v3874_v34  ;;  %3907 = vst.msk [vmem:[%s7257_s26 + $0xc0] sm:$0xff] %vm922_vm6, %v3875_v16 }
 0x533   : > { %3908 = vst.msk [vmem:[%s7257_s26 + $0xc8] sm:$0xff] %vm922_vm6, %v3876_v8  ;;  %3909 = vst.msk [vmem:[%s7257_s26 + $0xd0] sm:$0xff] %vm922_vm6, %v3877_v61 }
 0x534   : > { %3910 = vst.msk [vmem:[%s7257_s26 + $0xd8] sm:$0xff] %vm922_vm6, %v3878_v53  ;;  %3911 = vst.msk [vmem:[%s7257_s26 + $0xe0] sm:$0xff] %vm922_vm6, %v3879_v1 }
 0x535   : > { %3912 = vst.msk [vmem:[%s7257_s26 + $0xe8] sm:$0xff] %vm922_vm6, %v3880_v49  ;;  %3913 = vst.msk [vmem:[%s7257_s26 + $0xf0] sm:$0xff] %vm922_vm6, %v3881_v19 }
 0x536   : > { %3914 = vst.msk [vmem:[%s7257_s26 + $0xf8] sm:$0xff] %vm922_vm6, %v3882_v55 }
 0x537 PF: > { %s17_s24 = sadd.s32 1, %s4922_s24  }
 0x538   : > { %p14_p4 = scmp.ge.s32.totalorder %s17_s24, 4  }
 0x53a   :  { %16 = sbr.rel (!%p14_p4) target bundleno = 1 (0x1), region = 82 }

</bundles_post_ra>
